<compile_context>
chip_gen: v7x
topology: tpu7x:2x2x1
jax: 0.10.0
libtpu: 0.0.40
codegen_flags: <defaults>
</compile_context>

<pallas_src>
import jax
import jax.numpy as jnp
from jax import lax
from jax.experimental import pallas as pl
from jax.experimental.pallas import tpu as pltpu

# ----------------------------- static problem geometry -----------------------------
H = W = 16                         # input spatial size (original net uses 112; same structure)
C_IN = 3
C1, C2 = 32, 64
HO1, WO1 = H - 2, W - 2            # 14, 14 after conv1 (valid 3x3)
HO2, WO2 = HO1 - 2, WO1 - 2        # 12, 12 after conv2
HP, WP = HO2 // 2, WO2 // 2        # 6, 6  after 2x2/2 maxpool
M1 = (HO1 - 1) * W + WO1           # 222 flat conv1 output positions (row stride W)
M2 = (HO2 - 1) * W + WO2           # 188 flat conv2 output positions (row stride W)
N_POOL = HP * WP                   # 36 pooled pixels
HIDDEN = 128


# ----------------------------- fused forward kernel (one image per grid step) -----------------------------
def cnn_fused_kernel(x_ref, w1_ref, b1_ref, w2_ref, b2_ref,
                     wf1_ref, bf1_ref, wf2_ref, bf2_ref,
                     o_ref, h1_s, h2_s):
    # ---- conv1 + ReLU: 9 accumulated (M1, Cin) x (Cin, C1) matmuls (flat row-stride-W layout) ----
    acc1 = jnp.zeros((M1, C1), jnp.float32)
    for kh in range(3):
        for kw in range(3):
            tap = x_ref[0, pl.ds(kh * W + kw, M1), :]               # (M1, 3) shifted slice
            acc1 = acc1 + jnp.dot(tap, w1_ref[kh * 3 + kw],
                                  preferred_element_type=jnp.float32)
    h1_s[...] = jnp.maximum(acc1 + b1_ref[...], 0.0)                # (M1, 32) in VMEM scratch

    # ---- conv2 + ReLU: 9 accumulated (M2, C1) x (C1, C2) matmuls ----
    acc2 = jnp.zeros((M2, C2), jnp.float32)
    for kh in range(3):
        for kw in range(3):
            tap = h1_s[pl.ds(kh * W + kw, M2), :]                   # (M2, 32)
            acc2 = acc2 + jnp.dot(tap, w2_ref[kh * 3 + kw],
                                  preferred_element_type=jnp.float32)
    h2_s[...] = jnp.maximum(acc2 + b2_ref[...], 0.0)                # (M2, 64) in VMEM scratch

    # ---- maxpool(2x2, stride 2) fused with the fc1 contraction ----
    # Each pooled (1, 64) pixel is immediately contracted against the matching
    # (64, 128) block of the NHWC-ordered fc1 weight; the flattened feature
    # vector is never materialized and no transpose is needed.
    acc = jnp.zeros((1, HIDDEN), jnp.float32)
    for i in range(HP):                                             # unrolled: 6 pooled rows
        r0 = h2_s[pl.ds(2 * i * W, WO2), :]                         # (12, 64) image row 2i
        r1 = h2_s[pl.ds((2 * i + 1) * W, WO2), :]                   # (12, 64) image row 2i+1
        vm = jnp.maximum(r0, r1)                                    # vertical max
        for j in range(WP):                                         # unrolled: 6 pooled cols
            pv = jnp.maximum(vm[2 * j:2 * j + 1, :],
                             vm[2 * j + 1:2 * j + 2, :])            # (1, 64) pooled pixel
            acc = acc + jnp.dot(pv, wf1_ref[i * WP + j],
                                preferred_element_type=jnp.float32)
    h = jnp.maximum(acc + bf1_ref[...], 0.0)                        # fc1 + ReLU, (1, 128)

    # ---- fc2 + numerically stable sigmoid ----
    z = jnp.sum(h * wf2_ref[...], axis=-1, keepdims=True) + bf2_ref[...]   # (1, 1)
    ez = jnp.exp(-jnp.abs(z))                                       # EUP
    inv = pl.reciprocal(1.0 + ez, approx=False)
    o_ref[0] = jnp.where(z >= 0.0, inv, ez * inv)


# ----------------------------- wrapper -----------------------------
def cnn_forward(x_nchw, p):
    B = x_nchw.shape[0]
    # NCHW -> NHWC -> flat (H*W, C): layout glue only (channels on the lane axis).
    x = jnp.transpose(x_nchw, (0, 2, 3, 1)).reshape(B, H * W, C_IN).astype(jnp.float32)
    out = pl.pallas_call(
        cnn_fused_kernel,
        out_shape=jax.ShapeDtypeStruct((B, 1, 1), jnp.float32),
        grid=(B,),
        in_specs=[
            pl.BlockSpec((1, H * W, C_IN), lambda b: (b, 0, 0)),    # image (per grid step)
            pl.BlockSpec((9, C_IN, C1), lambda b: (0, 0, 0)),       # conv1 weight (resident)
            pl.BlockSpec((1, C1), lambda b: (0, 0)),
            pl.BlockSpec((9, C1, C2), lambda b: (0, 0, 0)),         # conv2 weight (resident)
            pl.BlockSpec((1, C2), lambda b: (0, 0)),
            # NOTE: at the original 112x112 size this weight is ~95 MB f32 and would
            # NOT fit VMEM (esp. v7x, 64 MiB) — it would need a K-tiled reduction grid
            # axis + a (1, 128) accumulator instead of a single resident block.
            pl.BlockSpec((N_POOL, C2, HIDDEN), lambda b: (0, 0, 0)),  # fc1 weight, NHWC-ordered
            pl.BlockSpec((1, HIDDEN), lambda b: (0, 0)),
            pl.BlockSpec((1, HIDDEN), lambda b: (0, 0)),            # fc2 weight as a row
            pl.BlockSpec((1, 1), lambda b: (0, 0)),
        ],
        out_specs=pl.BlockSpec((1, 1, 1), lambda b: (b, 0, 0)),
        scratch_shapes=[
            pltpu.VMEM((M1, C1), jnp.float32),                      # conv1 activation
            pltpu.VMEM((M2, C2), jnp.float32),                      # conv2 activation
        ],
        compiler_params=pltpu.CompilerParams(dimension_semantics=("parallel",)),
    )(x, p["w1"], p["b1"], p["w2"], p["b2"], p["wf1"], p["bf1"], p["wf2"], p["bf2"])
    return out.reshape(B, 1)


# ----------------------------- parameters (PyTorch layouts -> kernel layouts) -----------------------------
def init_torch_params(key):
    """Random parameters in the PyTorch module's native layouts."""
    ks = jax.random.split(key, 8)

    def f(k, shape, s):
        return (s * jax.random.normal(k, shape)).astype(jnp.float32)

    feat = C2 * HP * WP
    return {
        "conv1_w": f(ks[0], (C1, C_IN, 3, 3), 0.10),   # OIHW
        "conv1_b": f(ks[1], (C1,), 0.10),
        "conv2_w": f(ks[2], (C2, C1, 3, 3), 0.05),     # OIHW
        "conv2_b": f(ks[3], (C2,), 0.05),
        "fc1_w":   f(ks[4], (HIDDEN, feat), 0.02),     # (out, in); in features in NCHW-flat order
        "fc1_b":   f(ks[5], (HIDDEN,), 0.02),
        "fc2_w":   f(ks[6], (1, HIDDEN), 0.05),
        "fc2_b":   f(ks[7], (1,), 0.05),
    }


def to_kernel_params(tp):
    """One-time host-side re-layout of PyTorch-layout weights into kernel layouts."""
    # conv: OIHW -> HWIO -> (tap = kh*3+kw, Cin, Cout)
    w1 = jnp.transpose(tp["conv1_w"], (2, 3, 1, 0)).reshape(9, C_IN, C1)
    w2 = jnp.transpose(tp["conv2_w"], (2, 3, 1, 0)).reshape(9, C1, C2)
    # fc1: torch rows consume NCHW-flat features (f = ch*36 + s).  Re-index to
    # [s, ch, out] so the kernel consumes NHWC-ordered pooled pixels directly
    # (this removes the runtime flatten-transpose).
    wf1 = jnp.transpose(tp["fc1_w"].reshape(HIDDEN, C2, N_POOL), (2, 1, 0))  # (36, 64, 128)
    return {
        "w1": w1, "b1": tp["conv1_b"].reshape(1, C1),
        "w2": w2, "b2": tp["conv2_b"].reshape(1, C2),
        "wf1": wf1, "bf1": tp["fc1_b"].reshape(1, HIDDEN),
        "wf2": tp["fc2_w"].reshape(1, HIDDEN), "bf2": tp["fc2_b"].reshape(1, 1),
    }


# ----------------------------- pure-JAX reference (PyTorch NCHW semantics) -----------------------------
def forward_reference(x_nchw, tp):
    prec = lax.Precision.HIGHEST
    y = lax.conv_general_dilated(x_nchw, tp["conv1_w"], (1, 1), "VALID",
                                 dimension_numbers=("NCHW", "OIHW", "NCHW"),
                                 precision=prec) + tp["conv1_b"][None, :, None, None]
    y = jnp.maximum(y, 0.0)
    y = lax.conv_general_dilated(y, tp["conv2_w"], (1, 1), "VALID",
                                 dimension_numbers=("NCHW", "OIHW", "NCHW"),
                                 precision=prec) + tp["conv2_b"][None, :, None, None]
    y = jnp.maximum(y, 0.0)
    y = lax.reduce_window(y, -jnp.inf, lax.max, (1, 1, 2, 2), (1, 1, 2, 2), "VALID")
    y = y.reshape(y.shape[0], -1)                                   # torch.flatten on NCHW
    y = jnp.maximum(jnp.dot(y, tp["fc1_w"].T, precision=prec) + tp["fc1_b"], 0.0)
    z = jnp.dot(y, tp["fc2_w"].T, precision=prec) + tp["fc2_b"]
    return jax.nn.sigmoid(z)


if __name__ == "__main__":
    key = jax.random.PRNGKey(0)
    kx, kp = jax.random.split(key)

    B = 2
    x = jax.random.normal(kx, (B, C_IN, H, W), dtype=jnp.float32)   # NCHW, like the PyTorch module
    torch_params = init_torch_params(kp)
    kernel_params = to_kernel_params(torch_params)

    out = jax.jit(cnn_forward)(x, kernel_params)
    out = jax.block_until_ready(out)

    assert out.shape == (B, 1), out.shape
    assert bool(jnp.all(jnp.isfinite(out)))
    assert bool(jnp.all((out > 0.0) & (out < 1.0)))

    # Parity with the PyTorch semantics (NCHW conv / NCHW flatten order) via the pure-JAX reference —
    # this re-verifies the fc1 weight re-ordering flagged in the review.
    ref = forward_reference(x, torch_params)
    max_err = float(jnp.max(jnp.abs(out - ref)))
    assert max_err < 2e-3, f"kernel vs reference mismatch: {max_err}"

    print("KERNEL_OK")
</pallas_src>

<mosaic_0001>
module attributes {stable_mosaic.version = 11 : i64} {
  func.func @cnn_fused_kernel(%arg0: i32, %arg1: memref<1x256x3xf32, #tpu.memory_space<vmem>>, %arg2: memref<9x3x32xf32, #tpu.memory_space<vmem>>, %arg3: memref<1x32xf32, #tpu.memory_space<vmem>>, %arg4: memref<9x32x64xf32, #tpu.memory_space<vmem>>, %arg5: memref<1x64xf32, #tpu.memory_space<vmem>>, %arg6: memref<36x64x128xf32, #tpu.memory_space<vmem>>, %arg7: memref<1x128xf32, #tpu.memory_space<vmem>>, %arg8: memref<1x128xf32, #tpu.memory_space<vmem>>, %arg9: memref<1x1xf32, #tpu.memory_space<vmem>>, %arg10: memref<1x1x1xf32, #tpu.memory_space<vmem>>, %arg11: memref<222x32xf32, #tpu.memory_space<vmem>>, %arg12: memref<188x64xf32, #tpu.memory_space<vmem>>) attributes {dimension_semantics = [#tpu.dimension_semantics<parallel>], iteration_bounds = array<i64: 2>, scalar_prefetch = 0 : i64, scratch_operands = 2 : i64, tpu.core_type = #tpu.core_type<tc>, window_params = [{transform_indices = @transform_0, window_bounds = array<i64: 1, 256, 3>}, {pipeline_mode = #tpu.pipeline_mode<synchronous>, transform_indices = @transform_1, window_bounds = array<i64: 9, 3, 32>}, {pipeline_mode = #tpu.pipeline_mode<synchronous>, transform_indices = @transform_2, window_bounds = array<i64: 1, 32>}, {pipeline_mode = #tpu.pipeline_mode<synchronous>, transform_indices = @transform_3, window_bounds = array<i64: 9, 32, 64>}, {pipeline_mode = #tpu.pipeline_mode<synchronous>, transform_indices = @transform_4, window_bounds = array<i64: 1, 64>}, {pipeline_mode = #tpu.pipeline_mode<synchronous>, transform_indices = @transform_5, window_bounds = array<i64: 36, 64, 128>}, {pipeline_mode = #tpu.pipeline_mode<synchronous>, transform_indices = @transform_6, window_bounds = array<i64: 1, 128>}, {pipeline_mode = #tpu.pipeline_mode<synchronous>, transform_indices = @transform_7, window_bounds = array<i64: 1, 128>}, {pipeline_mode = #tpu.pipeline_mode<synchronous>, transform_indices = @transform_8, window_bounds = array<i64: 1, 1>}, {transform_indices = @transform_9, window_bounds = array<i64: 1, 1, 1>}]} {
    %cst = arith.constant 0.000000e+00 : f32
    %0 = vector.broadcast %cst : f32 to vector<222x32xf32>
    %c0 = arith.constant 0 : index
    %c0_0 = arith.constant 0 : index
    %c0_1 = arith.constant 0 : index
    %1 = vector.load %arg1[%c0, %c0_0, %c0_1] : memref<1x256x3xf32, #tpu.memory_space<vmem>>, vector<1x222x3xf32>
    %2 = vector.shape_cast %1 : vector<1x222x3xf32> to vector<222x3xf32>
    %c0_2 = arith.constant 0 : index
    %c0_3 = arith.constant 0 : index
    %c0_4 = arith.constant 0 : index
    %3 = vector.load %arg2[%c0_2, %c0_3, %c0_4] : memref<9x3x32xf32, #tpu.memory_space<vmem>>, vector<1x3x32xf32>
    %4 = vector.shape_cast %3 : vector<1x3x32xf32> to vector<3x32xf32>
    %cst_5 = arith.constant dense<0.000000e+00> : vector<222x32xf32>
    %5 = tpu.matmul %2, %4, %cst_5 {dimension_numbers = #tpu.dot_dimension_numbers<[1], [0], [0], [1], [0, 0, 1, 1], [], []>} : vector<222x3xf32>, vector<3x32xf32>, vector<222x32xf32> -> vector<222x32xf32>
    %6 = arith.addf %0, %5 : vector<222x32xf32>
    %c0_6 = arith.constant 0 : index
    %c1 = arith.constant 1 : index
    %c0_7 = arith.constant 0 : index
    %7 = vector.load %arg1[%c0_6, %c1, %c0_7] : memref<1x256x3xf32, #tpu.memory_space<vmem>>, vector<1x222x3xf32>
    %8 = vector.shape_cast %7 : vector<1x222x3xf32> to vector<222x3xf32>
    %c1_8 = arith.constant 1 : index
    %c0_9 = arith.constant 0 : index
    %c0_10 = arith.constant 0 : index
    %9 = vector.load %arg2[%c1_8, %c0_9, %c0_10] : memref<9x3x32xf32, #tpu.memory_space<vmem>>, vector<1x3x32xf32>
    %10 = vector.shape_cast %9 : vector<1x3x32xf32> to vector<3x32xf32>
    %cst_11 = arith.constant dense<0.000000e+00> : vector<222x32xf32>
    %11 = tpu.matmul %8, %10, %cst_11 {dimension_numbers = #tpu.dot_dimension_numbers<[1], [0], [0], [1], [0, 0, 1, 1], [], []>} : vector<222x3xf32>, vector<3x32xf32>, vector<222x32xf32> -> vector<222x32xf32>
    %12 = arith.addf %6, %11 : vector<222x32xf32>
    %c0_12 = arith.constant 0 : index
    %c2 = arith.constant 2 : index
    %c0_13 = arith.constant 0 : index
    %13 = vector.load %arg1[%c0_12, %c2, %c0_13] : memref<1x256x3xf32, #tpu.memory_space<vmem>>, vector<1x222x3xf32>
    %14 = vector.shape_cast %13 : vector<1x222x3xf32> to vector<222x3xf32>
    %c2_14 = arith.constant 2 : index
    %c0_15 = arith.constant 0 : index
    %c0_16 = arith.constant 0 : index
    %15 = vector.load %arg2[%c2_14, %c0_15, %c0_16] : memref<9x3x32xf32, #tpu.memory_space<vmem>>, vector<1x3x32xf32>
    %16 = vector.shape_cast %15 : vector<1x3x32xf32> to vector<3x32xf32>
    %cst_17 = arith.constant dense<0.000000e+00> : vector<222x32xf32>
    %17 = tpu.matmul %14, %16, %cst_17 {dimension_numbers = #tpu.dot_dimension_numbers<[1], [0], [0], [1], [0, 0, 1, 1], [], []>} : vector<222x3xf32>, vector<3x32xf32>, vector<222x32xf32> -> vector<222x32xf32>
    %18 = arith.addf %12, %17 : vector<222x32xf32>
    %c0_18 = arith.constant 0 : index
    %c16 = arith.constant 16 : index
    %c0_19 = arith.constant 0 : index
    %19 = vector.load %arg1[%c0_18, %c16, %c0_19] : memref<1x256x3xf32, #tpu.memory_space<vmem>>, vector<1x222x3xf32>
    %20 = vector.shape_cast %19 : vector<1x222x3xf32> to vector<222x3xf32>
    %c3 = arith.constant 3 : index
    %c0_20 = arith.constant 0 : index
    %c0_21 = arith.constant 0 : index
    %21 = vector.load %arg2[%c3, %c0_20, %c0_21] : memref<9x3x32xf32, #tpu.memory_space<vmem>>, vector<1x3x32xf32>
    %22 = vector.shape_cast %21 : vector<1x3x32xf32> to vector<3x32xf32>
    %cst_22 = arith.constant dense<0.000000e+00> : vector<222x32xf32>
    %23 = tpu.matmul %20, %22, %cst_22 {dimension_numbers = #tpu.dot_dimension_numbers<[1], [0], [0], [1], [0, 0, 1, 1], [], []>} : vector<222x3xf32>, vector<3x32xf32>, vector<222x32xf32> -> vector<222x32xf32>
    %24 = arith.addf %18, %23 : vector<222x32xf32>
    %c0_23 = arith.constant 0 : index
    %c17 = arith.constant 17 : index
    %c0_24 = arith.constant 0 : index
    %25 = vector.load %arg1[%c0_23, %c17, %c0_24] : memref<1x256x3xf32, #tpu.memory_space<vmem>>, vector<1x222x3xf32>
    %26 = vector.shape_cast %25 : vector<1x222x3xf32> to vector<222x3xf32>
    %c4 = arith.constant 4 : index
    %c0_25 = arith.constant 0 : index
    %c0_26 = arith.constant 0 : index
    %27 = vector.load %arg2[%c4, %c0_25, %c0_26] : memref<9x3x32xf32, #tpu.memory_space<vmem>>, vector<1x3x32xf32>
    %28 = vector.shape_cast %27 : vector<1x3x32xf32> to vector<3x32xf32>
    %cst_27 = arith.constant dense<0.000000e+00> : vector<222x32xf32>
    %29 = tpu.matmul %26, %28, %cst_27 {dimension_numbers = #tpu.dot_dimension_numbers<[1], [0], [0], [1], [0, 0, 1, 1], [], []>} : vector<222x3xf32>, vector<3x32xf32>, vector<222x32xf32> -> vector<222x32xf32>
    %30 = arith.addf %24, %29 : vector<222x32xf32>
    %c0_28 = arith.constant 0 : index
    %c18 = arith.constant 18 : index
    %c0_29 = arith.constant 0 : index
    %31 = vector.load %arg1[%c0_28, %c18, %c0_29] : memref<1x256x3xf32, #tpu.memory_space<vmem>>, vector<1x222x3xf32>
    %32 = vector.shape_cast %31 : vector<1x222x3xf32> to vector<222x3xf32>
    %c5 = arith.constant 5 : index
    %c0_30 = arith.constant 0 : index
    %c0_31 = arith.constant 0 : index
    %33 = vector.load %arg2[%c5, %c0_30, %c0_31] : memref<9x3x32xf32, #tpu.memory_space<vmem>>, vector<1x3x32xf32>
    %34 = vector.shape_cast %33 : vector<1x3x32xf32> to vector<3x32xf32>
    %cst_32 = arith.constant dense<0.000000e+00> : vector<222x32xf32>
    %35 = tpu.matmul %32, %34, %cst_32 {dimension_numbers = #tpu.dot_dimension_numbers<[1], [0], [0], [1], [0, 0, 1, 1], [], []>} : vector<222x3xf32>, vector<3x32xf32>, vector<222x32xf32> -> vector<222x32xf32>
    %36 = arith.addf %30, %35 : vector<222x32xf32>
    %c0_33 = arith.constant 0 : index
    %c32 = arith.constant 32 : index
    %c0_34 = arith.constant 0 : index
    %37 = vector.load %arg1[%c0_33, %c32, %c0_34] : memref<1x256x3xf32, #tpu.memory_space<vmem>>, vector<1x222x3xf32>
    %38 = vector.shape_cast %37 : vector<1x222x3xf32> to vector<222x3xf32>
    %c6 = arith.constant 6 : index
    %c0_35 = arith.constant 0 : index
    %c0_36 = arith.constant 0 : index
    %39 = vector.load %arg2[%c6, %c0_35, %c0_36] : memref<9x3x32xf32, #tpu.memory_space<vmem>>, vector<1x3x32xf32>
    %40 = vector.shape_cast %39 : vector<1x3x32xf32> to vector<3x32xf32>
    %cst_37 = arith.constant dense<0.000000e+00> : vector<222x32xf32>
    %41 = tpu.matmul %38, %40, %cst_37 {dimension_numbers = #tpu.dot_dimension_numbers<[1], [0], [0], [1], [0, 0, 1, 1], [], []>} : vector<222x3xf32>, vector<3x32xf32>, vector<222x32xf32> -> vector<222x32xf32>
    %42 = arith.addf %36, %41 : vector<222x32xf32>
    %c0_38 = arith.constant 0 : index
    %c33 = arith.constant 33 : index
    %c0_39 = arith.constant 0 : index
    %43 = vector.load %arg1[%c0_38, %c33, %c0_39] : memref<1x256x3xf32, #tpu.memory_space<vmem>>, vector<1x222x3xf32>
    %44 = vector.shape_cast %43 : vector<1x222x3xf32> to vector<222x3xf32>
    %c7 = arith.constant 7 : index
    %c0_40 = arith.constant 0 : index
    %c0_41 = arith.constant 0 : index
    %45 = vector.load %arg2[%c7, %c0_40, %c0_41] : memref<9x3x32xf32, #tpu.memory_space<vmem>>, vector<1x3x32xf32>
    %46 = vector.shape_cast %45 : vector<1x3x32xf32> to vector<3x32xf32>
    %cst_42 = arith.constant dense<0.000000e+00> : vector<222x32xf32>
    %47 = tpu.matmul %44, %46, %cst_42 {dimension_numbers = #tpu.dot_dimension_numbers<[1], [0], [0], [1], [0, 0, 1, 1], [], []>} : vector<222x3xf32>, vector<3x32xf32>, vector<222x32xf32> -> vector<222x32xf32>
    %48 = arith.addf %42, %47 : vector<222x32xf32>
    %c0_43 = arith.constant 0 : index
    %c34 = arith.constant 34 : index
    %c0_44 = arith.constant 0 : index
    %49 = vector.load %arg1[%c0_43, %c34, %c0_44] : memref<1x256x3xf32, #tpu.memory_space<vmem>>, vector<1x222x3xf32>
    %50 = vector.shape_cast %49 : vector<1x222x3xf32> to vector<222x3xf32>
    %c8 = arith.constant 8 : index
    %c0_45 = arith.constant 0 : index
    %c0_46 = arith.constant 0 : index
    %51 = vector.load %arg2[%c8, %c0_45, %c0_46] : memref<9x3x32xf32, #tpu.memory_space<vmem>>, vector<1x3x32xf32>
    %52 = vector.shape_cast %51 : vector<1x3x32xf32> to vector<3x32xf32>
    %cst_47 = arith.constant dense<0.000000e+00> : vector<222x32xf32>
    %53 = tpu.matmul %50, %52, %cst_47 {dimension_numbers = #tpu.dot_dimension_numbers<[1], [0], [0], [1], [0, 0, 1, 1], [], []>} : vector<222x3xf32>, vector<3x32xf32>, vector<222x32xf32> -> vector<222x32xf32>
    %54 = arith.addf %48, %53 : vector<222x32xf32>
    %c0_48 = arith.constant 0 : index
    %c0_49 = arith.constant 0 : index
    %55 = vector.load %arg3[%c0_48, %c0_49] : memref<1x32xf32, #tpu.memory_space<vmem>>, vector<1x32xf32>
    %56 = vector.broadcast %55 : vector<1x32xf32> to vector<222x32xf32>
    %57 = arith.addf %54, %56 : vector<222x32xf32>
    %cst_50 = arith.constant 0.000000e+00 : f32
    %58 = vector.broadcast %cst_50 : f32 to vector<222x32xf32>
    %59 = arith.maximumf %57, %58 : vector<222x32xf32>
    %c0_51 = arith.constant 0 : index
    %c0_52 = arith.constant 0 : index
    %60 = vector.load %arg11[%c0_51, %c0_52] : memref<222x32xf32, #tpu.memory_space<vmem>>, vector<222x32xf32>
    tpu.vector_store %arg11[%c0_51, %c0_52], %59 {strides = array<i32>} : memref<222x32xf32, #tpu.memory_space<vmem>>, vector<222x32xf32>,
    %cst_53 = arith.constant 0.000000e+00 : f32
    %61 = vector.broadcast %cst_53 : f32 to vector<188x64xf32>
    %c0_54 = arith.constant 0 : index
    %c0_55 = arith.constant 0 : index
    %62 = vector.load %arg11[%c0_54, %c0_55] : memref<222x32xf32, #tpu.memory_space<vmem>>, vector<188x32xf32>
    %c0_56 = arith.constant 0 : index
    %c0_57 = arith.constant 0 : index
    %c0_58 = arith.constant 0 : index
    %63 = vector.load %arg4[%c0_56, %c0_57, %c0_58] : memref<9x32x64xf32, #tpu.memory_space<vmem>>, vector<1x32x64xf32>
    %64 = vector.shape_cast %63 : vector<1x32x64xf32> to vector<32x64xf32>
    %cst_59 = arith.constant dense<0.000000e+00> : vector<188x64xf32>
    %65 = tpu.matmul %62, %64, %cst_59 {dimension_numbers = #tpu.dot_dimension_numbers<[1], [0], [0], [1], [0, 0, 1, 1], [], []>} : vector<188x32xf32>, vector<32x64xf32>, vector<188x64xf32> -> vector<188x64xf32>
    %66 = arith.addf %61, %65 : vector<188x64xf32>
    %c1_60 = arith.constant 1 : index
    %c0_61 = arith.constant 0 : index
    %67 = vector.load %arg11[%c1_60, %c0_61] : memref<222x32xf32, #tpu.memory_space<vmem>>, vector<188x32xf32>
    %c1_62 = arith.constant 1 : index
    %c0_63 = arith.constant 0 : index
    %c0_64 = arith.constant 0 : index
    %68 = vector.load %arg4[%c1_62, %c0_63, %c0_64] : memref<9x32x64xf32, #tpu.memory_space<vmem>>, vector<1x32x64xf32>
    %69 = vector.shape_cast %68 : vector<1x32x64xf32> to vector<32x64xf32>
    %cst_65 = arith.constant dense<0.000000e+00> : vector<188x64xf32>
    %70 = tpu.matmul %67, %69, %cst_65 {dimension_numbers = #tpu.dot_dimension_numbers<[1], [0], [0], [1], [0, 0, 1, 1], [], []>} : vector<188x32xf32>, vector<32x64xf32>, vector<188x64xf32> -> vector<188x64xf32>
    %71 = arith.addf %66, %70 : vector<188x64xf32>
    %c2_66 = arith.constant 2 : index
    %c0_67 = arith.constant 0 : index
    %72 = vector.load %arg11[%c2_66, %c0_67] : memref<222x32xf32, #tpu.memory_space<vmem>>, vector<188x32xf32>
    %c2_68 = arith.constant 2 : index
    %c0_69 = arith.constant 0 : index
    %c0_70 = arith.constant 0 : index
    %73 = vector.load %arg4[%c2_68, %c0_69, %c0_70] : memref<9x32x64xf32, #tpu.memory_space<vmem>>, vector<1x32x64xf32>
    %74 = vector.shape_cast %73 : vector<1x32x64xf32> to vector<32x64xf32>
    %cst_71 = arith.constant dense<0.000000e+00> : vector<188x64xf32>
    %75 = tpu.matmul %72, %74, %cst_71 {dimension_numbers = #tpu.dot_dimension_numbers<[1], [0], [0], [1], [0, 0, 1, 1], [], []>} : vector<188x32xf32>, vector<32x64xf32>, vector<188x64xf32> -> vector<188x64xf32>
    %76 = arith.addf %71, %75 : vector<188x64xf32>
    %c16_72 = arith.constant 16 : index
    %c0_73 = arith.constant 0 : index
    %77 = vector.load %arg11[%c16_72, %c0_73] : memref<222x32xf32, #tpu.memory_space<vmem>>, vector<188x32xf32>
    %c3_74 = arith.constant 3 : index
    %c0_75 = arith.constant 0 : index
    %c0_76 = arith.constant 0 : index
    %78 = vector.load %arg4[%c3_74, %c0_75, %c0_76] : memref<9x32x64xf32, #tpu.memory_space<vmem>>, vector<1x32x64xf32>
    %79 = vector.shape_cast %78 : vector<1x32x64xf32> to vector<32x64xf32>
    %cst_77 = arith.constant dense<0.000000e+00> : vector<188x64xf32>
    %80 = tpu.matmul %77, %79, %cst_77 {dimension_numbers = #tpu.dot_dimension_numbers<[1], [0], [0], [1], [0, 0, 1, 1], [], []>} : vector<188x32xf32>, vector<32x64xf32>, vector<188x64xf32> -> vector<188x64xf32>
    %81 = arith.addf %76, %80 : vector<188x64xf32>
    %c17_78 = arith.constant 17 : index
    %c0_79 = arith.constant 0 : index
    %82 = vector.load %arg11[%c17_78, %c0_79] : memref<222x32xf32, #tpu.memory_space<vmem>>, vector<188x32xf32>
    %c4_80 = arith.constant 4 : index
    %c0_81 = arith.constant 0 : index
    %c0_82 = arith.constant 0 : index
    %83 = vector.load %arg4[%c4_80, %c0_81, %c0_82] : memref<9x32x64xf32, #tpu.memory_space<vmem>>, vector<1x32x64xf32>
    %84 = vector.shape_cast %83 : vector<1x32x64xf32> to vector<32x64xf32>
    %cst_83 = arith.constant dense<0.000000e+00> : vector<188x64xf32>
    %85 = tpu.matmul %82, %84, %cst_83 {dimension_numbers = #tpu.dot_dimension_numbers<[1], [0], [0], [1], [0, 0, 1, 1], [], []>} : vector<188x32xf32>, vector<32x64xf32>, vector<188x64xf32> -> vector<188x64xf32>
    %86 = arith.addf %81, %85 : vector<188x64xf32>
    %c18_84 = arith.constant 18 : index
    %c0_85 = arith.constant 0 : index
    %87 = vector.load %arg11[%c18_84, %c0_85] : memref<222x32xf32, #tpu.memory_space<vmem>>, vector<188x32xf32>
    %c5_86 = arith.constant 5 : index
    %c0_87 = arith.constant 0 : index
    %c0_88 = arith.constant 0 : index
    %88 = vector.load %arg4[%c5_86, %c0_87, %c0_88] : memref<9x32x64xf32, #tpu.memory_space<vmem>>, vector<1x32x64xf32>
    %89 = vector.shape_cast %88 : vector<1x32x64xf32> to vector<32x64xf32>
    %cst_89 = arith.constant dense<0.000000e+00> : vector<188x64xf32>
    %90 = tpu.matmul %87, %89, %cst_89 {dimension_numbers = #tpu.dot_dimension_numbers<[1], [0], [0], [1], [0, 0, 1, 1], [], []>} : vector<188x32xf32>, vector<32x64xf32>, vector<188x64xf32> -> vector<188x64xf32>
    %91 = arith.addf %86, %90 : vector<188x64xf32>
    %c32_90 = arith.constant 32 : index
    %c0_91 = arith.constant 0 : index
    %92 = vector.load %arg11[%c32_90, %c0_91] : memref<222x32xf32, #tpu.memory_space<vmem>>, vector<188x32xf32>
    %c6_92 = arith.constant 6 : index
    %c0_93 = arith.constant 0 : index
    %c0_94 = arith.constant 0 : index
    %93 = vector.load %arg4[%c6_92, %c0_93, %c0_94] : memref<9x32x64xf32, #tpu.memory_space<vmem>>, vector<1x32x64xf32>
    %94 = vector.shape_cast %93 : vector<1x32x64xf32> to vector<32x64xf32>
    %cst_95 = arith.constant dense<0.000000e+00> : vector<188x64xf32>
    %95 = tpu.matmul %92, %94, %cst_95 {dimension_numbers = #tpu.dot_dimension_numbers<[1], [0], [0], [1], [0, 0, 1, 1], [], []>} : vector<188x32xf32>, vector<32x64xf32>, vector<188x64xf32> -> vector<188x64xf32>
    %96 = arith.addf %91, %95 : vector<188x64xf32>
    %c33_96 = arith.constant 33 : index
    %c0_97 = arith.constant 0 : index
    %97 = vector.load %arg11[%c33_96, %c0_97] : memref<222x32xf32, #tpu.memory_space<vmem>>, vector<188x32xf32>
    %c7_98 = arith.constant 7 : index
    %c0_99 = arith.constant 0 : index
    %c0_100 = arith.constant 0 : index
    %98 = vector.load %arg4[%c7_98, %c0_99, %c0_100] : memref<9x32x64xf32, #tpu.memory_space<vmem>>, vector<1x32x64xf32>
    %99 = vector.shape_cast %98 : vector<1x32x64xf32> to vector<32x64xf32>
    %cst_101 = arith.constant dense<0.000000e+00> : vector<188x64xf32>
    %100 = tpu.matmul %97, %99, %cst_101 {dimension_numbers = #tpu.dot_dimension_numbers<[1], [0], [0], [1], [0, 0, 1, 1], [], []>} : vector<188x32xf32>, vector<32x64xf32>, vector<188x64xf32> -> vector<188x64xf32>
    %101 = arith.addf %96, %100 : vector<188x64xf32>
    %c34_102 = arith.constant 34 : index
    %c0_103 = arith.constant 0 : index
    %102 = vector.load %arg11[%c34_102, %c0_103] : memref<222x32xf32, #tpu.memory_space<vmem>>, vector<188x32xf32>
    %c8_104 = arith.constant 8 : index
    %c0_105 = arith.constant 0 : index
    %c0_106 = arith.constant 0 : index
    %103 = vector.load %arg4[%c8_104, %c0_105, %c0_106] : memref<9x32x64xf32, #tpu.memory_space<vmem>>, vector<1x32x64xf32>
    %104 = vector.shape_cast %103 : vector<1x32x64xf32> to vector<32x64xf32>
    %cst_107 = arith.constant dense<0.000000e+00> : vector<188x64xf32>
    %105 = tpu.matmul %102, %104, %cst_107 {dimension_numbers = #tpu.dot_dimension_numbers<[1], [0], [0], [1], [0, 0, 1, 1], [], []>} : vector<188x32xf32>, vector<32x64xf32>, vector<188x64xf32> -> vector<188x64xf32>
    %106 = arith.addf %101, %105 : vector<188x64xf32>
    %c0_108 = arith.constant 0 : index
    %c0_109 = arith.constant 0 : index
    %107 = vector.load %arg5[%c0_108, %c0_109] : memref<1x64xf32, #tpu.memory_space<vmem>>, vector<1x64xf32>
    %108 = vector.broadcast %107 : vector<1x64xf32> to vector<188x64xf32>
    %109 = arith.addf %106, %108 : vector<188x64xf32>
    %cst_110 = arith.constant 0.000000e+00 : f32
    %110 = vector.broadcast %cst_110 : f32 to vector<188x64xf32>
    %111 = arith.maximumf %109, %110 : vector<188x64xf32>
    %c0_111 = arith.constant 0 : index
    %c0_112 = arith.constant 0 : index
    %112 = vector.load %arg12[%c0_111, %c0_112] : memref<188x64xf32, #tpu.memory_space<vmem>>, vector<188x64xf32>
    tpu.vector_store %arg12[%c0_111, %c0_112], %111 {strides = array<i32>} : memref<188x64xf32, #tpu.memory_space<vmem>>, vector<188x64xf32>,
    %cst_113 = arith.constant 0.000000e+00 : f32
    %113 = vector.broadcast %cst_113 : f32 to vector<1x128xf32>
    %c0_114 = arith.constant 0 : index
    %c0_115 = arith.constant 0 : index
    %114 = vector.load %arg12[%c0_114, %c0_115] : memref<188x64xf32, #tpu.memory_space<vmem>>, vector<12x64xf32>
    %c16_116 = arith.constant 16 : index
    %c0_117 = arith.constant 0 : index
    %115 = vector.load %arg12[%c16_116, %c0_117] : memref<188x64xf32, #tpu.memory_space<vmem>>, vector<12x64xf32>
    %116 = arith.maximumf %114, %115 : vector<12x64xf32>
    %117 = vector.extract_strided_slice %116 {offsets = [0, 0], sizes = [1, 64], strides = [1, 1]} : vector<12x64xf32> to vector<1x64xf32>
    %118 = vector.extract_strided_slice %116 {offsets = [1, 0], sizes = [1, 64], strides = [1, 1]} : vector<12x64xf32> to vector<1x64xf32>
    %119 = arith.maximumf %117, %118 : vector<1x64xf32>
    %c0_118 = arith.constant 0 : index
    %c0_119 = arith.constant 0 : index
    %c0_120 = arith.constant 0 : index
    %120 = vector.load %arg6[%c0_118, %c0_119, %c0_120] : memref<36x64x128xf32, #tpu.memory_space<vmem>>, vector<1x64x128xf32>
    %121 = vector.shape_cast %120 : vector<1x64x128xf32> to vector<64x128xf32>
    %cst_121 = arith.constant dense<0.000000e+00> : vector<1x128xf32>
    %122 = tpu.matmul %119, %121, %cst_121 {dimension_numbers = #tpu.dot_dimension_numbers<[1], [0], [0], [1], [0, 0, 1, 1], [], []>} : vector<1x64xf32>, vector<64x128xf32>, vector<1x128xf32> -> vector<1x128xf32>
    %123 = arith.addf %113, %122 : vector<1x128xf32>
    %124 = vector.extract_strided_slice %116 {offsets = [2, 0], sizes = [1, 64], strides = [1, 1]} : vector<12x64xf32> to vector<1x64xf32>
    %125 = vector.extract_strided_slice %116 {offsets = [3, 0], sizes = [1, 64], strides = [1, 1]} : vector<12x64xf32> to vector<1x64xf32>
    %126 = arith.maximumf %124, %125 : vector<1x64xf32>
    %c1_122 = arith.constant 1 : index
    %c0_123 = arith.constant 0 : index
    %c0_124 = arith.constant 0 : index
    %127 = vector.load %arg6[%c1_122, %c0_123, %c0_124] : memref<36x64x128xf32, #tpu.memory_space<vmem>>, vector<1x64x128xf32>
    %128 = vector.shape_cast %127 : vector<1x64x128xf32> to vector<64x128xf32>
    %cst_125 = arith.constant dense<0.000000e+00> : vector<1x128xf32>
    %129 = tpu.matmul %126, %128, %cst_125 {dimension_numbers = #tpu.dot_dimension_numbers<[1], [0], [0], [1], [0, 0, 1, 1], [], []>} : vector<1x64xf32>, vector<64x128xf32>, vector<1x128xf32> -> vector<1x128xf32>
    %130 = arith.addf %123, %129 : vector<1x128xf32>
    %131 = vector.extract_strided_slice %116 {offsets = [4, 0], sizes = [1, 64], strides = [1, 1]} : vector<12x64xf32> to vector<1x64xf32>
    %132 = vector.extract_strided_slice %116 {offsets = [5, 0], sizes = [1, 64], strides = [1, 1]} : vector<12x64xf32> to vector<1x64xf32>
    %133 = arith.maximumf %131, %132 : vector<1x64xf32>
    %c2_126 = arith.constant 2 : index
    %c0_127 = arith.constant 0 : index
    %c0_128 = arith.constant 0 : index
    %134 = vector.load %arg6[%c2_126, %c0_127, %c0_128] : memref<36x64x128xf32, #tpu.memory_space<vmem>>, vector<1x64x128xf32>
    %135 = vector.shape_cast %134 : vector<1x64x128xf32> to vector<64x128xf32>
    %cst_129 = arith.constant dense<0.000000e+00> : vector<1x128xf32>
    %136 = tpu.matmul %133, %135, %cst_129 {dimension_numbers = #tpu.dot_dimension_numbers<[1], [0], [0], [1], [0, 0, 1, 1], [], []>} : vector<1x64xf32>, vector<64x128xf32>, vector<1x128xf32> -> vector<1x128xf32>
    %137 = arith.addf %130, %136 : vector<1x128xf32>
    %138 = vector.extract_strided_slice %116 {offsets = [6, 0], sizes = [1, 64], strides = [1, 1]} : vector<12x64xf32> to vector<1x64xf32>
    %139 = vector.extract_strided_slice %116 {offsets = [7, 0], sizes = [1, 64], strides = [1, 1]} : vector<12x64xf32> to vector<1x64xf32>
    %140 = arith.maximumf %138, %139 : vector<1x64xf32>
    %c3_130 = arith.constant 3 : index
    %c0_131 = arith.constant 0 : index
    %c0_132 = arith.constant 0 : index
    %141 = vector.load %arg6[%c3_130, %c0_131, %c0_132] : memref<36x64x128xf32, #tpu.memory_space<vmem>>, vector<1x64x128xf32>
    %142 = vector.shape_cast %141 : vector<1x64x128xf32> to vector<64x128xf32>
    %cst_133 = arith.constant dense<0.000000e+00> : vector<1x128xf32>
    %143 = tpu.matmul %140, %142, %cst_133 {dimension_numbers = #tpu.dot_dimension_numbers<[1], [0], [0], [1], [0, 0, 1, 1], [], []>} : vector<1x64xf32>, vector<64x128xf32>, vector<1x128xf32> -> vector<1x128xf32>
    %144 = arith.addf %137, %143 : vector<1x128xf32>
    %145 = vector.extract_strided_slice %116 {offsets = [8, 0], sizes = [1, 64], strides = [1, 1]} : vector<12x64xf32> to vector<1x64xf32>
    %146 = vector.extract_strided_slice %116 {offsets = [9, 0], sizes = [1, 64], strides = [1, 1]} : vector<12x64xf32> to vector<1x64xf32>
    %147 = arith.maximumf %145, %146 : vector<1x64xf32>
    %c4_134 = arith.constant 4 : index
    %c0_135 = arith.constant 0 : index
    %c0_136 = arith.constant 0 : index
    %148 = vector.load %arg6[%c4_134, %c0_135, %c0_136] : memref<36x64x128xf32, #tpu.memory_space<vmem>>, vector<1x64x128xf32>
    %149 = vector.shape_cast %148 : vector<1x64x128xf32> to vector<64x128xf32>
    %cst_137 = arith.constant dense<0.000000e+00> : vector<1x128xf32>
    %150 = tpu.matmul %147, %149, %cst_137 {dimension_numbers = #tpu.dot_dimension_numbers<[1], [0], [0], [1], [0, 0, 1, 1], [], []>} : vector<1x64xf32>, vector<64x128xf32>, vector<1x128xf32> -> vector<1x128xf32>
    %151 = arith.addf %144, %150 : vector<1x128xf32>
    %152 = vector.extract_strided_slice %116 {offsets = [10, 0], sizes = [1, 64], strides = [1, 1]} : vector<12x64xf32> to vector<1x64xf32>
    %153 = vector.extract_strided_slice %116 {offsets = [11, 0], sizes = [1, 64], strides = [1, 1]} : vector<12x64xf32> to vector<1x64xf32>
    %154 = arith.maximumf %152, %153 : vector<1x64xf32>
    %c5_138 = arith.constant 5 : index
    %c0_139 = arith.constant 0 : index
    %c0_140 = arith.constant 0 : index
    %155 = vector.load %arg6[%c5_138, %c0_139, %c0_140] : memref<36x64x128xf32, #tpu.memory_space<vmem>>, vector<1x64x128xf32>
    %156 = vector.shape_cast %155 : vector<1x64x128xf32> to vector<64x128xf32>
    %cst_141 = arith.constant dense<0.000000e+00> : vector<1x128xf32>
    %157 = tpu.matmul %154, %156, %cst_141 {dimension_numbers = #tpu.dot_dimension_numbers<[1], [0], [0], [1], [0, 0, 1, 1], [], []>} : vector<1x64xf32>, vector<64x128xf32>, vector<1x128xf32> -> vector<1x128xf32>
    %158 = arith.addf %151, %157 : vector<1x128xf32>
    %c32_142 = arith.constant 32 : index
    %c0_143 = arith.constant 0 : index
    %159 = vector.load %arg12[%c32_142, %c0_143] : memref<188x64xf32, #tpu.memory_space<vmem>>, vector<12x64xf32>
    %c48 = arith.constant 48 : index
    %c0_144 = arith.constant 0 : index
    %160 = vector.load %arg12[%c48, %c0_144] : memref<188x64xf32, #tpu.memory_space<vmem>>, vector<12x64xf32>
    %161 = arith.maximumf %159, %160 : vector<12x64xf32>
    %162 = vector.extract_strided_slice %161 {offsets = [0, 0], sizes = [1, 64], strides = [1, 1]} : vector<12x64xf32> to vector<1x64xf32>
    %163 = vector.extract_strided_slice %161 {offsets = [1, 0], sizes = [1, 64], strides = [1, 1]} : vector<12x64xf32> to vector<1x64xf32>
    %164 = arith.maximumf %162, %163 : vector<1x64xf32>
    %c6_145 = arith.constant 6 : index
    %c0_146 = arith.constant 0 : index
    %c0_147 = arith.constant 0 : index
    %165 = vector.load %arg6[%c6_145, %c0_146, %c0_147] : memref<36x64x128xf32, #tpu.memory_space<vmem>>, vector<1x64x128xf32>
    %166 = vector.shape_cast %165 : vector<1x64x128xf32> to vector<64x128xf32>
    %cst_148 = arith.constant dense<0.000000e+00> : vector<1x128xf32>
    %167 = tpu.matmul %164, %166, %cst_148 {dimension_numbers = #tpu.dot_dimension_numbers<[1], [0], [0], [1], [0, 0, 1, 1], [], []>} : vector<1x64xf32>, vector<64x128xf32>, vector<1x128xf32> -> vector<1x128xf32>
    %168 = arith.addf %158, %167 : vector<1x128xf32>
    %169 = vector.extract_strided_slice %161 {offsets = [2, 0], sizes = [1, 64], strides = [1, 1]} : vector<12x64xf32> to vector<1x64xf32>
    %170 = vector.extract_strided_slice %161 {offsets = [3, 0], sizes = [1, 64], strides = [1, 1]} : vector<12x64xf32> to vector<1x64xf32>
    %171 = arith.maximumf %169, %170 : vector<1x64xf32>
    %c7_149 = arith.constant 7 : index
    %c0_150 = arith.constant 0 : index
    %c0_151 = arith.constant 0 : index
    %172 = vector.load %arg6[%c7_149, %c0_150, %c0_151] : memref<36x64x128xf32, #tpu.memory_space<vmem>>, vector<1x64x128xf32>
    %173 = vector.shape_cast %172 : vector<1x64x128xf32> to vector<64x128xf32>
    %cst_152 = arith.constant dense<0.000000e+00> : vector<1x128xf32>
    %174 = tpu.matmul %171, %173, %cst_152 {dimension_numbers = #tpu.dot_dimension_numbers<[1], [0], [0], [1], [0, 0, 1, 1], [], []>} : vector<1x64xf32>, vector<64x128xf32>, vector<1x128xf32> -> vector<1x128xf32>
    %175 = arith.addf %168, %174 : vector<1x128xf32>
    %176 = vector.extract_strided_slice %161 {offsets = [4, 0], sizes = [1, 64], strides = [1, 1]} : vector<12x64xf32> to vector<1x64xf32>
    %177 = vector.extract_strided_slice %161 {offsets = [5, 0], sizes = [1, 64], strides = [1, 1]} : vector<12x64xf32> to vector<1x64xf32>
    %178 = arith.maximumf %176, %177 : vector<1x64xf32>
    %c8_153 = arith.constant 8 : index
    %c0_154 = arith.constant 0 : index
    %c0_155 = arith.constant 0 : index
    %179 = vector.load %arg6[%c8_153, %c0_154, %c0_155] : memref<36x64x128xf32, #tpu.memory_space<vmem>>, vector<1x64x128xf32>
    %180 = vector.shape_cast %179 : vector<1x64x128xf32> to vector<64x128xf32>
    %cst_156 = arith.constant dense<0.000000e+00> : vector<1x128xf32>
    %181 = tpu.matmul %178, %180, %cst_156 {dimension_numbers = #tpu.dot_dimension_numbers<[1], [0], [0], [1], [0, 0, 1, 1], [], []>} : vector<1x64xf32>, vector<64x128xf32>, vector<1x128xf32> -> vector<1x128xf32>
    %182 = arith.addf %175, %181 : vector<1x128xf32>
    %183 = vector.extract_strided_slice %161 {offsets = [6, 0], sizes = [1, 64], strides = [1, 1]} : vector<12x64xf32> to vector<1x64xf32>
    %184 = vector.extract_strided_slice %161 {offsets = [7, 0], sizes = [1, 64], strides = [1, 1]} : vector<12x64xf32> to vector<1x64xf32>
    %185 = arith.maximumf %183, %184 : vector<1x64xf32>
    %c9 = arith.constant 9 : index
    %c0_157 = arith.constant 0 : index
    %c0_158 = arith.constant 0 : index
    %186 = vector.load %arg6[%c9, %c0_157, %c0_158] : memref<36x64x128xf32, #tpu.memory_space<vmem>>, vector<1x64x128xf32>
    %187 = vector.shape_cast %186 : vector<1x64x128xf32> to vector<64x128xf32>
    %cst_159 = arith.constant dense<0.000000e+00> : vector<1x128xf32>
    %188 = tpu.matmul %185, %187, %cst_159 {dimension_numbers = #tpu.dot_dimension_numbers<[1], [0], [0], [1], [0, 0, 1, 1], [], []>} : vector<1x64xf32>, vector<64x128xf32>, vector<1x128xf32> -> vector<1x128xf32>
    %189 = arith.addf %182, %188 : vector<1x128xf32>
    %190 = vector.extract_strided_slice %161 {offsets = [8, 0], sizes = [1, 64], strides = [1, 1]} : vector<12x64xf32> to vector<1x64xf32>
    %191 = vector.extract_strided_slice %161 {offsets = [9, 0], sizes = [1, 64], strides = [1, 1]} : vector<12x64xf32> to vector<1x64xf32>
    %192 = arith.maximumf %190, %191 : vector<1x64xf32>
    %c10 = arith.constant 10 : index
    %c0_160 = arith.constant 0 : index
    %c0_161 = arith.constant 0 : index
    %193 = vector.load %arg6[%c10, %c0_160, %c0_161] : memref<36x64x128xf32, #tpu.memory_space<vmem>>, vector<1x64x128xf32>
    %194 = vector.shape_cast %193 : vector<1x64x128xf32> to vector<64x128xf32>
    %cst_162 = arith.constant dense<0.000000e+00> : vector<1x128xf32>
    %195 = tpu.matmul %192, %194, %cst_162 {dimension_numbers = #tpu.dot_dimension_numbers<[1], [0], [0], [1], [0, 0, 1, 1], [], []>} : vector<1x64xf32>, vector<64x128xf32>, vector<1x128xf32> -> vector<1x128xf32>
    %196 = arith.addf %189, %195 : vector<1x128xf32>
    %197 = vector.extract_strided_slice %161 {offsets = [10, 0], sizes = [1, 64], strides = [1, 1]} : vector<12x64xf32> to vector<1x64xf32>
    %198 = vector.extract_strided_slice %161 {offsets = [11, 0], sizes = [1, 64], strides = [1, 1]} : vector<12x64xf32> to vector<1x64xf32>
    %199 = arith.maximumf %197, %198 : vector<1x64xf32>
    %c11 = arith.constant 11 : index
    %c0_163 = arith.constant 0 : index
    %c0_164 = arith.constant 0 : index
    %200 = vector.load %arg6[%c11, %c0_163, %c0_164] : memref<36x64x128xf32, #tpu.memory_space<vmem>>, vector<1x64x128xf32>
    %201 = vector.shape_cast %200 : vector<1x64x128xf32> to vector<64x128xf32>
    %cst_165 = arith.constant dense<0.000000e+00> : vector<1x128xf32>
    %202 = tpu.matmul %199, %201, %cst_165 {dimension_numbers = #tpu.dot_dimension_numbers<[1], [0], [0], [1], [0, 0, 1, 1], [], []>} : vector<1x64xf32>, vector<64x128xf32>, vector<1x128xf32> -> vector<1x128xf32>
    %203 = arith.addf %196, %202 : vector<1x128xf32>
    %c64 = arith.constant 64 : index
    %c0_166 = arith.constant 0 : index
    %204 = vector.load %arg12[%c64, %c0_166] : memref<188x64xf32, #tpu.memory_space<vmem>>, vector<12x64xf32>
    %c80 = arith.constant 80 : index
    %c0_167 = arith.constant 0 : index
    %205 = vector.load %arg12[%c80, %c0_167] : memref<188x64xf32, #tpu.memory_space<vmem>>, vector<12x64xf32>
    %206 = arith.maximumf %204, %205 : vector<12x64xf32>
    %207 = vector.extract_strided_slice %206 {offsets = [0, 0], sizes = [1, 64], strides = [1, 1]} : vector<12x64xf32> to vector<1x64xf32>
    %208 = vector.extract_strided_slice %206 {offsets = [1, 0], sizes = [1, 64], strides = [1, 1]} : vector<12x64xf32> to vector<1x64xf32>
    %209 = arith.maximumf %207, %208 : vector<1x64xf32>
    %c12 = arith.constant 12 : index
    %c0_168 = arith.constant 0 : index
    %c0_169 = arith.constant 0 : index
    %210 = vector.load %arg6[%c12, %c0_168, %c0_169] : memref<36x64x128xf32, #tpu.memory_space<vmem>>, vector<1x64x128xf32>
    %211 = vector.shape_cast %210 : vector<1x64x128xf32> to vector<64x128xf32>
    %cst_170 = arith.constant dense<0.000000e+00> : vector<1x128xf32>
    %212 = tpu.matmul %209, %211, %cst_170 {dimension_numbers = #tpu.dot_dimension_numbers<[1], [0], [0], [1], [0, 0, 1, 1], [], []>} : vector<1x64xf32>, vector<64x128xf32>, vector<1x128xf32> -> vector<1x128xf32>
    %213 = arith.addf %203, %212 : vector<1x128xf32>
    %214 = vector.extract_strided_slice %206 {offsets = [2, 0], sizes = [1, 64], strides = [1, 1]} : vector<12x64xf32> to vector<1x64xf32>
    %215 = vector.extract_strided_slice %206 {offsets = [3, 0], sizes = [1, 64], strides = [1, 1]} : vector<12x64xf32> to vector<1x64xf32>
    %216 = arith.maximumf %214, %215 : vector<1x64xf32>
    %c13 = arith.constant 13 : index
    %c0_171 = arith.constant 0 : index
    %c0_172 = arith.constant 0 : index
    %217 = vector.load %arg6[%c13, %c0_171, %c0_172] : memref<36x64x128xf32, #tpu.memory_space<vmem>>, vector<1x64x128xf32>
    %218 = vector.shape_cast %217 : vector<1x64x128xf32> to vector<64x128xf32>
    %cst_173 = arith.constant dense<0.000000e+00> : vector<1x128xf32>
    %219 = tpu.matmul %216, %218, %cst_173 {dimension_numbers = #tpu.dot_dimension_numbers<[1], [0], [0], [1], [0, 0, 1, 1], [], []>} : vector<1x64xf32>, vector<64x128xf32>, vector<1x128xf32> -> vector<1x128xf32>
    %220 = arith.addf %213, %219 : vector<1x128xf32>
    %221 = vector.extract_strided_slice %206 {offsets = [4, 0], sizes = [1, 64], strides = [1, 1]} : vector<12x64xf32> to vector<1x64xf32>
    %222 = vector.extract_strided_slice %206 {offsets = [5, 0], sizes = [1, 64], strides = [1, 1]} : vector<12x64xf32> to vector<1x64xf32>
    %223 = arith.maximumf %221, %222 : vector<1x64xf32>
    %c14 = arith.constant 14 : index
    %c0_174 = arith.constant 0 : index
    %c0_175 = arith.constant 0 : index
    %224 = vector.load %arg6[%c14, %c0_174, %c0_175] : memref<36x64x128xf32, #tpu.memory_space<vmem>>, vector<1x64x128xf32>
    %225 = vector.shape_cast %224 : vector<1x64x128xf32> to vector<64x128xf32>
    %cst_176 = arith.constant dense<0.000000e+00> : vector<1x128xf32>
    %226 = tpu.matmul %223, %225, %cst_176 {dimension_numbers = #tpu.dot_dimension_numbers<[1], [0], [0], [1], [0, 0, 1, 1], [], []>} : vector<1x64xf32>, vector<64x128xf32>, vector<1x128xf32> -> vector<1x128xf32>
    %227 = arith.addf %220, %226 : vector<1x128xf32>
    %228 = vector.extract_strided_slice %206 {offsets = [6, 0], sizes = [1, 64], strides = [1, 1]} : vector<12x64xf32> to vector<1x64xf32>
    %229 = vector.extract_strided_slice %206 {offsets = [7, 0], sizes = [1, 64], strides = [1, 1]} : vector<12x64xf32> to vector<1x64xf32>
    %230 = arith.maximumf %228, %229 : vector<1x64xf32>
    %c15 = arith.constant 15 : index
    %c0_177 = arith.constant 0 : index
    %c0_178 = arith.constant 0 : index
    %231 = vector.load %arg6[%c15, %c0_177, %c0_178] : memref<36x64x128xf32, #tpu.memory_space<vmem>>, vector<1x64x128xf32>
    %232 = vector.shape_cast %231 : vector<1x64x128xf32> to vector<64x128xf32>
    %cst_179 = arith.constant dense<0.000000e+00> : vector<1x128xf32>
    %233 = tpu.matmul %230, %232, %cst_179 {dimension_numbers = #tpu.dot_dimension_numbers<[1], [0], [0], [1], [0, 0, 1, 1], [], []>} : vector<1x64xf32>, vector<64x128xf32>, vector<1x128xf32> -> vector<1x128xf32>
    %234 = arith.addf %227, %233 : vector<1x128xf32>
    %235 = vector.extract_strided_slice %206 {offsets = [8, 0], sizes = [1, 64], strides = [1, 1]} : vector<12x64xf32> to vector<1x64xf32>
    %236 = vector.extract_strided_slice %206 {offsets = [9, 0], sizes = [1, 64], strides = [1, 1]} : vector<12x64xf32> to vector<1x64xf32>
    %237 = arith.maximumf %235, %236 : vector<1x64xf32>
    %c16_180 = arith.constant 16 : index
    %c0_181 = arith.constant 0 : index
    %c0_182 = arith.constant 0 : index
    %238 = vector.load %arg6[%c16_180, %c0_181, %c0_182] : memref<36x64x128xf32, #tpu.memory_space<vmem>>, vector<1x64x128xf32>
    %239 = vector.shape_cast %238 : vector<1x64x128xf32> to vector<64x128xf32>
    %cst_183 = arith.constant dense<0.000000e+00> : vector<1x128xf32>
    %240 = tpu.matmul %237, %239, %cst_183 {dimension_numbers = #tpu.dot_dimension_numbers<[1], [0], [0], [1], [0, 0, 1, 1], [], []>} : vector<1x64xf32>, vector<64x128xf32>, vector<1x128xf32> -> vector<1x128xf32>
    %241 = arith.addf %234, %240 : vector<1x128xf32>
    %242 = vector.extract_strided_slice %206 {offsets = [10, 0], sizes = [1, 64], strides = [1, 1]} : vector<12x64xf32> to vector<1x64xf32>
    %243 = vector.extract_strided_slice %206 {offsets = [11, 0], sizes = [1, 64], strides = [1, 1]} : vector<12x64xf32> to vector<1x64xf32>
    %244 = arith.maximumf %242, %243 : vector<1x64xf32>
    %c17_184 = arith.constant 17 : index
    %c0_185 = arith.constant 0 : index
    %c0_186 = arith.constant 0 : index
    %245 = vector.load %arg6[%c17_184, %c0_185, %c0_186] : memref<36x64x128xf32, #tpu.memory_space<vmem>>, vector<1x64x128xf32>
    %246 = vector.shape_cast %245 : vector<1x64x128xf32> to vector<64x128xf32>
    %cst_187 = arith.constant dense<0.000000e+00> : vector<1x128xf32>
    %247 = tpu.matmul %244, %246, %cst_187 {dimension_numbers = #tpu.dot_dimension_numbers<[1], [0], [0], [1], [0, 0, 1, 1], [], []>} : vector<1x64xf32>, vector<64x128xf32>, vector<1x128xf32> -> vector<1x128xf32>
    %248 = arith.addf %241, %247 : vector<1x128xf32>
    %c96 = arith.constant 96 : index
    %c0_188 = arith.constant 0 : index
    %249 = vector.load %arg12[%c96, %c0_188] : memref<188x64xf32, #tpu.memory_space<vmem>>, vector<12x64xf32>
    %c112 = arith.constant 112 : index
    %c0_189 = arith.constant 0 : index
    %250 = vector.load %arg12[%c112, %c0_189] : memref<188x64xf32, #tpu.memory_space<vmem>>, vector<12x64xf32>
    %251 = arith.maximumf %249, %250 : vector<12x64xf32>
    %252 = vector.extract_strided_slice %251 {offsets = [0, 0], sizes = [1, 64], strides = [1, 1]} : vector<12x64xf32> to vector<1x64xf32>
    %253 = vector.extract_strided_slice %251 {offsets = [1, 0], sizes = [1, 64], strides = [1, 1]} : vector<12x64xf32> to vector<1x64xf32>
    %254 = arith.maximumf %252, %253 : vector<1x64xf32>
    %c18_190 = arith.constant 18 : index
    %c0_191 = arith.constant 0 : index
    %c0_192 = arith.constant 0 : index
    %255 = vector.load %arg6[%c18_190, %c0_191, %c0_192] : memref<36x64x128xf32, #tpu.memory_space<vmem>>, vector<1x64x128xf32>
    %256 = vector.shape_cast %255 : vector<1x64x128xf32> to vector<64x128xf32>
    %cst_193 = arith.constant dense<0.000000e+00> : vector<1x128xf32>
    %257 = tpu.matmul %254, %256, %cst_193 {dimension_numbers = #tpu.dot_dimension_numbers<[1], [0], [0], [1], [0, 0, 1, 1], [], []>} : vector<1x64xf32>, vector<64x128xf32>, vector<1x128xf32> -> vector<1x128xf32>
    %258 = arith.addf %248, %257 : vector<1x128xf32>
    %259 = vector.extract_strided_slice %251 {offsets = [2, 0], sizes = [1, 64], strides = [1, 1]} : vector<12x64xf32> to vector<1x64xf32>
    %260 = vector.extract_strided_slice %251 {offsets = [3, 0], sizes = [1, 64], strides = [1, 1]} : vector<12x64xf32> to vector<1x64xf32>
    %261 = arith.maximumf %259, %260 : vector<1x64xf32>
    %c19 = arith.constant 19 : index
    %c0_194 = arith.constant 0 : index
    %c0_195 = arith.constant 0 : index
    %262 = vector.load %arg6[%c19, %c0_194, %c0_195] : memref<36x64x128xf32, #tpu.memory_space<vmem>>, vector<1x64x128xf32>
    %263 = vector.shape_cast %262 : vector<1x64x128xf32> to vector<64x128xf32>
    %cst_196 = arith.constant dense<0.000000e+00> : vector<1x128xf32>
    %264 = tpu.matmul %261, %263, %cst_196 {dimension_numbers = #tpu.dot_dimension_numbers<[1], [0], [0], [1], [0, 0, 1, 1], [], []>} : vector<1x64xf32>, vector<64x128xf32>, vector<1x128xf32> -> vector<1x128xf32>
    %265 = arith.addf %258, %264 : vector<1x128xf32>
    %266 = vector.extract_strided_slice %251 {offsets = [4, 0], sizes = [1, 64], strides = [1, 1]} : vector<12x64xf32> to vector<1x64xf32>
    %267 = vector.extract_strided_slice %251 {offsets = [5, 0], sizes = [1, 64], strides = [1, 1]} : vector<12x64xf32> to vector<1x64xf32>
    %268 = arith.maximumf %266, %267 : vector<1x64xf32>
    %c20 = arith.constant 20 : index
    %c0_197 = arith.constant 0 : index
    %c0_198 = arith.constant 0 : index
    %269 = vector.load %arg6[%c20, %c0_197, %c0_198] : memref<36x64x128xf32, #tpu.memory_space<vmem>>, vector<1x64x128xf32>
    %270 = vector.shape_cast %269 : vector<1x64x128xf32> to vector<64x128xf32>
    %cst_199 = arith.constant dense<0.000000e+00> : vector<1x128xf32>
    %271 = tpu.matmul %268, %270, %cst_199 {dimension_numbers = #tpu.dot_dimension_numbers<[1], [0], [0], [1], [0, 0, 1, 1], [], []>} : vector<1x64xf32>, vector<64x128xf32>, vector<1x128xf32> -> vector<1x128xf32>
    %272 = arith.addf %265, %271 : vector<1x128xf32>
    %273 = vector.extract_strided_slice %251 {offsets = [6, 0], sizes = [1, 64], strides = [1, 1]} : vector<12x64xf32> to vector<1x64xf32>
    %274 = vector.extract_strided_slice %251 {offsets = [7, 0], sizes = [1, 64], strides = [1, 1]} : vector<12x64xf32> to vector<1x64xf32>
    %275 = arith.maximumf %273, %274 : vector<1x64xf32>
    %c21 = arith.constant 21 : index
    %c0_200 = arith.constant 0 : index
    %c0_201 = arith.constant 0 : index
    %276 = vector.load %arg6[%c21, %c0_200, %c0_201] : memref<36x64x128xf32, #tpu.memory_space<vmem>>, vector<1x64x128xf32>
    %277 = vector.shape_cast %276 : vector<1x64x128xf32> to vector<64x128xf32>
    %cst_202 = arith.constant dense<0.000000e+00> : vector<1x128xf32>
    %278 = tpu.matmul %275, %277, %cst_202 {dimension_numbers = #tpu.dot_dimension_numbers<[1], [0], [0], [1], [0, 0, 1, 1], [], []>} : vector<1x64xf32>, vector<64x128xf32>, vector<1x128xf32> -> vector<1x128xf32>
    %279 = arith.addf %272, %278 : vector<1x128xf32>
    %280 = vector.extract_strided_slice %251 {offsets = [8, 0], sizes = [1, 64], strides = [1, 1]} : vector<12x64xf32> to vector<1x64xf32>
    %281 = vector.extract_strided_slice %251 {offsets = [9, 0], sizes = [1, 64], strides = [1, 1]} : vector<12x64xf32> to vector<1x64xf32>
    %282 = arith.maximumf %280, %281 : vector<1x64xf32>
    %c22 = arith.constant 22 : index
    %c0_203 = arith.constant 0 : index
    %c0_204 = arith.constant 0 : index
    %283 = vector.load %arg6[%c22, %c0_203, %c0_204] : memref<36x64x128xf32, #tpu.memory_space<vmem>>, vector<1x64x128xf32>
    %284 = vector.shape_cast %283 : vector<1x64x128xf32> to vector<64x128xf32>
    %cst_205 = arith.constant dense<0.000000e+00> : vector<1x128xf32>
    %285 = tpu.matmul %282, %284, %cst_205 {dimension_numbers = #tpu.dot_dimension_numbers<[1], [0], [0], [1], [0, 0, 1, 1], [], []>} : vector<1x64xf32>, vector<64x128xf32>, vector<1x128xf32> -> vector<1x128xf32>
    %286 = arith.addf %279, %285 : vector<1x128xf32>
    %287 = vector.extract_strided_slice %251 {offsets = [10, 0], sizes = [1, 64], strides = [1, 1]} : vector<12x64xf32> to vector<1x64xf32>
    %288 = vector.extract_strided_slice %251 {offsets = [11, 0], sizes = [1, 64], strides = [1, 1]} : vector<12x64xf32> to vector<1x64xf32>
    %289 = arith.maximumf %287, %288 : vector<1x64xf32>
    %c23 = arith.constant 23 : index
    %c0_206 = arith.constant 0 : index
    %c0_207 = arith.constant 0 : index
    %290 = vector.load %arg6[%c23, %c0_206, %c0_207] : memref<36x64x128xf32, #tpu.memory_space<vmem>>, vector<1x64x128xf32>
    %291 = vector.shape_cast %290 : vector<1x64x128xf32> to vector<64x128xf32>
    %cst_208 = arith.constant dense<0.000000e+00> : vector<1x128xf32>
    %292 = tpu.matmul %289, %291, %cst_208 {dimension_numbers = #tpu.dot_dimension_numbers<[1], [0], [0], [1], [0, 0, 1, 1], [], []>} : vector<1x64xf32>, vector<64x128xf32>, vector<1x128xf32> -> vector<1x128xf32>
    %293 = arith.addf %286, %292 : vector<1x128xf32>
    %c128 = arith.constant 128 : index
    %c0_209 = arith.constant 0 : index
    %294 = vector.load %arg12[%c128, %c0_209] : memref<188x64xf32, #tpu.memory_space<vmem>>, vector<12x64xf32>
    %c144 = arith.constant 144 : index
    %c0_210 = arith.constant 0 : index
    %295 = vector.load %arg12[%c144, %c0_210] : memref<188x64xf32, #tpu.memory_space<vmem>>, vector<12x64xf32>
    %296 = arith.maximumf %294, %295 : vector<12x64xf32>
    %297 = vector.extract_strided_slice %296 {offsets = [0, 0], sizes = [1, 64], strides = [1, 1]} : vector<12x64xf32> to vector<1x64xf32>
    %298 = vector.extract_strided_slice %296 {offsets = [1, 0], sizes = [1, 64], strides = [1, 1]} : vector<12x64xf32> to vector<1x64xf32>
    %299 = arith.maximumf %297, %298 : vector<1x64xf32>
    %c24 = arith.constant 24 : index
    %c0_211 = arith.constant 0 : index
    %c0_212 = arith.constant 0 : index
    %300 = vector.load %arg6[%c24, %c0_211, %c0_212] : memref<36x64x128xf32, #tpu.memory_space<vmem>>, vector<1x64x128xf32>
    %301 = vector.shape_cast %300 : vector<1x64x128xf32> to vector<64x128xf32>
    %cst_213 = arith.constant dense<0.000000e+00> : vector<1x128xf32>
    %302 = tpu.matmul %299, %301, %cst_213 {dimension_numbers = #tpu.dot_dimension_numbers<[1], [0], [0], [1], [0, 0, 1, 1], [], []>} : vector<1x64xf32>, vector<64x128xf32>, vector<1x128xf32> -> vector<1x128xf32>
    %303 = arith.addf %293, %302 : vector<1x128xf32>
    %304 = vector.extract_strided_slice %296 {offsets = [2, 0], sizes = [1, 64], strides = [1, 1]} : vector<12x64xf32> to vector<1x64xf32>
    %305 = vector.extract_strided_slice %296 {offsets = [3, 0], sizes = [1, 64], strides = [1, 1]} : vector<12x64xf32> to vector<1x64xf32>
    %306 = arith.maximumf %304, %305 : vector<1x64xf32>
    %c25 = arith.constant 25 : index
    %c0_214 = arith.constant 0 : index
    %c0_215 = arith.constant 0 : index
    %307 = vector.load %arg6[%c25, %c0_214, %c0_215] : memref<36x64x128xf32, #tpu.memory_space<vmem>>, vector<1x64x128xf32>
    %308 = vector.shape_cast %307 : vector<1x64x128xf32> to vector<64x128xf32>
    %cst_216 = arith.constant dense<0.000000e+00> : vector<1x128xf32>
    %309 = tpu.matmul %306, %308, %cst_216 {dimension_numbers = #tpu.dot_dimension_numbers<[1], [0], [0], [1], [0, 0, 1, 1], [], []>} : vector<1x64xf32>, vector<64x128xf32>, vector<1x128xf32> -> vector<1x128xf32>
    %310 = arith.addf %303, %309 : vector<1x128xf32>
    %311 = vector.extract_strided_slice %296 {offsets = [4, 0], sizes = [1, 64], strides = [1, 1]} : vector<12x64xf32> to vector<1x64xf32>
    %312 = vector.extract_strided_slice %296 {offsets = [5, 0], sizes = [1, 64], strides = [1, 1]} : vector<12x64xf32> to vector<1x64xf32>
    %313 = arith.maximumf %311, %312 : vector<1x64xf32>
    %c26 = arith.constant 26 : index
    %c0_217 = arith.constant 0 : index
    %c0_218 = arith.constant 0 : index
    %314 = vector.load %arg6[%c26, %c0_217, %c0_218] : memref<36x64x128xf32, #tpu.memory_space<vmem>>, vector<1x64x128xf32>
    %315 = vector.shape_cast %314 : vector<1x64x128xf32> to vector<64x128xf32>
    %cst_219 = arith.constant dense<0.000000e+00> : vector<1x128xf32>
    %316 = tpu.matmul %313, %315, %cst_219 {dimension_numbers = #tpu.dot_dimension_numbers<[1], [0], [0], [1], [0, 0, 1, 1], [], []>} : vector<1x64xf32>, vector<64x128xf32>, vector<1x128xf32> -> vector<1x128xf32>
    %317 = arith.addf %310, %316 : vector<1x128xf32>
    %318 = vector.extract_strided_slice %296 {offsets = [6, 0], sizes = [1, 64], strides = [1, 1]} : vector<12x64xf32> to vector<1x64xf32>
    %319 = vector.extract_strided_slice %296 {offsets = [7, 0], sizes = [1, 64], strides = [1, 1]} : vector<12x64xf32> to vector<1x64xf32>
    %320 = arith.maximumf %318, %319 : vector<1x64xf32>
    %c27 = arith.constant 27 : index
    %c0_220 = arith.constant 0 : index
    %c0_221 = arith.constant 0 : index
    %321 = vector.load %arg6[%c27, %c0_220, %c0_221] : memref<36x64x128xf32, #tpu.memory_space<vmem>>, vector<1x64x128xf32>
    %322 = vector.shape_cast %321 : vector<1x64x128xf32> to vector<64x128xf32>
    %cst_222 = arith.constant dense<0.000000e+00> : vector<1x128xf32>
    %323 = tpu.matmul %320, %322, %cst_222 {dimension_numbers = #tpu.dot_dimension_numbers<[1], [0], [0], [1], [0, 0, 1, 1], [], []>} : vector<1x64xf32>, vector<64x128xf32>, vector<1x128xf32> -> vector<1x128xf32>
    %324 = arith.addf %317, %323 : vector<1x128xf32>
    %325 = vector.extract_strided_slice %296 {offsets = [8, 0], sizes = [1, 64], strides = [1, 1]} : vector<12x64xf32> to vector<1x64xf32>
    %326 = vector.extract_strided_slice %296 {offsets = [9, 0], sizes = [1, 64], strides = [1, 1]} : vector<12x64xf32> to vector<1x64xf32>
    %327 = arith.maximumf %325, %326 : vector<1x64xf32>
    %c28 = arith.constant 28 : index
    %c0_223 = arith.constant 0 : index
    %c0_224 = arith.constant 0 : index
    %328 = vector.load %arg6[%c28, %c0_223, %c0_224] : memref<36x64x128xf32, #tpu.memory_space<vmem>>, vector<1x64x128xf32>
    %329 = vector.shape_cast %328 : vector<1x64x128xf32> to vector<64x128xf32>
    %cst_225 = arith.constant dense<0.000000e+00> : vector<1x128xf32>
    %330 = tpu.matmul %327, %329, %cst_225 {dimension_numbers = #tpu.dot_dimension_numbers<[1], [0], [0], [1], [0, 0, 1, 1], [], []>} : vector<1x64xf32>, vector<64x128xf32>, vector<1x128xf32> -> vector<1x128xf32>
    %331 = arith.addf %324, %330 : vector<1x128xf32>
    %332 = vector.extract_strided_slice %296 {offsets = [10, 0], sizes = [1, 64], strides = [1, 1]} : vector<12x64xf32> to vector<1x64xf32>
    %333 = vector.extract_strided_slice %296 {offsets = [11, 0], sizes = [1, 64], strides = [1, 1]} : vector<12x64xf32> to vector<1x64xf32>
    %334 = arith.maximumf %332, %333 : vector<1x64xf32>
    %c29 = arith.constant 29 : index
    %c0_226 = arith.constant 0 : index
    %c0_227 = arith.constant 0 : index
    %335 = vector.load %arg6[%c29, %c0_226, %c0_227] : memref<36x64x128xf32, #tpu.memory_space<vmem>>, vector<1x64x128xf32>
    %336 = vector.shape_cast %335 : vector<1x64x128xf32> to vector<64x128xf32>
    %cst_228 = arith.constant dense<0.000000e+00> : vector<1x128xf32>
    %337 = tpu.matmul %334, %336, %cst_228 {dimension_numbers = #tpu.dot_dimension_numbers<[1], [0], [0], [1], [0, 0, 1, 1], [], []>} : vector<1x64xf32>, vector<64x128xf32>, vector<1x128xf32> -> vector<1x128xf32>
    %338 = arith.addf %331, %337 : vector<1x128xf32>
    %c160 = arith.constant 160 : index
    %c0_229 = arith.constant 0 : index
    %339 = vector.load %arg12[%c160, %c0_229] : memref<188x64xf32, #tpu.memory_space<vmem>>, vector<12x64xf32>
    %c176 = arith.constant 176 : index
    %c0_230 = arith.constant 0 : index
    %340 = vector.load %arg12[%c176, %c0_230] : memref<188x64xf32, #tpu.memory_space<vmem>>, vector<12x64xf32>
    %341 = arith.maximumf %339, %340 : vector<12x64xf32>
    %342 = vector.extract_strided_slice %341 {offsets = [0, 0], sizes = [1, 64], strides = [1, 1]} : vector<12x64xf32> to vector<1x64xf32>
    %343 = vector.extract_strided_slice %341 {offsets = [1, 0], sizes = [1, 64], strides = [1, 1]} : vector<12x64xf32> to vector<1x64xf32>
    %344 = arith.maximumf %342, %343 : vector<1x64xf32>
    %c30 = arith.constant 30 : index
    %c0_231 = arith.constant 0 : index
    %c0_232 = arith.constant 0 : index
    %345 = vector.load %arg6[%c30, %c0_231, %c0_232] : memref<36x64x128xf32, #tpu.memory_space<vmem>>, vector<1x64x128xf32>
    %346 = vector.shape_cast %345 : vector<1x64x128xf32> to vector<64x128xf32>
    %cst_233 = arith.constant dense<0.000000e+00> : vector<1x128xf32>
    %347 = tpu.matmul %344, %346, %cst_233 {dimension_numbers = #tpu.dot_dimension_numbers<[1], [0], [0], [1], [0, 0, 1, 1], [], []>} : vector<1x64xf32>, vector<64x128xf32>, vector<1x128xf32> -> vector<1x128xf32>
    %348 = arith.addf %338, %347 : vector<1x128xf32>
    %349 = vector.extract_strided_slice %341 {offsets = [2, 0], sizes = [1, 64], strides = [1, 1]} : vector<12x64xf32> to vector<1x64xf32>
    %350 = vector.extract_strided_slice %341 {offsets = [3, 0], sizes = [1, 64], strides = [1, 1]} : vector<12x64xf32> to vector<1x64xf32>
    %351 = arith.maximumf %349, %350 : vector<1x64xf32>
    %c31 = arith.constant 31 : index
    %c0_234 = arith.constant 0 : index
    %c0_235 = arith.constant 0 : index
    %352 = vector.load %arg6[%c31, %c0_234, %c0_235] : memref<36x64x128xf32, #tpu.memory_space<vmem>>, vector<1x64x128xf32>
    %353 = vector.shape_cast %352 : vector<1x64x128xf32> to vector<64x128xf32>
    %cst_236 = arith.constant dense<0.000000e+00> : vector<1x128xf32>
    %354 = tpu.matmul %351, %353, %cst_236 {dimension_numbers = #tpu.dot_dimension_numbers<[1], [0], [0], [1], [0, 0, 1, 1], [], []>} : vector<1x64xf32>, vector<64x128xf32>, vector<1x128xf32> -> vector<1x128xf32>
    %355 = arith.addf %348, %354 : vector<1x128xf32>
    %356 = vector.extract_strided_slice %341 {offsets = [4, 0], sizes = [1, 64], strides = [1, 1]} : vector<12x64xf32> to vector<1x64xf32>
    %357 = vector.extract_strided_slice %341 {offsets = [5, 0], sizes = [1, 64], strides = [1, 1]} : vector<12x64xf32> to vector<1x64xf32>
    %358 = arith.maximumf %356, %357 : vector<1x64xf32>
    %c32_237 = arith.constant 32 : index
    %c0_238 = arith.constant 0 : index
    %c0_239 = arith.constant 0 : index
    %359 = vector.load %arg6[%c32_237, %c0_238, %c0_239] : memref<36x64x128xf32, #tpu.memory_space<vmem>>, vector<1x64x128xf32>
    %360 = vector.shape_cast %359 : vector<1x64x128xf32> to vector<64x128xf32>
    %cst_240 = arith.constant dense<0.000000e+00> : vector<1x128xf32>
    %361 = tpu.matmul %358, %360, %cst_240 {dimension_numbers = #tpu.dot_dimension_numbers<[1], [0], [0], [1], [0, 0, 1, 1], [], []>} : vector<1x64xf32>, vector<64x128xf32>, vector<1x128xf32> -> vector<1x128xf32>
    %362 = arith.addf %355, %361 : vector<1x128xf32>
    %363 = vector.extract_strided_slice %341 {offsets = [6, 0], sizes = [1, 64], strides = [1, 1]} : vector<12x64xf32> to vector<1x64xf32>
    %364 = vector.extract_strided_slice %341 {offsets = [7, 0], sizes = [1, 64], strides = [1, 1]} : vector<12x64xf32> to vector<1x64xf32>
    %365 = arith.maximumf %363, %364 : vector<1x64xf32>
    %c33_241 = arith.constant 33 : index
    %c0_242 = arith.constant 0 : index
    %c0_243 = arith.constant 0 : index
    %366 = vector.load %arg6[%c33_241, %c0_242, %c0_243] : memref<36x64x128xf32, #tpu.memory_space<vmem>>, vector<1x64x128xf32>
    %367 = vector.shape_cast %366 : vector<1x64x128xf32> to vector<64x128xf32>
    %cst_244 = arith.constant dense<0.000000e+00> : vector<1x128xf32>
    %368 = tpu.matmul %365, %367, %cst_244 {dimension_numbers = #tpu.dot_dimension_numbers<[1], [0], [0], [1], [0, 0, 1, 1], [], []>} : vector<1x64xf32>, vector<64x128xf32>, vector<1x128xf32> -> vector<1x128xf32>
    %369 = arith.addf %362, %368 : vector<1x128xf32>
    %370 = vector.extract_strided_slice %341 {offsets = [8, 0], sizes = [1, 64], strides = [1, 1]} : vector<12x64xf32> to vector<1x64xf32>
    %371 = vector.extract_strided_slice %341 {offsets = [9, 0], sizes = [1, 64], strides = [1, 1]} : vector<12x64xf32> to vector<1x64xf32>
    %372 = arith.maximumf %370, %371 : vector<1x64xf32>
    %c34_245 = arith.constant 34 : index
    %c0_246 = arith.constant 0 : index
    %c0_247 = arith.constant 0 : index
    %373 = vector.load %arg6[%c34_245, %c0_246, %c0_247] : memref<36x64x128xf32, #tpu.memory_space<vmem>>, vector<1x64x128xf32>
    %374 = vector.shape_cast %373 : vector<1x64x128xf32> to vector<64x128xf32>
    %cst_248 = arith.constant dense<0.000000e+00> : vector<1x128xf32>
    %375 = tpu.matmul %372, %374, %cst_248 {dimension_numbers = #tpu.dot_dimension_numbers<[1], [0], [0], [1], [0, 0, 1, 1], [], []>} : vector<1x64xf32>, vector<64x128xf32>, vector<1x128xf32> -> vector<1x128xf32>
    %376 = arith.addf %369, %375 : vector<1x128xf32>
    %377 = vector.extract_strided_slice %341 {offsets = [10, 0], sizes = [1, 64], strides = [1, 1]} : vector<12x64xf32> to vector<1x64xf32>
    %378 = vector.extract_strided_slice %341 {offsets = [11, 0], sizes = [1, 64], strides = [1, 1]} : vector<12x64xf32> to vector<1x64xf32>
    %379 = arith.maximumf %377, %378 : vector<1x64xf32>
    %c35 = arith.constant 35 : index
    %c0_249 = arith.constant 0 : index
    %c0_250 = arith.constant 0 : index
    %380 = vector.load %arg6[%c35, %c0_249, %c0_250] : memref<36x64x128xf32, #tpu.memory_space<vmem>>, vector<1x64x128xf32>
    %381 = vector.shape_cast %380 : vector<1x64x128xf32> to vector<64x128xf32>
    %cst_251 = arith.constant dense<0.000000e+00> : vector<1x128xf32>
    %382 = tpu.matmul %379, %381, %cst_251 {dimension_numbers = #tpu.dot_dimension_numbers<[1], [0], [0], [1], [0, 0, 1, 1], [], []>} : vector<1x64xf32>, vector<64x128xf32>, vector<1x128xf32> -> vector<1x128xf32>
    %383 = arith.addf %376, %382 : vector<1x128xf32>
    %c0_252 = arith.constant 0 : index
    %c0_253 = arith.constant 0 : index
    %384 = vector.load %arg7[%c0_252, %c0_253] : memref<1x128xf32, #tpu.memory_space<vmem>>, vector<1x128xf32>
    %385 = arith.addf %383, %384 : vector<1x128xf32>
    %cst_254 = arith.constant 0.000000e+00 : f32
    %386 = vector.broadcast %cst_254 : f32 to vector<1x128xf32>
    %387 = arith.maximumf %385, %386 : vector<1x128xf32>
    %c0_255 = arith.constant 0 : index
    %c0_256 = arith.constant 0 : index
    %388 = vector.load %arg8[%c0_255, %c0_256] : memref<1x128xf32, #tpu.memory_space<vmem>>, vector<1x128xf32>
    %389 = arith.mulf %387, %388 : vector<1x128xf32>
    %cst_257 = arith.constant dense<0.000000e+00> : vector<1xf32>
    %390 = vector.multi_reduction <add>, %389, %cst_257 [1] : vector<1x128xf32> to vector<1xf32>
    %391 = vector.shape_cast %390 : vector<1xf32> to vector<1x1xf32>
    %c0_258 = arith.constant 0 : index
    %c0_259 = arith.constant 0 : index
    %392 = vector.load %arg9[%c0_258, %c0_259] : memref<1x1xf32, #tpu.memory_space<vmem>>, vector<1x1xf32>
    %393 = arith.addf %391, %392 : vector<1x1xf32>
    %394 = math.absf %393 : vector<1x1xf32>
    %cst_260 = arith.constant 0.000000e+00 : f32
    %395 = vector.broadcast %cst_260 : f32 to vector<1x1xf32>
    %396 = arith.subf %395, %394 : vector<1x1xf32>
    %397 = math.exp %396 : vector<1x1xf32>
    %cst_261 = arith.constant 1.000000e+00 : f32
    %398 = vector.broadcast %cst_261 : f32 to vector<1x1xf32>
    %399 = arith.addf %398, %397 : vector<1x1xf32>
    %400 = tpu.reciprocal %399 : vector<1x1xf32> -> vector<1x1xf32>
    %cst_262 = arith.constant 0.000000e+00 : f32
    %401 = vector.broadcast %cst_262 : f32 to vector<1x1xf32>
    %402 = arith.cmpf oge, %393, %401 : vector<1x1xf32>
    %403 = arith.mulf %397, %400 : vector<1x1xf32>
    %404 = arith.select %402, %400, %403 : vector<1x1xi1>, vector<1x1xf32>
    %c0_263 = arith.constant 0 : index
    %c0_264 = arith.constant 0 : index
    %c0_265 = arith.constant 0 : index
    %405 = vector.load %arg10[%c0_263, %c0_264, %c0_265] : memref<1x1x1xf32, #tpu.memory_space<vmem>>, vector<1x1x1xf32>
    %406 = vector.shape_cast %405 : vector<1x1x1xf32> to vector<1x1xf32>
    %407 = vector.shape_cast %404 : vector<1x1xf32> to vector<1x1x1xf32>
    tpu.vector_store %arg10[%c0_263, %c0_264, %c0_265], %407 {strides = array<i32>} : memref<1x1x1xf32, #tpu.memory_space<vmem>>, vector<1x1x1xf32>,
    return
  }
  func.func @transform_0(%arg0: i32) -> (i32, i32, i32) {
    %c0_i32 = arith.constant 0 : i32
    %c0_i32_0 = arith.constant 0 : i32
    %c0_i32_1 = arith.constant 0 : i32
    return %arg0, %c0_i32, %c0_i32_0 : i32, i32, i32
  }
  func.func @transform_1(%arg0: i32) -> (i32, i32, i32) {
    %c0_i32 = arith.constant 0 : i32
    %c0_i32_0 = arith.constant 0 : i32
    %c0_i32_1 = arith.constant 0 : i32
    %c0_i32_2 = arith.constant 0 : i32
    return %c0_i32, %c0_i32_0, %c0_i32_1 : i32, i32, i32
  }
  func.func @transform_2(%arg0: i32) -> (i32, i32) {
    %c0_i32 = arith.constant 0 : i32
    %c0_i32_0 = arith.constant 0 : i32
    %c0_i32_1 = arith.constant 0 : i32
    return %c0_i32, %c0_i32_0 : i32, i32
  }
  func.func @transform_3(%arg0: i32) -> (i32, i32, i32) {
    %c0_i32 = arith.constant 0 : i32
    %c0_i32_0 = arith.constant 0 : i32
    %c0_i32_1 = arith.constant 0 : i32
    %c0_i32_2 = arith.constant 0 : i32
    return %c0_i32, %c0_i32_0, %c0_i32_1 : i32, i32, i32
  }
  func.func @transform_4(%arg0: i32) -> (i32, i32) {
    %c0_i32 = arith.constant 0 : i32
    %c0_i32_0 = arith.constant 0 : i32
    %c0_i32_1 = arith.constant 0 : i32
    return %c0_i32, %c0_i32_0 : i32, i32
  }
  func.func @transform_5(%arg0: i32) -> (i32, i32, i32) {
    %c0_i32 = arith.constant 0 : i32
    %c0_i32_0 = arith.constant 0 : i32
    %c0_i32_1 = arith.constant 0 : i32
    %c0_i32_2 = arith.constant 0 : i32
    return %c0_i32, %c0_i32_0, %c0_i32_1 : i32, i32, i32
  }
  func.func @transform_6(%arg0: i32) -> (i32, i32) {
    %c0_i32 = arith.constant 0 : i32
    %c0_i32_0 = arith.constant 0 : i32
    %c0_i32_1 = arith.constant 0 : i32
    return %c0_i32, %c0_i32_0 : i32, i32
  }
  func.func @transform_7(%arg0: i32) -> (i32, i32) {
    %c0_i32 = arith.constant 0 : i32
    %c0_i32_0 = arith.constant 0 : i32
    %c0_i32_1 = arith.constant 0 : i32
    return %c0_i32, %c0_i32_0 : i32, i32
  }
  func.func @transform_8(%arg0: i32) -> (i32, i32) {
    %c0_i32 = arith.constant 0 : i32
    %c0_i32_0 = arith.constant 0 : i32
    %c0_i32_1 = arith.constant 0 : i32
    return %c0_i32, %c0_i32_0 : i32, i32
  }
  func.func @transform_9(%arg0: i32) -> (i32, i32, i32) {
    %c0_i32 = arith.constant 0 : i32
    %c0_i32_0 = arith.constant 0 : i32
    %c0_i32_1 = arith.constant 0 : i32
    return %arg0, %c0_i32, %c0_i32_0 : i32, i32, i32
  }
}

</mosaic_0001>

<bundles_post_ra>
// kernel: cnn_forward.1
= control target key start
LH: loop header
LB: loop body
LE: loop exit
PB: predicated region body
PF: predicated region fallthrough
CT: control target
= control target key end

     0   :  { %s15771_s0 = inlined_call_operand.vmem [shape: f32[2,256,3], index: 0, kind: input, shape index: {}]   ;;  %s15772_s1 = inlined_call_operand.hbm [shape: f32[9,3,32], index: 1, kind: input, shape index: {}]   ;;  %s15773_s2 = inlined_call_operand.hbm [shape: f32[1,32], index: 2, kind: input, shape index: {}]   ;;  %s15774_s3 = inlined_call_operand.hbm [shape: f32[9,32,64], index: 3, kind: input, shape index: {}]   ;;  %s15775_s4 = inlined_call_operand.hbm [shape: f32[1,64], index: 4, kind: input, shape index: {}]   ;;  %s15776_s5 = inlined_call_operand.hbm [shape: f32[36,64,128], index: 5, kind: input, shape index: {}]   ;;  %s15777_s6 = inlined_call_operand.hbm [shape: f32[1,128], index: 6, kind: input, shape index: {}]   ;;  %s15778_s7 = inlined_call_operand.hbm [shape: f32[1,128], index: 7, kind: input, shape index: {}]   ;;  %s15779_s8 = inlined_call_operand.<no memory space> [shape: f32[1,1], index: 8, kind: input, shape index: {}]   ;;  %s15780_s9 = inlined_call_operand.vmem [shape: f32[2,1,1], index: 9, kind: output, shape index: {}]  }
   0x1   :  { %v14_v0 = vstv %s15779_s8 }
   0x2   :  { %15 = vst [vmem:[#allocation4] sm:$0x1] %v14_v0 }
   0x3   :  { %16 = vsyncpa [#allocation6], 0 }
   0x4   :  { %17 = vsyncpa [#allocation8], 0 }
   0x5   :  { %18 = vsyncpa [#allocation11], 0 }
   0x6   :  { %19 = vsyncpa [#allocation14], 0  ;;  %s13791_s11 = smov 0  }
   0x7 LB: > { %s13724_s12 = smov [#allocation7]   ;;  %s13797_s14 = sadd.s32 4294967295, %s13722_s11   ;;  %s13722_s11 = sphi %s13791_s11, %s25_s11  }
   0x8   : > { %s276_s13 = sshll.u32 %s13724_s12, 4  ;;  %p9644_p0 = scmp.ge.s32.totalorder %s13722_s11, 1  ;;  %s13802_s13 = int_to_ptr.vmem [resolvable:$true] %s276_s13 }
   0x9   : > { %p250_p1 = scmp.lt.s32.totalorder %s13722_s11, 3  ;;  %p15781_p2 = scmp.eq.s32.totalorder %s13797_s14, 0 }
   0xa   : > { %s13725_s15 = smov [#allocation10]   ;;  %s13726_s17 = smov [#allocation13]  }
   0xb   : > { %p13804_p3 = pnand %p9644_p0, %p250_p1  ;;  %s300_s16 = sshll.u32 %s13725_s15, 4  ;;  %s13810_s16 = int_to_ptr.vmem [resolvable:$true] %s300_s16 }
   0xc   : > { %s324_s18 = sshll.u32 %s13726_s17, 4  ;;  %s13727_s20 = smov [#allocation5]   ;;  %s13818_s18 = int_to_ptr.vmem [resolvable:$true] %s324_s18 }
   0xd   : > { %s15831_s8 = scalar_select %p13804_p3, 1, 0 }
   0xe   : > { %p13442_p4 = pneg %p13804_p3  ;;  %s262_s21 = sshll.u32 %s13727_s20, 4  ;;  %s13820_s21 = int_to_ptr.vmem [resolvable:$true] %s262_s21 }
   0xf   : > { %s13504_s24 = scalar_lea.hbm %s15773_s2, 16 }
  0x10   : > { %p13814_p5 = pnand %p15781_p2, %p13442_p4  ;;  %p13505_p6 = scmp.ne.s32.totalorder %s15773_s2, %s13504_s24 }
  0x11   : > { %p13511_p10 = scmp.lt.u32.totalorder %s13504_s24, %s15773_s2 }
  0x12   : > { %p13830_p7 = pneg %p13814_p5 }
  0x14   : > { %p13507_p8 = pnand %p13830_p7, %p13505_p6 }
  0x16   : > { %p13508_p9 = pneg %p13507_p8 }
  0x18   : > { %p13513_p11 = pnand %p13511_p10, %p13508_p9 }
  0x1a   : > { %13516 = shalt.err (!%p13513_p11)
}
  0x1b   : > { %s13517_s30 = scalar_lea.vmem %s13802_s13, 16  ;;  %s13524_s10 = scalar_lea.vmem %s13802_s13, 32 }
  0x1c   : > { %p13518_p12 = scmp.ne.s32.totalorder %s13802_s13, %s13517_s30  ;;  %p13525_p1 = scmp.lt.s32.totalorder %s13802_s13, %s13802_s13 }
  0x1d   : > { %p13526_p4 = scmp.lt.s32.totalorder %s13524_s10, %s13517_s30 }
  0x1e   : > { %p13520_p13 = pnand %p13518_p12, %p13830_p7 }
  0x1f   : > { %p13527_p6 = por %p13526_p4, %p13525_p1 }
  0x20   : > { %p13521_p0 = pneg %p13520_p13 }
  0x22   : > { %p13528_p8 = pnand %p13527_p6, %p13521_p0 }
  0x24   : > { %13531 = shalt.err (!%p13528_p8)
}
  0x25   : > { %13448 = dma.hbm_to_vmem [thread:$0]  (!%p13814_p5), %s15773_s2, 16, %s13802_s13, [#allocation8]  }
  0x26   : > { %s13532_s22 = scalar_lea.hbm %s15775_s4, 16 }
  0x27   : > { %p13533_p9 = scmp.ne.s32.totalorder %s15775_s4, %s13532_s22  ;;  %p13539_p12 = scmp.lt.u32.totalorder %s13532_s22, %s15775_s4 }
  0x29   : > { %p13535_p10 = pnand %p13533_p9, %p13830_p7 }
  0x2b   : > { %p13536_p11 = pneg %p13535_p10 }
  0x2d   : > { %p13541_p13 = pnand %p13539_p12, %p13536_p11 }
  0x2f   : > { %13544 = shalt.err (!%p13541_p13)
}
  0x30   : > { %s13545_s13 = scalar_lea.vmem %s13810_s16, 16  ;;  %s13552_s28 = scalar_lea.vmem %s13810_s16, 32 }
  0x31   : > { %p13546_p0 = scmp.ne.s32.totalorder %s13810_s16, %s13545_s13  ;;  %p13553_p6 = scmp.lt.s32.totalorder %s13810_s16, %s13810_s16 }
  0x32   : > { %p13554_p8 = scmp.lt.s32.totalorder %s13552_s28, %s13545_s13 }
  0x33   : > { %p13548_p1 = pnand %p13546_p0, %p13830_p7 }
  0x34   : > { %p13555_p9 = por %p13554_p8, %p13553_p6 }
  0x35   : > { %p13549_p4 = pneg %p13548_p1 }
  0x37   : > { %p13556_p10 = pnand %p13555_p9, %p13549_p4 }
  0x39   : > { %13559 = shalt.err (!%p13556_p10)
}
  0x3a   : > { %13454 = dma.hbm_to_vmem [thread:$0]  (!%p13814_p5), %s15775_s4, 16, %s13810_s16, [#allocation11]  }
  0x3b   : > { %s13560_s15 = scalar_lea.hbm %s15777_s6, 16 }
  0x3c   : > { %p13561_p11 = scmp.ne.s32.totalorder %s15777_s6, %s13560_s15  ;;  %p13567_p0 = scmp.lt.u32.totalorder %s13560_s15, %s15777_s6 }
  0x3e   : > { %p13563_p12 = pnand %p13561_p11, %p13830_p7 }
  0x40   : > { %p13564_p13 = pneg %p13563_p12 }
  0x42   : > { %p13569_p1 = pnand %p13567_p0, %p13564_p13 }
  0x44   : > { %13572 = shalt.err (!%p13569_p1)
}
  0x45   : > { %s13573_s16 = scalar_lea.vmem %s13818_s18, 16  ;;  %s13580_s24 = scalar_lea.vmem %s13818_s18, 32 }
  0x46   : > { %p13574_p4 = scmp.ne.s32.totalorder %s13818_s18, %s13573_s16  ;;  %p13581_p9 = scmp.lt.s32.totalorder %s13818_s18, %s13818_s18 }
  0x47   : > { %p13582_p10 = scmp.lt.s32.totalorder %s13580_s24, %s13573_s16 }
  0x48   : > { %p13576_p6 = pnand %p13574_p4, %p13830_p7 }
  0x49   : > { %p13583_p11 = por %p13582_p10, %p13581_p9 }
  0x4a   : > { %p13577_p8 = pneg %p13576_p6 }
  0x4c   : > { %p13584_p12 = pnand %p13583_p11, %p13577_p8 }
  0x4e   : > { %13587 = shalt.err (!%p13584_p12)
}
  0x4f   : > { %13460 = dma.hbm_to_vmem [thread:$0]  (!%p13814_p5), %s15777_s6, 16, %s13818_s18, [#allocation14]  }
  0x50   : > { %s13588_s29 = scalar_lea.hbm %s15772_s1, 576 }
  0x51   : > { %p13589_p13 = scmp.ne.s32.totalorder %s15772_s1, %s13588_s29  ;;  %p13595_p4 = scmp.lt.u32.totalorder %s13588_s29, %s15772_s1 }
  0x53   : > { %p13591_p0 = pnand %p13589_p13, %p13830_p7 }
  0x55   : > { %p13592_p1 = pneg %p13591_p0 }
  0x57   : > { %p13597_p6 = pnand %p13595_p4, %p13592_p1 }
  0x59   : > { %13600 = shalt.err (!%p13597_p6)
}
  0x5a   : > { %s13601_s18 = scalar_lea.vmem %s13820_s21, 576  ;;  %p13609_p11 = scmp.lt.s32.totalorder %s13820_s21, %s13820_s21 }
  0x5b   : > { %p13602_p8 = scmp.ne.s32.totalorder %s13820_s21, %s13601_s18  ;;  %p13610_p12 = scmp.lt.s32.totalorder %s13601_s18, %s13601_s18 }
  0x5d   : > { %p13604_p9 = pnand %p13602_p8, %p13830_p7  ;;  %p13611_p13 = por %p13610_p12, %p13609_p11 }
  0x5f   : > { %p13605_p10 = pneg %p13604_p9 }
  0x61   : > { %p13612_p0 = pnand %p13611_p13, %p13605_p10 }
  0x63   : > { %13615 = shalt.err (!%p13612_p0)
}
  0x64   : > { %s13728_s17 = smov 64   ;;  %s13729_s20 = smov 4  }
  0x65   : > { %13445 = dma.hbm_to_vmem [thread:$0]  (!%p13814_p5), %s15772_s1, 576, %s13820_s21, [#allocation6], %s13728_s17, %s13728_s17, %s13729_s20  }
  0x66   : > { %s13730_s16 = smov [#allocation9]   ;;  %s13616_s13 = scalar_lea.hbm %s15774_s3, 4608 }
  0x67   : > { %s286_s24 = sshll.u32 %s13730_s16, 4  ;;  %p13617_p1 = scmp.ne.s32.totalorder %s15774_s3, %s13616_s13  ;;  %s287_s24 = int_to_ptr.vmem [resolvable:$true] %s286_s24 }
  0x68   : > { %p13623_p8 = scmp.lt.u32.totalorder %s13616_s13, %s15774_s3 }
  0x69   : > { %p13619_p4 = pnand %p13617_p1, %p13830_p7 }
  0x6b   : > { %p13620_p6 = pneg %p13619_p4 }
  0x6d   : > { %p13625_p9 = pnand %p13623_p8, %p13620_p6 }
  0x6f   : > { %13628 = shalt.err (!%p13625_p9)
}
  0x70   : > { %s13629_s21 = scalar_lea.vmem %s287_s24, 4608  ;;  %p13637_p13 = scmp.lt.s32.totalorder %s287_s24, %s287_s24 }
  0x71   : > { %p13630_p10 = scmp.ne.s32.totalorder %s287_s24, %s13629_s21  ;;  %p13638_p0 = scmp.lt.s32.totalorder %s13629_s21, %s13629_s21 }
  0x73   : > { %p13632_p11 = pnand %p13630_p10, %p13830_p7  ;;  %p13639_p2 = por %p13638_p0, %p13637_p13 }
  0x75   : > { %p13633_p12 = pneg %p13632_p11 }
  0x77   : > { %p13640_p3 = pnand %p13639_p2, %p13633_p12 }
  0x79   : > { %13643 = shalt.err (!%p13640_p3)
}
  0x7a   : > { %s13731_s12 = smov 128   ;;  %s13732_s15 = smov 8  }
  0x7b   : > { %13451 = dma.hbm_to_vmem [thread:$0]  (!%p13814_p5), %s15774_s3, 4608, %s287_s24, [#allocation8], %s13731_s12, %s13731_s12, %s13732_s15  }
  0x7c   : > { %s13733_s20 = smov [#allocation12]   ;;  %s13734_s23 = smov [#allocation15]  }
  0x7d   : > { %s310_s22 = sshll.u32 %s13733_s20, 4  ;;  %s335_s16 = sshll.u32 %s13734_s23, 4  ;;  %s311_s22 = int_to_ptr.vmem [resolvable:$true] %s310_s22  ;;  %s13941_s16 = int_to_ptr.vmem [resolvable:$true] %s335_s16 }
  0x7e   : > { %s13644_s13 = scalar_lea.hbm %s15776_s5, 36864 }
  0x7f   : > { %p13645_p2 = scmp.ne.s32.totalorder %s15776_s5, %s13644_s13  ;;  %p13651_p4 = scmp.lt.u32.totalorder %s13644_s13, %s15776_s5 }
  0x81   : > { %p13647_p3 = pnand %p13645_p2, %p13830_p7 }
  0x83   : > { %p13648_p1 = pneg %p13647_p3 }
  0x85   : > { %p13653_p6 = pnand %p13651_p4, %p13648_p1 }
  0x87   : > { %13656 = shalt.err (!%p13653_p6)
}
  0x88   : > { %s13657_s10 = scalar_lea.vmem %s311_s22, 36864  ;;  %p13665_p11 = scmp.lt.s32.totalorder %s311_s22, %s311_s22 }
  0x89   : > { %p13658_p8 = scmp.ne.s32.totalorder %s311_s22, %s13657_s10  ;;  %p13666_p12 = scmp.lt.s32.totalorder %s13657_s10, %s13657_s10 }
  0x8b   : > { %p13660_p9 = pnand %p13658_p8, %p13830_p7  ;;  %p13667_p13 = por %p13666_p12, %p13665_p11 }
  0x8d   : > { %p13661_p10 = pneg %p13660_p9 }
  0x8f   : > { %p13668_p0 = pnand %p13667_p13, %p13661_p10 }
  0x91   : > { %13671 = shalt.err (!%p13668_p0)
}
  0x92   : > { %13457 = dma.hbm_to_vmem [thread:$0]  (!%p13814_p5), %s15776_s5, 36864, %s311_s22, [#allocation11], %s13731_s12, %s13731_s12, %s13732_s15  }
  0x93   : > { %s13672_s23 = scalar_lea.hbm %s15778_s7, 16 }
  0x94   : > { %p13673_p2 = scmp.ne.s32.totalorder %s15778_s7, %s13672_s23  ;;  %p13679_p4 = scmp.lt.u32.totalorder %s13672_s23, %s15778_s7 }
  0x96   : > { %p13675_p3 = pnand %p13673_p2, %p13830_p7 }
  0x98   : > { %p13676_p1 = pneg %p13675_p3 }
  0x9a   : > { %p13681_p6 = pnand %p13679_p4, %p13676_p1 }
  0x9c   : > { %13684 = shalt.err (!%p13681_p6)
}
  0x9d   : > { %s13685_s12 = scalar_lea.vmem %s13941_s16, 16  ;;  %s13692_s15 = scalar_lea.vmem %s13941_s16, 32 }
  0x9e   : > { %p13686_p8 = scmp.ne.s32.totalorder %s13941_s16, %s13685_s12  ;;  %p13693_p11 = scmp.lt.s32.totalorder %s13941_s16, %s13941_s16 }
  0x9f   : > { %p13694_p12 = scmp.lt.s32.totalorder %s13692_s15, %s13685_s12 }
  0xa0   : > { %p13688_p9 = pnand %p13686_p8, %p13830_p7 }
  0xa1   : > { %p13695_p13 = por %p13694_p12, %p13693_p11 }
  0xa2   : > { %p13689_p10 = pneg %p13688_p9 }
  0xa4   : > { %p13696_p0 = pnand %p13695_p13, %p13689_p10 }
  0xa6   : > { %13699 = shalt.err (!%p13696_p0)
}
  0xa7   : > { %13463 = dma.hbm_to_vmem [thread:$0]  (!%p13814_p5), %s15778_s7, 16, %s13941_s16, [#allocation14]  }
  0xa8   : > { %p15834_p2 = scmp.ne.s32.totalorder %s15831_s8, 0 }
  0xaa   : > { %359 = sbr.rel (%p15834_p2) target bundleno = 2200 (0x898), region = 56 }
  0xb1   : > { %p15835_p7 = scmp.eq.s32.totalorder %s13797_s14, 0 }
  0xb3   : > { %13705 = dma.done.wait (%p15835_p7), [#allocation6], 576   ;;  %p15836_p3 = pmov %p15835_p7 }
  0xb5   : > { %13707 = vsyncadd (%p15836_p3), [#allocation6], 4294966720  ;;  %p15837_p1 = pmov %p15836_p3 }
  0xb7   : > { %13709 = dma.done.wait (%p15837_p1), [#allocation8], 4624   ;;  %p15838_p4 = pmov %p15837_p1 }
  0xb8   : > { %p15839_p6 = pmov %p15837_p1 }
  0xb9   : > { %13711 = vsyncadd (%p15838_p4), [#allocation8], 4294962672 }
  0xba   : > { %13713 = dma.done.wait (%p15839_p6), [#allocation11], 36880   ;;  %p15840_p5 = pmov %p15837_p1 }
  0xbb   : > { %p15841_p8 = pmov %p15837_p1 }
  0xbc   : > { %13715 = vsyncadd (%p15840_p5), [#allocation11], 4294930416 }
  0xbd   : > { %13717 = dma.done.wait (%p15841_p8), [#allocation14], 32   ;;  %p15842_p9 = pmov %p15837_p1 }
  0xbe   : > { %p417_p10 = scmp.lt.s32.totalorder %s13797_s14, 1  ;;  %vm569_vm0 = vcmask 1042432   ;;  %vm484_vm1 = vcmask 23552   ;;  %v483_v1 = vld [vmem:[#allocation5 + $0x4] sm:$0x7]  ;;  %vm3583_vm2 = vcmask 261120  }
  0xbf   : > { %13719 = vsyncadd (%p15842_p9), [#allocation14], 4294967264  ;;  %11018 = vmatprep.subr.msk.mxu0 %vm569_vm0, %v483_v1  ;;  %v453_v4 = vld [vmem:[#allocation5] sm:$0x7]  ;;  %v1099_v10 = vld [vmem:[#allocation5 + $0x8] sm:$0x7] }
  0xc0   : > { %s15913_s14 = smov (!%p417_p10, %s13797_s14), 1  ;;  %11019 = vmatpush3.msk.msra.mxu0 %vm569_vm0, %v483_v1  ;;  %v1449_v35 = vld [vmem:[#allocation5 + $0xc] sm:$0x7]  ;;  %v1799_v0 = vld [vmem:[#allocation5 + $0x10] sm:$0x7]  ;;  %vm3611_vm3 = vcmask 259072  }
  0xc1   : > { %s10180_s8 = sshll.u32 %s15913_s14, 8  ;;  %11062 = vmatprep.subr.msk.mxu0 %vm569_vm0, %v453_v4  ;;  %vm13736_vm4 = vmmov 0   ;;  %vm6409_vm5 = vcmask 523264   ;;  %vm6433_vm6 = vcmask 519168   ;;  %vm9509_vm7 = vcmask 1040384   ;;  %s424_s10 = scalar_lea.vmem %s15780_s9, %s15913_s14 }
  0xc2   : > { %s14011_s16 = scalar_lea.vmem %s15771_s0, %s10180_s8  ;;  %vm9524_vm8 = vcmask 0  }
  0xc3   : > { %v454_v2 = vld [vmem:[%s14011_s16 + $0x1] sm:$0xff]  ;;  %v455_v3 = vld [vmem:[%s14011_s16 + $0x9] sm:$0xff]  ;;  %v14018_v5 = vld [vmem:[%s14011_s16 + $0x11] sm:$0xff] }
  0xc4   : > { %11020 = vmatprep.mubr.msk.f32.mxu0 %vm484_vm1, %v454_v2  ;;  %v14027_v6 = vld [vmem:[%s14011_s16 + $0x19] sm:$0xff]  ;;  %v14030_v7 = vld [vmem:[%s14011_s16 + $0x21] sm:$0xff]  ;;  %v14037_v8 = vld [vmem:[%s14011_s16 + $0x29] sm:$0xff] }
  0xc5   : > { %11021 = vmatmul.mubr.msk.f32.vlgmr.msra.gmra.mrb[0].mxu0 %vm484_vm1, %v455_v3  ;;  %v14040_v9 = vld [vmem:[%s14011_s16 + $0x31] sm:$0xff]  ;;  %v14048_v11 = vld [vmem:[%s14011_s16 + $0x39] sm:$0xff]  ;;  %v14051_v12 = vld [vmem:[%s14011_s16 + $0x41] sm:$0xff] }
  0xc6   : > { %11063 = vmatpush3.msk.msra.mxu0 %vm569_vm0, %v453_v4  ;;  %11023 = vmatprep.mubr.msk.f32.mxu0 %vm484_vm1, %v14018_v5  ;;  %v14058_v13 = vld [vmem:[%s14011_s16 + $0x49] sm:$0xff]  ;;  %v14061_v14 = vld [vmem:[%s14011_s16 + $0x51] sm:$0xff]  ;;  %v14068_v15 = vld [vmem:[%s14011_s16 + $0x59] sm:$0xff] }
  0xc7   : > { %11106 = vmatprep.subr.msk.mxu0 %vm569_vm0, %v1099_v10  ;;  %v14071_v16 = vld [vmem:[%s14011_s16 + $0x61] sm:$0xff]  ;;  %v14078_v17 = vld [vmem:[%s14011_s16 + $0x69] sm:$0xff]  ;;  %v14081_v18 = vld [vmem:[%s14011_s16 + $0x71] sm:$0xff] }
  0xc8   : > { %v14088_v19 = vld [vmem:[%s14011_s16 + $0x79] sm:$0xff]  ;;  %v14091_v20 = vld [vmem:[%s14011_s16 + $0x81] sm:$0xff]  ;;  %v14098_v21 = vld [vmem:[%s14011_s16 + $0x89] sm:$0xff] }
  0xc9   : > { %11024 = vmatmul.mubr.msk.f32.gmra.mrb[2].mxu0 %vm484_vm1, %v14027_v6  ;;  %v14101_v22 = vld [vmem:[%s14011_s16 + $0x91] sm:$0xff]  ;;  %v14108_v23 = vld [vmem:[%s14011_s16 + $0x99] sm:$0xff]  ;;  %v14111_v24 = vld [vmem:[%s14011_s16 + $0xa1] sm:$0xff] }
  0xca   : > { %11026 = vmatprep.mubr.msk.f32.mxu0 %vm484_vm1, %v14030_v7  ;;  %v14118_v25 = vld [vmem:[%s14011_s16 + $0xa9] sm:$0xff]  ;;  %v14121_v26 = vld [vmem:[%s14011_s16 + $0xb1] sm:$0xff]  ;;  %v14128_v27 = vld [vmem:[%s14011_s16 + $0xb9] sm:$0xff] }
  0xcb   : > { %v14131_v28 = vld [vmem:[%s14011_s16 + $0xc1] sm:$0xff]  ;;  %v14138_v29 = vld [vmem:[%s14011_s16 + $0xc9] sm:$0xff]  ;;  %v14141_v30 = vld [vmem:[%s14011_s16 + $0xd1] sm:$0xff] }
  0xcc   : > { %v481_v31 = vld [vmem:[%s14011_s16 + $0xd9] sm:$0x3f]  ;;  %v425_v32 = vld [vmem:[%s14011_s16] sm:$0xff]  ;;  %v426_v33 = vld [vmem:[%s14011_s16 + $0x8] sm:$0xff] }
  0xcd   : > { %11027 = vmatmul.mubr.msk.f32.gmra.mrb[4].mxu0 %vm484_vm1, %v14037_v8  ;;  %v14153_v34 = vld [vmem:[%s14011_s16 + $0x10] sm:$0xff]  ;;  %v14160_v36 = vld [vmem:[%s14011_s16 + $0x18] sm:$0xff]  ;;  %v14163_v37 = vld [vmem:[%s14011_s16 + $0x20] sm:$0xff] }
  0xce   : > { %11029 = vmatprep.mubr.msk.f32.mxu0 %vm484_vm1, %v14040_v9  ;;  %v14171_v38 = vld [vmem:[%s14011_s16 + $0x28] sm:$0xff]  ;;  %v14174_v39 = vld [vmem:[%s14011_s16 + $0x30] sm:$0xff]  ;;  %v14181_v40 = vld [vmem:[%s14011_s16 + $0x38] sm:$0xff] }
  0xcf   : > { %v14184_v41 = vld [vmem:[%s14011_s16 + $0x40] sm:$0xff]  ;;  %v14191_v42 = vld [vmem:[%s14011_s16 + $0x48] sm:$0xff]  ;;  %v14194_v43 = vld [vmem:[%s14011_s16 + $0x50] sm:$0xff] }
  0xd0   : > { %v14201_v44 = vld [vmem:[%s14011_s16 + $0x58] sm:$0xff]  ;;  %v14204_v45 = vld [vmem:[%s14011_s16 + $0x60] sm:$0xff]  ;;  %v14211_v46 = vld [vmem:[%s14011_s16 + $0x68] sm:$0xff] }
  0xd1   : > { %11030 = vmatmul.mubr.msk.f32.gmra.mrb[6].mxu0 %vm484_vm1, %v14048_v11  ;;  %v14214_v47 = vld [vmem:[%s14011_s16 + $0x70] sm:$0xff]  ;;  %v14221_v48 = vld [vmem:[%s14011_s16 + $0x78] sm:$0xff]  ;;  %v14224_v49 = vld [vmem:[%s14011_s16 + $0x80] sm:$0xff] }
  0xd2   : > { %11032 = vmatprep.mubr.msk.f32.mxu0 %vm484_vm1, %v14051_v12  ;;  %v14231_v50 = vld [vmem:[%s14011_s16 + $0x88] sm:$0xff]  ;;  %v14234_v51 = vld [vmem:[%s14011_s16 + $0x90] sm:$0xff]  ;;  %v14241_v52 = vld [vmem:[%s14011_s16 + $0x98] sm:$0xff] }
  0xd3   : > { %v14244_v53 = vld [vmem:[%s14011_s16 + $0xa0] sm:$0xff]  ;;  %v14251_v54 = vld [vmem:[%s14011_s16 + $0xa8] sm:$0xff]  ;;  %v14254_v55 = vld [vmem:[%s14011_s16 + $0xb0] sm:$0xff] }
  0xd4   : > { %v14261_v56 = vld [vmem:[%s14011_s16 + $0xb8] sm:$0xff]  ;;  %v14264_v57 = vld [vmem:[%s14011_s16 + $0xc0] sm:$0xff]  ;;  %v14271_v58 = vld [vmem:[%s14011_s16 + $0xc8] sm:$0xff] }
  0xd5   : > { %11033 = vmatmul.mubr.msk.f32.gmra.mrb[8].mxu0 %vm484_vm1, %v14058_v13  ;;  %v14274_v59 = vld [vmem:[%s14011_s16 + $0xd0] sm:$0xff]  ;;  %v452_v60 = vld [vmem:[%s14011_s16 + $0xd8] sm:$0x3f]  ;;  %v1070_v61 = vld [vmem:[%s14011_s16 + $0x2] sm:$0xff] }
  0xd6   : > { %11035 = vmatprep.mubr.msk.f32.mxu0 %vm484_vm1, %v14061_v14  ;;  %v1071_v62 = vld [vmem:[%s14011_s16 + $0xa] sm:$0xff]  ;;  %v14286_v63 = vld [vmem:[%s14011_s16 + $0x12] sm:$0xff]  ;;  %v14293_v1 = vld [vmem:[%s14011_s16 + $0x1a] sm:$0xff] }
  0xd7   : > { %v14296_v2 = vld [vmem:[%s14011_s16 + $0x22] sm:$0xff]  ;;  %v14304_v3 = vld [vmem:[%s14011_s16 + $0x2a] sm:$0xff]  ;;  %v14307_v4 = vld [vmem:[%s14011_s16 + $0x32] sm:$0xff] }
  0xd8   : > { %15843 = vst [vmem:[#allocation20_spill] sm:$0xff] %v14307_v4 }
  0xd9   : > { %11036 = vmatmul.mubr.msk.f32.gmra.mrb[10].mxu0 %vm484_vm1, %v14068_v15 }
  0xda   : > { %11038 = vmatprep.mubr.msk.f32.mxu0 %vm484_vm1, %v14071_v16 }
  0xdd   : > { %11039 = vmatmul.mubr.msk.f32.gmra.mrb[12].mxu0 %vm484_vm1, %v14078_v17 }
  0xde   : > { %11041 = vmatprep.mubr.msk.f32.mxu0 %vm484_vm1, %v14081_v18 }
  0xe1   : > { %11042 = vmatmul.mubr.msk.f32.gmra.mrb[14].mxu0 %vm484_vm1, %v14088_v19 }
  0xe2   : > { %11044 = vmatprep.mubr.msk.f32.mxu0 %vm484_vm1, %v14091_v20 }
  0xe5   : > { %11045 = vmatmul.mubr.msk.f32.gmra.mrb[16].mxu0 %vm484_vm1, %v14098_v21 }
  0xe6   : > { %11047 = vmatprep.mubr.msk.f32.mxu0 %vm484_vm1, %v14101_v22 }
  0xe9   : > { %11048 = vmatmul.mubr.msk.f32.gmra.mrb[18].mxu0 %vm484_vm1, %v14108_v23 }
  0xea   : > { %11050 = vmatprep.mubr.msk.f32.mxu0 %vm484_vm1, %v14111_v24 }
  0xed   : > { %11051 = vmatmul.mubr.msk.f32.gmra.mrb[20].mxu0 %vm484_vm1, %v14118_v25 }
  0xee   : > { %11053 = vmatprep.mubr.msk.f32.mxu0 %vm484_vm1, %v14121_v26 }
  0xf1   : > { %11054 = vmatmul.mubr.msk.f32.gmra.mrb[22].mxu0 %vm484_vm1, %v14128_v27 }
  0xf2   : > { %11056 = vmatprep.mubr.msk.f32.mxu0 %vm484_vm1, %v14131_v28 }
  0xf5   : > { %11057 = vmatmul.mubr.msk.f32.gmra.mrb[24].mxu0 %vm484_vm1, %v14138_v29 }
  0xf6   : > { %11059 = vmatprep.mubr.msk.f32.mxu0 %vm484_vm1, %v14141_v30 }
  0xf9   : > { %11060 = vmatmul.mubr.msk.f32.gmra.mrb[26].mxu0 %vm484_vm1, %v481_v31  ;;  %v14317_v31 = vld [vmem:[%s14011_s16 + $0x42] sm:$0xff] }
  0xfa   : > { %11064 = vmatprep.mubr.msk.f32.mxu0 %vm484_vm1, %v425_v32  ;;  %15845 = vst [vmem:[#allocation22_spill] sm:$0xff] %v14317_v31  ;;  %v14324_v32 = vld [vmem:[%s14011_s16 + $0x4a] sm:$0xff] }
  0xfb   : > { %15846 = vst [vmem:[#allocation23_spill] sm:$0xff] %v14324_v32 }
  0xfd   : > { %11065 = vmatmul.mubr.msk.f32.vlgmr.msra.gmra.mrb[0].mxu0 %vm484_vm1, %v426_v33  ;;  %v14327_v33 = vld [vmem:[%s14011_s16 + $0x52] sm:$0xff] }
  0xfe   : > { %11107 = vmatpush3.msk.msra.mxu0 %vm569_vm0, %v1099_v10  ;;  %11067 = vmatprep.mubr.msk.f32.mxu0 %vm484_vm1, %v14153_v34  ;;  %v14314_v10 = vld [vmem:[%s14011_s16 + $0x3a] sm:$0xff]  ;;  %15847 = vst [vmem:[#allocation24_spill] sm:$0xff] %v14327_v33 }
  0xff   : > { %11150 = vmatprep.subr.msk.mxu0 %vm569_vm0, %v1449_v35  ;;  %15844 = vst [vmem:[#allocation21_spill] sm:$0xff] %v14314_v10 }
 0x101   : > { %11068 = vmatmul.mubr.msk.f32.gmra.mrb[2].mxu0 %vm484_vm1, %v14160_v36 }
 0x102   : > { %11070 = vmatprep.mubr.msk.f32.mxu0 %vm484_vm1, %v14163_v37 }
 0x105   : > { %11071 = vmatmul.mubr.msk.f32.gmra.mrb[4].mxu0 %vm484_vm1, %v14171_v38 }
 0x106   : > { %11073 = vmatprep.mubr.msk.f32.mxu0 %vm484_vm1, %v14174_v39 }
 0x109   : > { %11074 = vmatmul.mubr.msk.f32.gmra.mrb[6].mxu0 %vm484_vm1, %v14181_v40 }
 0x10a   : > { %11076 = vmatprep.mubr.msk.f32.mxu0 %vm484_vm1, %v14184_v41 }
 0x10d   : > { %11077 = vmatmul.mubr.msk.f32.gmra.mrb[8].mxu0 %vm484_vm1, %v14191_v42 }
 0x10e   : > { %11079 = vmatprep.mubr.msk.f32.mxu0 %vm484_vm1, %v14194_v43 }
 0x111   : > { %11080 = vmatmul.mubr.msk.f32.gmra.mrb[10].mxu0 %vm484_vm1, %v14201_v44 }
 0x112   : > { %11082 = vmatprep.mubr.msk.f32.mxu0 %vm484_vm1, %v14204_v45 }
 0x115   : > { %11083 = vmatmul.mubr.msk.f32.gmra.mrb[12].mxu0 %vm484_vm1, %v14211_v46 }
 0x116   : > { %11085 = vmatprep.mubr.msk.f32.mxu0 %vm484_vm1, %v14214_v47 }
 0x119   : > { %11086 = vmatmul.mubr.msk.f32.gmra.mrb[14].mxu0 %vm484_vm1, %v14221_v48 }
 0x11a   : > { %11088 = vmatprep.mubr.msk.f32.mxu0 %vm484_vm1, %v14224_v49 }
 0x11d   : > { %11089 = vmatmul.mubr.msk.f32.gmra.mrb[16].mxu0 %vm484_vm1, %v14231_v50 }
 0x11e   : > { %11091 = vmatprep.mubr.msk.f32.mxu0 %vm484_vm1, %v14234_v51 }
 0x121   : > { %11092 = vmatmul.mubr.msk.f32.gmra.mrb[18].mxu0 %vm484_vm1, %v14241_v52 }
 0x122   : > { %11094 = vmatprep.mubr.msk.f32.mxu0 %vm484_vm1, %v14244_v53 }
 0x125   : > { %11095 = vmatmul.mubr.msk.f32.gmra.mrb[20].mxu0 %vm484_vm1, %v14251_v54 }
 0x126   : > { %11097 = vmatprep.mubr.msk.f32.mxu0 %vm484_vm1, %v14254_v55 }
 0x129   : > { %11098 = vmatmul.mubr.msk.f32.gmra.mrb[22].mxu0 %vm484_vm1, %v14261_v56 }
 0x12a   : > { %11100 = vmatprep.mubr.msk.f32.mxu0 %vm484_vm1, %v14264_v57 }
 0x12d   : > { %11101 = vmatmul.mubr.msk.f32.gmra.mrb[24].mxu0 %vm484_vm1, %v14271_v58 }
 0x12e   : > { %11103 = vmatprep.mubr.msk.f32.mxu0 %vm484_vm1, %v14274_v59 }
 0x131   : > { %11104 = vmatmul.mubr.msk.f32.gmra.mrb[26].mxu0 %vm484_vm1, %v452_v60  ;;  %v14337_v60 = vld [vmem:[%s14011_s16 + $0x62] sm:$0xff] }
 0x132   : > { %11108 = vmatprep.mubr.msk.f32.mxu0 %vm484_vm1, %v1070_v61  ;;  %15849 = vst [vmem:[#allocation26_spill] sm:$0xff] %v14337_v60  ;;  %v14344_v61 = vld [vmem:[%s14011_s16 + $0x6a] sm:$0xff] }
 0x133   : > { %15850 = vst [vmem:[#allocation27_spill] sm:$0xff] %v14344_v61 }
 0x135   : > { %11109 = vmatmul.mubr.msk.f32.vlgmr.msra.gmra.mrb[0].mxu0 %vm484_vm1, %v1071_v62  ;;  %v14347_v62 = vld [vmem:[%s14011_s16 + $0x72] sm:$0xff] }
 0x136   : > { %11151 = vmatpush3.msk.msra.mxu0 %vm569_vm0, %v1449_v35  ;;  %11111 = vmatprep.mubr.msk.f32.mxu0 %vm484_vm1, %v14286_v63  ;;  %v14334_v35 = vld [vmem:[%s14011_s16 + $0x5a] sm:$0xff]  ;;  %15851 = vst [vmem:[#allocation28_spill] sm:$0xff] %v14347_v62 }
 0x137   : > { %11194 = vmatprep.subr.msk.mxu0 %vm569_vm0, %v1799_v0  ;;  %15848 = vst [vmem:[#allocation25_spill] sm:$0xff] %v14334_v35 }
 0x139   : > { %11112 = vmatmul.mubr.msk.f32.gmra.mrb[2].mxu0 %vm484_vm1, %v14293_v1 }
 0x13a   : > { %11114 = vmatprep.mubr.msk.f32.mxu0 %vm484_vm1, %v14296_v2 }
 0x13d   : > { %11115 = vmatmul.mubr.msk.f32.gmra.mrb[4].mxu0 %vm484_vm1, %v14304_v3 }
 0x13e   : > { %11117 = vmatprep.mubr.msk.f32.mxu0 %vm484_vm1, %v14307_v4 }
 0x141   : > { %11118 = vmatmul.mubr.msk.f32.gmra.mrb[6].mxu0 %vm484_vm1, %v14314_v10 }
 0x142   : > { %11120 = vmatprep.mubr.msk.f32.mxu0 %vm484_vm1, %v14317_v31 }
 0x145   : > { %11121 = vmatmul.mubr.msk.f32.gmra.mrb[8].mxu0 %vm484_vm1, %v14324_v32  ;;  %v14357_v32 = vld [vmem:[%s14011_s16 + $0x82] sm:$0xff] }
 0x146   : > { %11123 = vmatprep.mubr.msk.f32.mxu0 %vm484_vm1, %v14327_v33  ;;  %v14354_v33 = vld [vmem:[%s14011_s16 + $0x7a] sm:$0xff]  ;;  %15853 = vst [vmem:[#allocation30_spill] sm:$0xff] %v14357_v32 }
 0x147   : > { %15852 = vst [vmem:[#allocation29_spill] sm:$0xff] %v14354_v33 }
 0x149   : > { %11124 = vmatmul.mubr.msk.f32.gmra.mrb[10].mxu0 %vm484_vm1, %v14334_v35  ;;  %v14367_v35 = vld [vmem:[%s14011_s16 + $0x92] sm:$0xff] }
 0x14a   : > { %11126 = vmatprep.mubr.msk.f32.mxu0 %vm484_vm1, %v14337_v60  ;;  %v14364_v60 = vld [vmem:[%s14011_s16 + $0x8a] sm:$0xff]  ;;  %15855 = vst [vmem:[#allocation32_spill] sm:$0xff] %v14367_v35 }
 0x14b   : > { %15854 = vst [vmem:[#allocation31_spill] sm:$0xff] %v14364_v60 }
 0x14d   : > { %11127 = vmatmul.mubr.msk.f32.gmra.mrb[12].mxu0 %vm484_vm1, %v14344_v61  ;;  %v14377_v61 = vld [vmem:[%s14011_s16 + $0xa2] sm:$0xff] }
 0x14e   : > { %11129 = vmatprep.mubr.msk.f32.mxu0 %vm484_vm1, %v14347_v62  ;;  %v14374_v62 = vld [vmem:[%s14011_s16 + $0x9a] sm:$0xff]  ;;  %15857 = vst [vmem:[#allocation34_spill] sm:$0xff] %v14377_v61 }
 0x14f   : > { %15856 = vst [vmem:[#allocation33_spill] sm:$0xff] %v14374_v62 }
 0x151   : > { %11130 = vmatmul.mubr.msk.f32.gmra.mrb[14].mxu0 %vm484_vm1, %v14354_v33  ;;  %v14387_v33 = vld [vmem:[%s14011_s16 + $0xb2] sm:$0xff] }
 0x152   : > { %11132 = vmatprep.mubr.msk.f32.mxu0 %vm484_vm1, %v14357_v32  ;;  %v14384_v32 = vld [vmem:[%s14011_s16 + $0xaa] sm:$0xff]  ;;  %15858 = vst [vmem:[#allocation35_spill] sm:$0xff] %v14387_v33 }
 0x155   : > { %11133 = vmatmul.mubr.msk.f32.gmra.mrb[16].mxu0 %vm484_vm1, %v14364_v60  ;;  %v14397_v60 = vld [vmem:[%s14011_s16 + $0xc2] sm:$0xff] }
 0x156   : > { %11135 = vmatprep.mubr.msk.f32.mxu0 %vm484_vm1, %v14367_v35  ;;  %v14394_v35 = vld [vmem:[%s14011_s16 + $0xba] sm:$0xff] }
 0x157   : > { %15859 = vst [vmem:[#allocation36_spill] sm:$0xff] %v14394_v35 }
 0x159   : > { %11136 = vmatmul.mubr.msk.f32.gmra.mrb[18].mxu0 %vm484_vm1, %v14374_v62  ;;  %v14407_v62 = vld [vmem:[%s14011_s16 + $0xd2] sm:$0xff] }
 0x15a   : > { %11138 = vmatprep.mubr.msk.f32.mxu0 %vm484_vm1, %v14377_v61  ;;  %v14404_v61 = vld [vmem:[%s14011_s16 + $0xca] sm:$0xff] }
 0x15b   : > { %15860 = vst [vmem:[#allocation37_spill] sm:$0xff] %v14404_v61 }
 0x15d   : > { %11139 = vmatmul.mubr.msk.f32.gmra.mrb[20].mxu0 %vm484_vm1, %v14384_v32 }
 0x15e   : > { %11141 = vmatprep.mubr.msk.f32.mxu0 %vm484_vm1, %v14387_v33  ;;  %v1097_v33 = vld [vmem:[%s14011_s16 + $0xda] sm:$0x3f] }
 0x161   : > { %11142 = vmatmul.mubr.msk.f32.gmra.mrb[22].mxu0 %vm484_vm1, %v14394_v35  ;;  %v2149_v35 = vld [vmem:[#allocation5 + $0x14] sm:$0x7] }
 0x162   : > { %11144 = vmatprep.mubr.msk.f32.mxu0 %vm484_vm1, %v14397_v60 }
 0x165   : > { %11145 = vmatmul.mubr.msk.f32.gmra.mrb[24].mxu0 %vm484_vm1, %v14404_v61 }
 0x166   : > { %11147 = vmatprep.mubr.msk.f32.mxu0 %vm484_vm1, %v14407_v62 }
 0x169   : > { %11148 = vmatmul.mubr.msk.f32.gmra.mrb[26].mxu0 %vm484_vm1, %v1097_v33  ;;  %v2499_v33 = vld [vmem:[#allocation5 + $0x18] sm:$0x7] }
 0x16a   : > { %11152 = vmatprep.mubr.msk.f32.mxu0 %vm484_vm1, %v14153_v34  ;;  %v14468_v34 = vld [vmem:[%s14011_s16 + $0xd8] sm:$0xff] }
 0x16d   : > { %11153 = vmatmul.mubr.msk.f32.vlgmr.msra.gmra.mrb[0].mxu0 %vm484_vm1, %v14160_v36  ;;  %v14471_v36 = vld [vmem:[%s14011_s16 + $0xe0] sm:$0xff] }
 0x16e   : > { %11195 = vmatpush3.msk.msra.mxu0 %vm569_vm0, %v1799_v0  ;;  %11155 = vmatprep.mubr.msk.f32.mxu0 %vm484_vm1, %v14163_v37  ;;  %v1447_v0 = vld [vmem:[%s14011_s16 + $0xe8] sm:$0x3f] }
 0x16f   : > { %11238 = vmatprep.subr.msk.mxu0 %vm569_vm0, %v2149_v35 }
 0x171   : > { %11156 = vmatmul.mubr.msk.f32.gmra.mrb[2].mxu0 %vm484_vm1, %v14171_v38 }
 0x172   : > { %11158 = vmatprep.mubr.msk.f32.mxu0 %vm484_vm1, %v14174_v39 }
 0x175   : > { %11159 = vmatmul.mubr.msk.f32.gmra.mrb[4].mxu0 %vm484_vm1, %v14181_v40 }
 0x176   : > { %11161 = vmatprep.mubr.msk.f32.mxu0 %vm484_vm1, %v14184_v41 }
 0x179   : > { %11162 = vmatmul.mubr.msk.f32.gmra.mrb[6].mxu0 %vm484_vm1, %v14191_v42 }
 0x17a   : > { %11164 = vmatprep.mubr.msk.f32.mxu0 %vm484_vm1, %v14194_v43 }
 0x17d   : > { %11165 = vmatmul.mubr.msk.f32.gmra.mrb[8].mxu0 %vm484_vm1, %v14201_v44 }
 0x17e   : > { %11167 = vmatprep.mubr.msk.f32.mxu0 %vm484_vm1, %v14204_v45 }
 0x181   : > { %11168 = vmatmul.mubr.msk.f32.gmra.mrb[10].mxu0 %vm484_vm1, %v14211_v46 }
 0x182   : > { %11170 = vmatprep.mubr.msk.f32.mxu0 %vm484_vm1, %v14214_v47 }
 0x185   : > { %11171 = vmatmul.mubr.msk.f32.gmra.mrb[12].mxu0 %vm484_vm1, %v14221_v48 }
 0x186   : > { %11173 = vmatprep.mubr.msk.f32.mxu0 %vm484_vm1, %v14224_v49 }
 0x189   : > { %11174 = vmatmul.mubr.msk.f32.gmra.mrb[14].mxu0 %vm484_vm1, %v14231_v50 }
 0x18a   : > { %11176 = vmatprep.mubr.msk.f32.mxu0 %vm484_vm1, %v14234_v51 }
 0x18d   : > { %11177 = vmatmul.mubr.msk.f32.gmra.mrb[16].mxu0 %vm484_vm1, %v14241_v52 }
 0x18e   : > { %11179 = vmatprep.mubr.msk.f32.mxu0 %vm484_vm1, %v14244_v53 }
 0x191   : > { %11180 = vmatmul.mubr.msk.f32.gmra.mrb[18].mxu0 %vm484_vm1, %v14251_v54 }
 0x192   : > { %11182 = vmatprep.mubr.msk.f32.mxu0 %vm484_vm1, %v14254_v55 }
 0x195   : > { %11183 = vmatmul.mubr.msk.f32.gmra.mrb[20].mxu0 %vm484_vm1, %v14261_v56 }
 0x196   : > { %11185 = vmatprep.mubr.msk.f32.mxu0 %vm484_vm1, %v14264_v57 }
 0x199   : > { %11186 = vmatmul.mubr.msk.f32.gmra.mrb[22].mxu0 %vm484_vm1, %v14271_v58 }
 0x19a   : > { %11188 = vmatprep.mubr.msk.f32.mxu0 %vm484_vm1, %v14274_v59 }
 0x19d   : > { %11189 = vmatmul.mubr.msk.f32.gmra.mrb[24].mxu0 %vm484_vm1, %v14468_v34 }
 0x19e   : > { %11191 = vmatprep.mubr.msk.f32.mxu0 %vm484_vm1, %v14471_v36 }
 0x1a1   : > { %11192 = vmatmul.mubr.msk.f32.gmra.mrb[26].mxu0 %vm484_vm1, %v1447_v0  ;;  %v2849_v0 = vld [vmem:[#allocation5 + $0x1c] sm:$0x7] }
 0x1a2   : > { %11196 = vmatprep.mubr.msk.f32.mxu0 %vm484_vm1, %v14018_v5  ;;  %v14532_v5 = vld [vmem:[%s14011_s16 + $0xd9] sm:$0xff] }
 0x1a5   : > { %11197 = vmatmul.mubr.msk.f32.vlgmr.msra.gmra.mrb[0].mxu0 %vm484_vm1, %v14027_v6  ;;  %v14535_v6 = vld [vmem:[%s14011_s16 + $0xe1] sm:$0xff] }
 0x1a6   : > { %11239 = vmatpush3.msk.msra.mxu0 %vm569_vm0, %v2149_v35  ;;  %11199 = vmatprep.mubr.msk.f32.mxu0 %vm484_vm1, %v14030_v7  ;;  %v1797_v35 = vld [vmem:[%s14011_s16 + $0xe9] sm:$0x3f] }
 0x1a7   : > { %11282 = vmatprep.subr.msk.mxu0 %vm569_vm0, %v2499_v33 }
 0x1a9   : > { %11200 = vmatmul.mubr.msk.f32.gmra.mrb[2].mxu0 %vm484_vm1, %v14037_v8 }
 0x1aa   : > { %11202 = vmatprep.mubr.msk.f32.mxu0 %vm484_vm1, %v14040_v9 }
 0x1ad   : > { %11203 = vmatmul.mubr.msk.f32.gmra.mrb[4].mxu0 %vm484_vm1, %v14048_v11 }
 0x1ae   : > { %11205 = vmatprep.mubr.msk.f32.mxu0 %vm484_vm1, %v14051_v12 }
 0x1b1   : > { %11206 = vmatmul.mubr.msk.f32.gmra.mrb[6].mxu0 %vm484_vm1, %v14058_v13 }
 0x1b2   : > { %11208 = vmatprep.mubr.msk.f32.mxu0 %vm484_vm1, %v14061_v14 }
 0x1b5   : > { %11209 = vmatmul.mubr.msk.f32.gmra.mrb[8].mxu0 %vm484_vm1, %v14068_v15 }
 0x1b6   : > { %11211 = vmatprep.mubr.msk.f32.mxu0 %vm484_vm1, %v14071_v16 }
 0x1b9   : > { %11212 = vmatmul.mubr.msk.f32.gmra.mrb[10].mxu0 %vm484_vm1, %v14078_v17 }
 0x1ba   : > { %11214 = vmatprep.mubr.msk.f32.mxu0 %vm484_vm1, %v14081_v18 }
 0x1bd   : > { %11215 = vmatmul.mubr.msk.f32.gmra.mrb[12].mxu0 %vm484_vm1, %v14088_v19 }
 0x1be   : > { %11217 = vmatprep.mubr.msk.f32.mxu0 %vm484_vm1, %v14091_v20 }
 0x1c1   : > { %11218 = vmatmul.mubr.msk.f32.gmra.mrb[14].mxu0 %vm484_vm1, %v14098_v21 }
 0x1c2   : > { %11220 = vmatprep.mubr.msk.f32.mxu0 %vm484_vm1, %v14101_v22 }
 0x1c5   : > { %11221 = vmatmul.mubr.msk.f32.gmra.mrb[16].mxu0 %vm484_vm1, %v14108_v23 }
 0x1c6   : > { %11223 = vmatprep.mubr.msk.f32.mxu0 %vm484_vm1, %v14111_v24 }
 0x1c9   : > { %11224 = vmatmul.mubr.msk.f32.gmra.mrb[18].mxu0 %vm484_vm1, %v14118_v25 }
 0x1ca   : > { %11226 = vmatprep.mubr.msk.f32.mxu0 %vm484_vm1, %v14121_v26 }
 0x1cd   : > { %11227 = vmatmul.mubr.msk.f32.gmra.mrb[20].mxu0 %vm484_vm1, %v14128_v27 }
 0x1ce   : > { %11229 = vmatprep.mubr.msk.f32.mxu0 %vm484_vm1, %v14131_v28 }
 0x1d1   : > { %11230 = vmatmul.mubr.msk.f32.gmra.mrb[22].mxu0 %vm484_vm1, %v14138_v29 }
 0x1d2   : > { %11232 = vmatprep.mubr.msk.f32.mxu0 %vm484_vm1, %v14141_v30 }
 0x1d5   : > { %11233 = vmatmul.mubr.msk.f32.gmra.mrb[24].mxu0 %vm484_vm1, %v14532_v5 }
 0x1d6   : > { %11235 = vmatprep.mubr.msk.f32.mxu0 %vm484_vm1, %v14535_v6 }
 0x1d9   : > { %11236 = vmatmul.mubr.msk.f32.gmra.mrb[26].mxu0 %vm484_vm1, %v1797_v35  ;;  %v15864_v35 = vld [vmem:[#allocation26_spill] sm:$0xff] }
 0x1da   : > { %11240 = vmatprep.mubr.msk.f32.mxu0 %vm484_vm1, %v14286_v63  ;;  %v15861_v63 = vld [vmem:[#allocation23_spill] sm:$0xff] }
 0x1dd   : > { %11241 = vmatmul.mubr.msk.f32.vlgmr.msra.gmra.mrb[0].mxu0 %vm484_vm1, %v14293_v1  ;;  %v15862_v1 = vld [vmem:[#allocation24_spill] sm:$0xff] }
 0x1de   : > { %11283 = vmatpush3.msk.msra.mxu0 %vm569_vm0, %v2499_v33  ;;  %11243 = vmatprep.mubr.msk.f32.mxu0 %vm484_vm1, %v14296_v2  ;;  %v15863_v33 = vld [vmem:[#allocation25_spill] sm:$0xff] }
 0x1df   : > { %11326 = vmatprep.subr.msk.mxu0 %vm569_vm0, %v2849_v0 }
 0x1e1   : > { %11244 = vmatmul.mubr.msk.f32.gmra.mrb[2].mxu0 %vm484_vm1, %v14304_v3 }
 0x1e2   : > { %11246 = vmatprep.mubr.msk.f32.mxu0 %vm484_vm1, %v14307_v4  ;;  %v15865_v4 = vld [vmem:[#allocation27_spill] sm:$0xff] }
 0x1e5   : > { %11247 = vmatmul.mubr.msk.f32.gmra.mrb[4].mxu0 %vm484_vm1, %v14314_v10  ;;  %v15866_v10 = vld [vmem:[#allocation28_spill] sm:$0xff] }
 0x1e6   : > { %11249 = vmatprep.mubr.msk.f32.mxu0 %vm484_vm1, %v14317_v31  ;;  %v15867_v31 = vld [vmem:[#allocation29_spill] sm:$0xff] }
 0x1e9   : > { %11250 = vmatmul.mubr.msk.f32.gmra.mrb[6].mxu0 %vm484_vm1, %v15861_v63  ;;  %v15868_v63 = vld [vmem:[#allocation30_spill] sm:$0xff] }
 0x1ea   : > { %11252 = vmatprep.mubr.msk.f32.mxu0 %vm484_vm1, %v15862_v1  ;;  %v15869_v1 = vld [vmem:[#allocation31_spill] sm:$0xff] }
 0x1ed   : > { %11253 = vmatmul.mubr.msk.f32.gmra.mrb[8].mxu0 %vm484_vm1, %v15863_v33  ;;  %v15870_v33 = vld [vmem:[#allocation32_spill] sm:$0xff] }
 0x1ee   : > { %11255 = vmatprep.mubr.msk.f32.mxu0 %vm484_vm1, %v15864_v35  ;;  %v15871_v35 = vld [vmem:[#allocation33_spill] sm:$0xff] }
 0x1f1   : > { %11256 = vmatmul.mubr.msk.f32.gmra.mrb[10].mxu0 %vm484_vm1, %v15865_v4  ;;  %v15872_v4 = vld [vmem:[#allocation34_spill] sm:$0xff] }
 0x1f2   : > { %11258 = vmatprep.mubr.msk.f32.mxu0 %vm484_vm1, %v15866_v10  ;;  %v15874_v10 = vld [vmem:[#allocation36_spill] sm:$0xff] }
 0x1f5   : > { %11259 = vmatmul.mubr.msk.f32.gmra.mrb[12].mxu0 %vm484_vm1, %v15867_v31  ;;  %v15873_v31 = vld [vmem:[#allocation35_spill] sm:$0xff] }
 0x1f6   : > { %11261 = vmatprep.mubr.msk.f32.mxu0 %vm484_vm1, %v15868_v63 }
 0x1f9   : > { %11262 = vmatmul.mubr.msk.f32.gmra.mrb[14].mxu0 %vm484_vm1, %v15869_v1 }
 0x1fa   : > { %11264 = vmatprep.mubr.msk.f32.mxu0 %vm484_vm1, %v15870_v33 }
 0x1fd   : > { %11265 = vmatmul.mubr.msk.f32.gmra.mrb[16].mxu0 %vm484_vm1, %v15871_v35  ;;  %v14596_v35 = vld [vmem:[%s14011_s16 + $0xda] sm:$0xff] }
 0x1fe   : > { %11267 = vmatprep.mubr.msk.f32.mxu0 %vm484_vm1, %v15872_v4  ;;  %v14599_v4 = vld [vmem:[%s14011_s16 + $0xe2] sm:$0xff] }
 0x201   : > { %11268 = vmatmul.mubr.msk.f32.gmra.mrb[18].mxu0 %vm484_vm1, %v14384_v32 }
 0x202   : > { %11270 = vmatprep.mubr.msk.f32.mxu0 %vm484_vm1, %v15873_v31 }
 0x205   : > { %11271 = vmatmul.mubr.msk.f32.gmra.mrb[20].mxu0 %vm484_vm1, %v15874_v10  ;;  %v2147_v10 = vld [vmem:[%s14011_s16 + $0xea] sm:$0x3f] }
 0x206   : > { %11273 = vmatprep.mubr.msk.f32.mxu0 %vm484_vm1, %v14397_v60 }
 0x209   : > { %11274 = vmatmul.mubr.msk.f32.gmra.mrb[22].mxu0 %vm484_vm1, %v14404_v61  ;;  %v3199_v61 = vld [vmem:[#allocation5 + $0x20] sm:$0x7] }
 0x20a   : > { %11276 = vmatprep.mubr.msk.f32.mxu0 %vm484_vm1, %v14407_v62 }
 0x20d   : > { %11277 = vmatmul.mubr.msk.f32.gmra.mrb[24].mxu0 %vm484_vm1, %v14596_v35 }
 0x20e   : > { %11279 = vmatprep.mubr.msk.f32.mxu0 %vm484_vm1, %v14599_v4 }
 0x211   : > { %11280 = vmatmul.mubr.msk.f32.gmra.mrb[26].mxu0 %vm484_vm1, %v2147_v10 }
 0x212   : > { %11284 = vmatprep.mubr.msk.f32.mxu0 %vm484_vm1, %v14163_v37  ;;  %v2495_v37 = vld [vmem:[%s14011_s16 + $0xe8] sm:$0xff] }
 0x215   : > { %11285 = vmatmul.mubr.msk.f32.vlgmr.msra.gmra.mrb[0].mxu0 %vm484_vm1, %v14171_v38  ;;  %v2496_v38 = vld [vmem:[%s14011_s16 + $0xf0] sm:$0xff] }
 0x216   : > { %11327 = vmatpush3.msk.msra.mxu0 %vm569_vm0, %v2849_v0  ;;  %11287 = vmatprep.mubr.msk.f32.mxu0 %vm484_vm1, %v14174_v39  ;;  %v2497_v39 = vld [vmem:[%s14011_s16 + $0xf8] sm:$0x3f] }
 0x217   : > { %11370 = vmatprep.subr.msk.mxu0 %vm569_vm0, %v3199_v61 }
 0x219   : > { %11288 = vmatmul.mubr.msk.f32.gmra.mrb[2].mxu0 %vm484_vm1, %v14181_v40  ;;  %v3668_v40 = vld [vmem:[#allocation9 + $0x30] sm:$0xff] }
 0x21a   : > { %11290 = vmatprep.mubr.msk.f32.mxu0 %vm484_vm1, %v14184_v41  ;;  %v3669_v41 = vld [vmem:[#allocation9 + $0x38] sm:$0xff] }
 0x21d   : > { %11291 = vmatmul.mubr.msk.f32.gmra.mrb[4].mxu0 %vm484_vm1, %v14191_v42  ;;  %v12498_v42 = vpack.c.bf16 %v3669_v41, %v3668_v40 }
 0x21e   : > { %11293 = vmatprep.mubr.msk.f32.mxu0 %vm484_vm1, %v14194_v43  ;;  %v3637_v43 = vld [vmem:[#allocation9] sm:$0xff] }
 0x221   : > { %11294 = vmatmul.mubr.msk.f32.gmra.mrb[6].mxu0 %vm484_vm1, %v14201_v44  ;;  %v3638_v44 = vld [vmem:[#allocation9 + $0x8] sm:$0xff] }
 0x222   : > { %11296 = vmatprep.mubr.msk.f32.mxu0 %vm484_vm1, %v14204_v45  ;;  %v12502_v45 = vpack.c.bf16 %v3638_v44, %v3637_v43 }
 0x225   : > { %11297 = vmatmul.mubr.msk.f32.gmra.mrb[8].mxu0 %vm484_vm1, %v14211_v46  ;;  %v14778_v46 = vld [vmem:[#allocation7] ss:$0 sm:$0xff] }
 0x226   : > { %11299 = vmatprep.mubr.msk.f32.mxu0 %vm484_vm1, %v14214_v47 }
 0x229   : > { %11300 = vmatmul.mubr.msk.f32.gmra.mrb[10].mxu0 %vm484_vm1, %v14221_v48 }
 0x22a   : > { %11302 = vmatprep.mubr.msk.f32.mxu0 %vm484_vm1, %v14224_v49 }
 0x22d   : > { %11303 = vmatmul.mubr.msk.f32.gmra.mrb[12].mxu0 %vm484_vm1, %v14231_v50 }
 0x22e   : > { %11305 = vmatprep.mubr.msk.f32.mxu0 %vm484_vm1, %v14234_v51 }
 0x231   : > { %11306 = vmatmul.mubr.msk.f32.gmra.mrb[14].mxu0 %vm484_vm1, %v14241_v52 }
 0x232   : > { %11308 = vmatprep.mubr.msk.f32.mxu0 %vm484_vm1, %v14244_v53 }
 0x235   : > { %11309 = vmatmul.mubr.msk.f32.gmra.mrb[16].mxu0 %vm484_vm1, %v14251_v54 }
 0x236   : > { %11311 = vmatprep.mubr.msk.f32.mxu0 %vm484_vm1, %v14254_v55 }
 0x239   : > { %11312 = vmatmul.mubr.msk.f32.gmra.mrb[18].mxu0 %vm484_vm1, %v14261_v56 }
 0x23a   : > { %11314 = vmatprep.mubr.msk.f32.mxu0 %vm484_vm1, %v14264_v57 }
 0x23d   : > { %11315 = vmatmul.mubr.msk.f32.gmra.mrb[20].mxu0 %vm484_vm1, %v14271_v58 }
 0x23e   : > { %11317 = vmatprep.mubr.msk.f32.mxu0 %vm484_vm1, %v14274_v59 }
 0x241   : > { %11318 = vmatmul.mubr.msk.f32.gmra.mrb[22].mxu0 %vm484_vm1, %v14468_v34  ;;  %v3639_v34 = vld [vmem:[#allocation9 + $0x10] sm:$0xff] }
 0x242   : > { %11320 = vmatprep.mubr.msk.f32.mxu0 %vm484_vm1, %v14471_v36  ;;  %v3640_v36 = vld [vmem:[#allocation9 + $0x18] sm:$0xff] }
 0x245   : > { %11321 = vmatmul.mubr.msk.f32.gmra.mrb[24].mxu0 %vm484_vm1, %v2495_v37 }
 0x246   : > { %11323 = vmatprep.mubr.msk.f32.mxu0 %vm484_vm1, %v2496_v38 }
 0x249   : > { %11324 = vmatmul.mubr.msk.f32.gmra.mrb[26].mxu0 %vm484_vm1, %v2497_v39 }
 0x24a   : > { %11328 = vmatprep.mubr.msk.f32.mxu0 %vm484_vm1, %v14030_v7  ;;  %v2845_v7 = vld [vmem:[%s14011_s16 + $0xe9] sm:$0xff] }
 0x24d   : > { %11329 = vmatmul.mubr.msk.f32.vlgmr.msra.gmra.mrb[0].mxu0 %vm484_vm1, %v14037_v8  ;;  %v2846_v8 = vld [vmem:[%s14011_s16 + $0xf1] sm:$0xff] }
 0x24e   : > { %11371 = vmatpush3.msk.msra.mxu0 %vm569_vm0, %v3199_v61  ;;  %11331 = vmatprep.mubr.msk.f32.mxu0 %vm484_vm1, %v14040_v9  ;;  %v2847_v9 = vld [vmem:[%s14011_s16 + $0xf9] sm:$0x3f] }
 0x251   : > { %11332 = vmatmul.mubr.msk.f32.gmra.mrb[2].mxu0 %vm484_vm1, %v14048_v11  ;;  %v15875_v11 = vld [vmem:[#allocation20_spill] sm:$0xff] }
 0x252   : > { %11334 = vmatprep.mubr.msk.f32.mxu0 %vm484_vm1, %v14051_v12  ;;  %v15876_v12 = vld [vmem:[#allocation21_spill] sm:$0xff] }
 0x255   : > { %11335 = vmatmul.mubr.msk.f32.gmra.mrb[4].mxu0 %vm484_vm1, %v14058_v13  ;;  %v15877_v13 = vld [vmem:[#allocation22_spill] sm:$0xff] }
 0x256   : > { %11337 = vmatprep.mubr.msk.f32.mxu0 %vm484_vm1, %v14061_v14  ;;  %v15878_v14 = vld [vmem:[#allocation23_spill] sm:$0xff] }
 0x259   : > { %11338 = vmatmul.mubr.msk.f32.gmra.mrb[6].mxu0 %vm484_vm1, %v14068_v15  ;;  %v15879_v15 = vld [vmem:[#allocation24_spill] sm:$0xff] }
 0x25a   : > { %11340 = vmatprep.mubr.msk.f32.mxu0 %vm484_vm1, %v14071_v16  ;;  %v15880_v16 = vld [vmem:[#allocation25_spill] sm:$0xff] }
 0x25d   : > { %11341 = vmatmul.mubr.msk.f32.gmra.mrb[8].mxu0 %vm484_vm1, %v14078_v17  ;;  %v15881_v17 = vld [vmem:[#allocation26_spill] sm:$0xff] }
 0x25e   : > { %11343 = vmatprep.mubr.msk.f32.mxu0 %vm484_vm1, %v14081_v18  ;;  %v15882_v18 = vld [vmem:[#allocation27_spill] sm:$0xff] }
 0x261   : > { %11344 = vmatmul.mubr.msk.f32.gmra.mrb[10].mxu0 %vm484_vm1, %v14088_v19  ;;  %v15883_v19 = vld [vmem:[#allocation28_spill] sm:$0xff] }
 0x262   : > { %11346 = vmatprep.mubr.msk.f32.mxu0 %vm484_vm1, %v14091_v20  ;;  %v15884_v20 = vld [vmem:[#allocation29_spill] sm:$0xff] }
 0x265   : > { %11347 = vmatmul.mubr.msk.f32.gmra.mrb[12].mxu0 %vm484_vm1, %v14098_v21  ;;  %v15885_v21 = vld [vmem:[#allocation33_spill] sm:$0xff] }
 0x266   : > { %11349 = vmatprep.mubr.msk.f32.mxu0 %vm484_vm1, %v14101_v22  ;;  %v15886_v22 = vld [vmem:[#allocation34_spill] sm:$0xff] }
 0x269   : > { %11350 = vmatmul.mubr.msk.f32.gmra.mrb[14].mxu0 %vm484_vm1, %v14108_v23  ;;  %v15887_v23 = vld [vmem:[#allocation36_spill] sm:$0xff] }
 0x26a   : > { %11352 = vmatprep.mubr.msk.f32.mxu0 %vm484_vm1, %v14111_v24  ;;  %v15888_v24 = vld [vmem:[#allocation37_spill] sm:$0xff] }
 0x26d   : > { %11353 = vmatmul.mubr.msk.f32.gmra.mrb[16].mxu0 %vm484_vm1, %v14118_v25  ;;  %v3195_v25 = vld [vmem:[%s14011_s16 + $0xea] sm:$0xff] }
 0x26e   : > { %11355 = vmatprep.mubr.msk.f32.mxu0 %vm484_vm1, %v14121_v26  ;;  %v3196_v26 = vld [vmem:[%s14011_s16 + $0xf2] sm:$0xff] }
 0x271   : > { %11356 = vmatmul.mubr.msk.f32.gmra.mrb[18].mxu0 %vm484_vm1, %v14128_v27  ;;  %v3197_v27 = vld [vmem:[%s14011_s16 + $0xfa] sm:$0x3f] }
 0x272   : > { %11358 = vmatprep.mubr.msk.f32.mxu0 %vm484_vm1, %v14131_v28  ;;  %v3666_v28 = vld [vmem:[#allocation9 + $0x20] sm:$0xff] }
 0x275   : > { %11359 = vmatmul.mubr.msk.f32.gmra.mrb[20].mxu0 %vm484_vm1, %v14138_v29  ;;  %v3667_v29 = vld [vmem:[#allocation9 + $0x28] sm:$0xff] }
 0x276   : > { %11361 = vmatprep.mubr.msk.f32.mxu0 %vm484_vm1, %v14141_v30  ;;  %v12494_v30 = vpack.c.bf16 %v3667_v29, %v3666_v28 }
 0x278   : > { %12495 = vmatprep.subr.bf16.mxu1 %v12494_v30 }
 0x279   : > { %11362 = vmatmul.mubr.msk.f32.gmra.mrb[22].mxu0 %vm484_vm1, %v14532_v5  ;;  %12497 = vmatpush3.bf16.msra.mxu1 %v12494_v30 }
 0x27a   : > { %11364 = vmatprep.mubr.msk.f32.mxu0 %vm484_vm1, %v14535_v6  ;;  %12499 = vmatprep.subr.bf16.mxu1 %v12498_v42 }
 0x27d   : > { %11365 = vmatmul.mubr.msk.f32.gmra.mrb[24].mxu0 %vm484_vm1, %v2845_v7  ;;  %12501 = vmatpush3.bf16.msra.mxu1 %v12498_v42  ;;  %v4210_v7 = vld [vmem:[#allocation9 + $0x48] sm:$0xff] }
 0x27e   : > { %11367 = vmatprep.mubr.msk.f32.mxu0 %vm484_vm1, %v2846_v8  ;;  %12503 = vmatprep.subr.bf16.mxu1 %v12502_v45 }
 0x281   : > { %11368 = vmatmul.mubr.msk.f32.gmra.mrb[26].mxu0 %vm484_vm1, %v2847_v9 }
 0x282   : > { %11372 = vmatprep.mubr.msk.f32.mxu0 %vm484_vm1, %v14296_v2 }
 0x285   : > { %11373 = vmatmul.mubr.msk.f32.vlgmr.msra.gmra.mrb[0].mxu0 %vm484_vm1, %v14304_v3 }
 0x286   : > { %11375 = vmatprep.mubr.msk.f32.mxu0 %vm484_vm1, %v15875_v11 }
 0x289   : > { %11376 = vmatmul.mubr.msk.f32.gmra.mrb[2].mxu0 %vm484_vm1, %v15876_v12 }
 0x28a   : > { %11378 = vmatprep.mubr.msk.f32.mxu0 %vm484_vm1, %v15877_v13 }
 0x28d   : > { %11379 = vmatmul.mubr.msk.f32.gmra.mrb[4].mxu0 %vm484_vm1, %v15878_v14 }
 0x28e   : > { %11381 = vmatprep.mubr.msk.f32.mxu0 %vm484_vm1, %v15879_v15 }
 0x291   : > { %11382 = vmatmul.mubr.msk.f32.gmra.mrb[6].mxu0 %vm484_vm1, %v15880_v16 }
 0x292   : > { %11384 = vmatprep.mubr.msk.f32.mxu0 %vm484_vm1, %v15881_v17 }
 0x295   : > { %11385 = vmatmul.mubr.msk.f32.gmra.mrb[8].mxu0 %vm484_vm1, %v15882_v18 }
 0x296   : > { %11387 = vmatprep.mubr.msk.f32.mxu0 %vm484_vm1, %v15883_v19 }
 0x299   : > { %11388 = vmatmul.mubr.msk.f32.gmra.mrb[10].mxu0 %vm484_vm1, %v15884_v20 }
 0x29a   : > { %11390 = vmatprep.mubr.msk.f32.mxu0 %vm484_vm1, %v15868_v63 }
 0x29d   : > { %11391 = vmatmul.mubr.msk.f32.gmra.mrb[12].mxu0 %vm484_vm1, %v15869_v1  ;;  %v12506_v1 = vpack.c.bf16 %v3640_v36, %v3639_v34 }
 0x29e   : > { %11393 = vmatprep.mubr.msk.f32.mxu0 %vm484_vm1, %v15870_v33  ;;  %v4209_v33 = vld [vmem:[#allocation9 + $0x40] sm:$0xff] }
 0x29f   : > { %v14804_v13 = vpack.c.bf16 %v4210_v7, %v4209_v33 }
 0x2a1   : > { %11394 = vmatmul.mubr.msk.f32.gmra.mrb[14].mxu0 %vm484_vm1, %v15885_v21 }
 0x2a2   : > { %11396 = vmatprep.mubr.msk.f32.mxu0 %vm484_vm1, %v15886_v22 }
 0x2a5   : > { %11397 = vmatmul.mubr.msk.f32.gmra.mrb[16].mxu0 %vm484_vm1, %v14384_v32 }
 0x2a6   : > { %11399 = vmatprep.mubr.msk.f32.mxu0 %vm484_vm1, %v15873_v31 }
 0x2a9   : > { %11400 = vmatmul.mubr.msk.f32.gmra.mrb[18].mxu0 %vm484_vm1, %v15887_v23 }
 0x2aa   : > { %11402 = vmatprep.mubr.msk.f32.mxu0 %vm484_vm1, %v14397_v60 }
 0x2ad   : > { %11403 = vmatmul.mubr.msk.f32.gmra.mrb[20].mxu0 %vm484_vm1, %v15888_v24 }
 0x2ae   : > { %11405 = vmatprep.mubr.msk.f32.mxu0 %vm484_vm1, %v14407_v62 }
 0x2b1   : > { %11406 = vmatmul.mubr.msk.f32.gmra.mrb[22].mxu0 %vm484_vm1, %v14596_v35 }
 0x2b2   : > { %11408 = vmatprep.mubr.msk.f32.mxu0 %vm484_vm1, %v14599_v4 }
 0x2b5   : > { %11409 = vmatmul.mubr.msk.f32.gmra.mrb[24].mxu0 %vm484_vm1, %v3195_v25 }
 0x2b6   : > { %11411 = vmatprep.mubr.msk.f32.mxu0 %vm484_vm1, %v3196_v26 }
 0x2b9   : > { %11412 = vmatmul.mubr.msk.f32.gmra.mrb[26].mxu0 %vm484_vm1, %v3197_v27 }
 0x358   : > { %v11374_v47 = vpop.f32.mrb[0].mxu0 }
 0x359   : > { %v3528_v48 = vadd.f32 %v11374_v47, %v14778_v46  ;;  %v3353_v49 = vpop.f32.mrb[1].mxu0 }
 0x35a   : > { %v3527_v50 = vadd.f32 %v14778_v46, %v3353_v49 }
 0x35b   : > { %v3556_v51 = vmax.f32 %v3528_v48, 0.0 }
 0x35c   : > { %v3555_v52 = vmax.f32 %v3527_v50, 0.0  ;;  %v11377_v53 = vpop.f32.mrb[2].mxu0 }
 0x35d   : > { %3585 = vst.msk [vmem:[#allocation2 + $0x8] sm:$0xff] %vm3583_vm2, %v3556_v51  ;;  %v3530_v54 = vadd.f32 %v11377_v53, %v14778_v46  ;;  %v3363_v55 = vpop.f32.mrb[3].mxu0 }
 0x35e   : > { %3584 = vst.msk [vmem:[#allocation2] sm:$0xff] %vm3583_vm2, %v3555_v52  ;;  %v3529_v56 = vadd.f32 %v14778_v46, %v3363_v55 }
 0x35f   : > { %v3558_v57 = vmax.f32 %v3530_v54, 0.0 }
 0x360   : > { %v3557_v58 = vmax.f32 %v3529_v56, 0.0  ;;  %v11380_v59 = vpop.f32.mrb[4].mxu0 }
 0x361   : > { %3587 = vst.msk [vmem:[#allocation2 + $0x18] sm:$0xff] %vm3583_vm2, %v3558_v57  ;;  %v3532_v2 = vadd.f32 %v11380_v59, %v14778_v46  ;;  %v3373_v3 = vpop.f32.mrb[5].mxu0 }
 0x362   : > { %3586 = vst.msk [vmem:[#allocation2 + $0x10] sm:$0xff] %vm3583_vm2, %v3557_v58  ;;  %v3531_v4 = vadd.f32 %v14778_v46, %v3373_v3 }
 0x363   : > { %v3560_v10 = vmax.f32 %v3532_v2, 0.0 }
 0x364   : > { %v3559_v31 = vmax.f32 %v3531_v4, 0.0  ;;  %v11383_v32 = vpop.f32.mrb[6].mxu0 }
 0x365   : > { %3589 = vst.msk [vmem:[#allocation2 + $0x28] sm:$0xff] %vm3583_vm2, %v3560_v10  ;;  %v3534_v60 = vadd.f32 %v11383_v32, %v14778_v46  ;;  %v3383_v61 = vpop.f32.mrb[7].mxu0  ;;  %v3641_v62 = vld [vmem:[#allocation2 + $0x1] sm:$0xff] }
 0x366   : > { %3588 = vst.msk [vmem:[#allocation2 + $0x20] sm:$0xff] %vm3583_vm2, %v3559_v31  ;;  %v3533_v5 = vadd.f32 %v14778_v46, %v3383_v61  ;;  %11422 = vmatprep.mubr.msk.f32.mxu1 %vm3583_vm2, %v3641_v62 }
 0x367   : > { %v3562_v6 = vmax.f32 %v3534_v60, 0.0 }
 0x368   : > { %v3561_v0 = vmax.f32 %v3533_v5, 0.0  ;;  %v11386_v63 = vpop.f32.mrb[8].mxu0 }
 0x369   : > { %3591 = vst.msk [vmem:[#allocation2 + $0x38] sm:$0xff] %vm3583_vm2, %v3562_v6  ;;  %v3536_v35 = vadd.f32 %v11386_v63, %v14778_v46  ;;  %v3393_v37 = vpop.f32.mrb[9].mxu0  ;;  %v3642_v38 = vld [vmem:[#allocation2 + $0x9] sm:$0xff]  ;;  %v14797_v39 = vld [vmem:[#allocation2 + $0x11] sm:$0xff] }
 0x36a   : > { %3590 = vst.msk [vmem:[#allocation2 + $0x30] sm:$0xff] %vm3583_vm2, %v3561_v0  ;;  %v3535_v8 = vadd.f32 %v14778_v46, %v3393_v37  ;;  %11423 = vmatmul.mubr.msk.f32.vlgmr.msra.gmra.mrb[0].mxu1 %vm3583_vm2, %v3642_v38 }
 0x36b   : > { %v3564_v9 = vmax.f32 %v3536_v35, 0.0  ;;  %11425 = vmatprep.mubr.msk.f32.mxu1 %vm3583_vm2, %v14797_v39  ;;  %12505 = vmatpush3.bf16.msra.mxu1 %v12502_v45 }
 0x36c   : > { %v3563_v11 = vmax.f32 %v3535_v8, 0.0  ;;  %v11389_v12 = vpop.f32.mrb[10].mxu0  ;;  %12507 = vmatprep.subr.bf16.mxu1 %v12506_v1 }
 0x36d   : > { %3593 = vst.msk [vmem:[#allocation2 + $0x48] sm:$0xff] %vm3583_vm2, %v3564_v9  ;;  %v3538_v14 = vadd.f32 %v11389_v12, %v14778_v46  ;;  %v3403_v15 = vpop.f32.mrb[11].mxu0  ;;  %v14808_v16 = vld [vmem:[#allocation2 + $0x19] sm:$0xff]  ;;  %v14810_v17 = vld [vmem:[#allocation2 + $0x21] sm:$0xff] }
 0x36e   : > { %3592 = vst.msk [vmem:[#allocation2 + $0x40] sm:$0xff] %vm3583_vm2, %v3563_v11  ;;  %v3537_v18 = vadd.f32 %v14778_v46, %v3403_v15  ;;  %11426 = vmatmul.mubr.msk.f32.gmra.mrb[2].mxu1 %vm3583_vm2, %v14808_v16 }
 0x36f   : > { %v3566_v19 = vmax.f32 %v3538_v14, 0.0  ;;  %11428 = vmatprep.mubr.msk.f32.mxu1 %vm3583_vm2, %v14810_v17  ;;  %12509 = vmatpush3.bf16.msra.mxu1 %v12506_v1 }
 0x370   : > { %v3565_v20 = vmax.f32 %v3537_v18, 0.0  ;;  %v11392_v21 = vpop.f32.mrb[12].mxu0  ;;  %12511 = vmatprep.subr.bf16.mxu1 %v14804_v13 }
 0x371   : > { %3595 = vst.msk [vmem:[#allocation2 + $0x58] sm:$0xff] %vm3583_vm2, %v3566_v19  ;;  %v3540_v22 = vadd.f32 %v11392_v21, %v14778_v46  ;;  %v3413_v23 = vpop.f32.mrb[13].mxu0  ;;  %v14821_v24 = vld [vmem:[#allocation2 + $0x29] sm:$0xff]  ;;  %v14823_v25 = vld [vmem:[#allocation2 + $0x31] sm:$0xff] }
 0x372   : > { %3594 = vst.msk [vmem:[#allocation2 + $0x50] sm:$0xff] %vm3583_vm2, %v3565_v20  ;;  %v3539_v26 = vadd.f32 %v14778_v46, %v3413_v23  ;;  %11429 = vmatmul.mubr.msk.f32.gmra.mrb[4].mxu1 %vm3583_vm2, %v14821_v24 }
 0x373   : > { %v3568_v27 = vmax.f32 %v3540_v22, 0.0  ;;  %11431 = vmatprep.mubr.msk.f32.mxu1 %vm3583_vm2, %v14823_v25 }
 0x374   : > { %v3567_v28 = vmax.f32 %v3539_v26, 0.0  ;;  %v11395_v29 = vpop.f32.mrb[14].mxu0 }
 0x375   : > { %3597 = vst.msk [vmem:[#allocation2 + $0x68] sm:$0xff] %vm3583_vm2, %v3568_v27  ;;  %v3542_v30 = vadd.f32 %v11395_v29, %v14778_v46  ;;  %v3423_v40 = vpop.f32.mrb[15].mxu0  ;;  %v14833_v41 = vld [vmem:[#allocation2 + $0x39] sm:$0xff]  ;;  %v14835_v42 = vld [vmem:[#allocation2 + $0x41] sm:$0xff] }
 0x376   : > { %3596 = vst.msk [vmem:[#allocation2 + $0x60] sm:$0xff] %vm3583_vm2, %v3567_v28  ;;  %v3541_v43 = vadd.f32 %v14778_v46, %v3423_v40  ;;  %11432 = vmatmul.mubr.msk.f32.gmra.mrb[6].mxu1 %vm3583_vm2, %v14833_v41  ;;  %v4212_v40 = vld [vmem:[#allocation9 + $0x58] sm:$0xff] }
 0x377   : > { %v3570_v44 = vmax.f32 %v3542_v30, 0.0  ;;  %11434 = vmatprep.mubr.msk.f32.mxu1 %vm3583_vm2, %v14835_v42  ;;  %v4211_v30 = vld [vmem:[#allocation9 + $0x50] sm:$0xff] }
 0x378   : > { %v3569_v45 = vmax.f32 %v3541_v43, 0.0  ;;  %v11398_v47 = vpop.f32.mrb[16].mxu0  ;;  %v3613_v43 = vld [vmem:[#allocation2] sm:$0xff] }
 0x379   : > { %3599 = vst.msk [vmem:[#allocation2 + $0x78] sm:$0xff] %vm3583_vm2, %v3570_v44  ;;  %v3544_v48 = vadd.f32 %v11398_v47, %v14778_v46  ;;  %v3433_v49 = vpop.f32.mrb[17].mxu0  ;;  %v14845_v50 = vld [vmem:[#allocation2 + $0x49] sm:$0xff]  ;;  %v14847_v51 = vld [vmem:[#allocation2 + $0x51] sm:$0xff]  ;;  %v12514_v44 = vpack.c.bf16 %v4212_v40, %v4211_v30  ;;  %v15035_v30 = vld [vmem:[#allocation2 + $0x3a] sm:$0xff] }
 0x37a   : > { %3598 = vst.msk [vmem:[#allocation2 + $0x70] sm:$0xff] %vm3583_vm2, %v3569_v45  ;;  %v3543_v52 = vadd.f32 %v14778_v46, %v3433_v49  ;;  %11435 = vmatmul.mubr.msk.f32.gmra.mrb[8].mxu1 %vm3583_vm2, %v14845_v50  ;;  %v3614_v45 = vld [vmem:[#allocation2 + $0x8] sm:$0xff]  ;;  %v14927_v49 = vld [vmem:[#allocation2 + $0x10] sm:$0xff] }
 0x37b   : > { %v3572_v53 = vmax.f32 %v3544_v48, 0.0  ;;  %11437 = vmatprep.mubr.msk.f32.mxu1 %vm3583_vm2, %v14847_v51  ;;  %v4519_v47 = vld [vmem:[#allocation9 + $0x60] sm:$0xff]  ;;  %v4520_v48 = vld [vmem:[#allocation9 + $0x68] sm:$0xff] }
 0x37c   : > { %v3571_v54 = vmax.f32 %v3543_v52, 0.0  ;;  %v11401_v55 = vpop.f32.mrb[18].mxu0  ;;  %v12518_v52 = vpack.c.bf16 %v4520_v48, %v4519_v47  ;;  %v15039_v40 = vld [vmem:[#allocation2 + $0x42] sm:$0xff] }
 0x37d   : > { %3601 = vst.msk [vmem:[#allocation2 + $0x88] sm:$0xff] %vm3583_vm2, %v3572_v53  ;;  %v3546_v56 = vadd.f32 %v11401_v55, %v14778_v46  ;;  %v3443_v57 = vpop.f32.mrb[19].mxu0  ;;  %v14857_v58 = vld [vmem:[#allocation2 + $0x59] sm:$0xff]  ;;  %v14859_v59 = vld [vmem:[#allocation2 + $0x61] sm:$0xff] }
 0x37e   : > { %3600 = vst.msk [vmem:[#allocation2 + $0x80] sm:$0xff] %vm3583_vm2, %v3571_v54  ;;  %v3545_v2 = vadd.f32 %v14778_v46, %v3443_v57  ;;  %11438 = vmatmul.mubr.msk.f32.gmra.mrb[10].mxu1 %vm3583_vm2, %v14857_v58  ;;  %v14932_v53 = vld [vmem:[#allocation2 + $0x18] sm:$0xff]  ;;  %v14936_v54 = vld [vmem:[#allocation2 + $0x20] sm:$0xff]  ;;  %v14940_v55 = vld [vmem:[#allocation2 + $0x28] sm:$0xff] }
 0x37f   : > { %v3574_v3 = vmax.f32 %v3546_v56, 0.0  ;;  %11440 = vmatprep.mubr.msk.f32.mxu1 %vm3583_vm2, %v14859_v59  ;;  %v14948_v56 = vld [vmem:[#allocation2 + $0x38] sm:$0xff]  ;;  %v14952_v57 = vld [vmem:[#allocation2 + $0x40] sm:$0xff] }
 0x380   : > { %v3573_v4 = vmax.f32 %v3545_v2, 0.0  ;;  %v11404_v10 = vpop.f32.mrb[20].mxu0  ;;  %v14956_v2 = vld [vmem:[#allocation2 + $0x48] sm:$0xff] }
 0x381   : > { %3603 = vst.msk [vmem:[#allocation2 + $0x98] sm:$0xff] %vm3583_vm2, %v3574_v3  ;;  %v3548_v31 = vadd.f32 %v11404_v10, %v14778_v46  ;;  %v3453_v32 = vpop.f32.mrb[21].mxu0  ;;  %v14869_v60 = vld [vmem:[#allocation2 + $0x69] sm:$0xff]  ;;  %v14871_v61 = vld [vmem:[#allocation2 + $0x71] sm:$0xff]  ;;  %v14968_v10 = vld [vmem:[#allocation2 + $0x60] sm:$0xff] }
 0x382   : > { %3602 = vst.msk [vmem:[#allocation2 + $0x90] sm:$0xff] %vm3583_vm2, %v3573_v4  ;;  %v3547_v62 = vadd.f32 %v14778_v46, %v3453_v32  ;;  %11441 = vmatmul.mubr.msk.f32.gmra.mrb[12].mxu1 %vm3583_vm2, %v14869_v60  ;;  %v14960_v3 = vld [vmem:[#allocation2 + $0x50] sm:$0xff]  ;;  %v14964_v4 = vld [vmem:[#allocation2 + $0x58] sm:$0xff]  ;;  %v15055_v47 = vld [vmem:[#allocation2 + $0x62] sm:$0xff] }
 0x383   : > { %v3576_v34 = vmax.f32 %v3548_v31, 0.0  ;;  %11443 = vmatprep.mubr.msk.f32.mxu1 %vm3583_vm2, %v14871_v61  ;;  %v14972_v31 = vld [vmem:[#allocation2 + $0x68] sm:$0xff]  ;;  %v14976_v32 = vld [vmem:[#allocation2 + $0x70] sm:$0xff] }
 0x384   : > { %v3575_v36 = vmax.f32 %v3547_v62, 0.0  ;;  %v11407_v5 = vpop.f32.mrb[22].mxu0  ;;  %v14980_v62 = vld [vmem:[#allocation2 + $0x78] sm:$0xff]  ;;  %v15059_v48 = vld [vmem:[#allocation2 + $0x6a] sm:$0xff] }
 0x385   : > { %3605 = vst.msk [vmem:[#allocation2 + $0xa8] sm:$0xff] %vm3583_vm2, %v3576_v34  ;;  %v3550_v6 = vadd.f32 %v11407_v5, %v14778_v46  ;;  %v3463_v0 = vpop.f32.mrb[23].mxu0  ;;  %v14881_v63 = vld [vmem:[#allocation2 + $0x79] sm:$0xff]  ;;  %v14883_v1 = vld [vmem:[#allocation2 + $0x81] sm:$0xff] }
 0x386   : > { %3604 = vst.msk [vmem:[#allocation2 + $0xa0] sm:$0xff] %vm3583_vm2, %v3575_v36  ;;  %v3549_v33 = vadd.f32 %v14778_v46, %v3463_v0  ;;  %11444 = vmatmul.mubr.msk.f32.gmra.mrb[14].mxu1 %vm3583_vm2, %v14881_v63  ;;  %v14984_v34 = vld [vmem:[#allocation2 + $0x80] sm:$0xff]  ;;  %v14988_v36 = vld [vmem:[#allocation2 + $0x88] sm:$0xff] }
 0x387   : > { %v3578_v35 = vmax.f32 %v3550_v6, 0.0  ;;  %11446 = vmatprep.mubr.msk.f32.mxu1 %vm3583_vm2, %v14883_v1 }
 0x388   : > { %v3577_v37 = vmax.f32 %v3549_v33, 0.0  ;;  %v11410_v38 = vpop.f32.mrb[24].mxu0  ;;  %v14996_v6 = vld [vmem:[#allocation2 + $0x98] sm:$0xff] }
 0x389   : > { %3607 = vst.msk [vmem:[#allocation2 + $0xb8] sm:$0xff] %vm3583_vm2, %v3578_v35  ;;  %v3552_v7 = vadd.f32 %v11410_v38, %v14778_v46  ;;  %v3473_v8 = vpop.f32.mrb[25].mxu0  ;;  %v14893_v9 = vld [vmem:[#allocation2 + $0x89] sm:$0xff]  ;;  %v14895_v11 = vld [vmem:[#allocation2 + $0x91] sm:$0xff] }
 0x38a   : > { %3606 = vst.msk [vmem:[#allocation2 + $0xb0] sm:$0xff] %vm3583_vm2, %v3577_v37  ;;  %v3551_v12 = vadd.f32 %v14778_v46, %v3473_v8  ;;  %11447 = vmatmul.mubr.msk.f32.gmra.mrb[16].mxu1 %vm3583_vm2, %v14893_v9  ;;  %v14992_v5 = vld [vmem:[#allocation2 + $0x90] sm:$0xff]  ;;  %v4184_v8 = vld [vmem:[#allocation2 + $0x2] sm:$0xff] }
 0x38b   : > { %v3580_v14 = vmax.f32 %v3552_v7, 0.0  ;;  %11449 = vmatprep.mubr.msk.f32.mxu1 %vm3583_vm2, %v14895_v11  ;;  %v4521_v38 = vld [vmem:[#allocation9 + $0x70] sm:$0xff]  ;;  %v4522_v7 = vld [vmem:[#allocation9 + $0x78] sm:$0xff] }
 0x38c   : > { %v3579_v15 = vmax.f32 %v3551_v12, 0.0  ;;  %v11413_v18 = vpop.f32.mrb[26].mxu0  ;;  %v15004_v33 = vld [vmem:[#allocation2 + $0xa8] sm:$0xff]  ;;  %v12522_v12 = vpack.c.bf16 %v4522_v7, %v4521_v38 }
 0x38d   : > { %3609 = vst.msk [vmem:[#allocation2 + $0xc8] sm:$0xff] %vm3583_vm2, %v3580_v14  ;;  %v3554_v19 = vadd.f32 %v11413_v18, %v14778_v46  ;;  %v3483_v20 = vpop.f32.mrb[27].mxu0  ;;  %v14905_v21 = vld [vmem:[#allocation2 + $0x99] sm:$0xff]  ;;  %v14907_v22 = vld [vmem:[#allocation2 + $0xa1] sm:$0xff]  ;;  %v4185_v14 = vld [vmem:[#allocation2 + $0xa] sm:$0xff] }
 0x38e   : > { %3608 = vst.msk [vmem:[#allocation2 + $0xc0] sm:$0xff] %vm3583_vm2, %v3579_v15  ;;  %v3553_v23 = vadd.f32 %v14778_v46, %v3483_v20  ;;  %11450 = vmatmul.mubr.msk.f32.gmra.mrb[18].mxu1 %vm3583_vm2, %v14905_v21  ;;  %v15000_v0 = vld [vmem:[#allocation2 + $0xa0] sm:$0xff]  ;;  %v4830_v18 = vld [vmem:[#allocation9 + $0x88] sm:$0xff] }
 0x38f   : > { %v3582_v26 = vmax.f32 %v3554_v19, 0.0  ;;  %11452 = vmatprep.mubr.msk.f32.mxu1 %vm3583_vm2, %v14907_v22  ;;  %v4829_v15 = vld [vmem:[#allocation9 + $0x80] sm:$0xff]  ;;  %v15015_v19 = vld [vmem:[#allocation2 + $0x12] sm:$0xff] }
 0x390   : > { %v3581_v27 = vmax.f32 %v3553_v23, 0.0  ;;  %v3664_v46 = vld [vmem:[#allocation2 + $0xb9] sm:$0xf]  ;;  %v12526_v20 = vpack.c.bf16 %v4830_v18, %v4829_v15  ;;  %v15071_v38 = vld [vmem:[#allocation2 + $0x82] sm:$0xff]  ;;  %v15075_v7 = vld [vmem:[#allocation2 + $0x8a] sm:$0xff] }
 0x391   : > { %3612 = vst.msk [vmem:[#allocation2 + $0xd8] sm:$0x3f] %vm3611_vm3, %v3582_v26  ;;  %v14915_v28 = vld [vmem:[#allocation2 + $0xa9] sm:$0xff]  ;;  %v14917_v29 = vld [vmem:[#allocation2 + $0xb1] sm:$0xff]  ;;  %v15019_v23 = vld [vmem:[#allocation2 + $0x1a] sm:$0xff] }
 0x392   : > { %3610 = vst.msk [vmem:[#allocation2 + $0xd0] sm:$0xff] %vm3583_vm2, %v3581_v27  ;;  %11453 = vmatmul.mubr.msk.f32.gmra.mrb[20].mxu1 %vm3583_vm2, %v14915_v28  ;;  %v15008_v35 = vld [vmem:[#allocation2 + $0xb0] sm:$0xff]  ;;  %v3636_v37 = vld [vmem:[#allocation2 + $0xb8] sm:$0xf]  ;;  %v15023_v26 = vld [vmem:[#allocation2 + $0x22] sm:$0xff] }
 0x393   : > { %11455 = vmatprep.mubr.msk.f32.mxu1 %vm3583_vm2, %v14917_v29  ;;  %v15027_v27 = vld [vmem:[#allocation2 + $0x2a] sm:$0xff]  ;;  %15890 = vst [vmem:[#allocation31_spill] sm:$0xff] %v15071_v38  ;;  %15891 = vst [vmem:[#allocation32_spill] sm:$0xff] %v15075_v7  ;;  %v15095_v18 = vld [vmem:[#allocation2 + $0xb2] sm:$0xff] }
 0x394   : > { %v15091_v15 = vld [vmem:[#allocation2 + $0xaa] sm:$0xff]  ;;  %15896 = vst [vmem:[#allocation23_spill] sm:$0xff] %v15095_v18 }
 0x395   : > { %15895 = vst [vmem:[#allocation22_spill] sm:$0xff] %v15091_v15 }
 0x396   : > { %11456 = vmatmul.mubr.msk.f32.gmra.mrb[22].mxu1 %vm3583_vm2, %v3664_v46  ;;  %v15031_v46 = vld [vmem:[#allocation2 + $0x32] sm:$0xff] }
 0x397   : > { %11466 = vmatprep.mubr.msk.f32.mxu1 %vm3583_vm2, %v3613_v43  ;;  %v15043_v43 = vld [vmem:[#allocation2 + $0x4a] sm:$0xff] }
 0x39a   : > { %11467 = vmatmul.mubr.msk.f32.vlgmr.msra.gmra.mrb[0].mxu1 %vm3583_vm2, %v3614_v45  ;;  %v15051_v45 = vld [vmem:[#allocation2 + $0x5a] sm:$0xff] }
 0x39b   : > { %11469 = vmatprep.mubr.msk.f32.mxu1 %vm3583_vm2, %v14927_v49  ;;  %12513 = vmatpush3.bf16.msra.mxu1 %v14804_v13  ;;  %v14944_v13 = vld [vmem:[#allocation2 + $0x30] sm:$0xff] }
 0x39c   : > { %12515 = vmatprep.subr.bf16.mxu1 %v12514_v44 }
 0x39e   : > { %11470 = vmatmul.mubr.msk.f32.gmra.mrb[2].mxu1 %vm3583_vm2, %v14932_v53 }
 0x39f   : > { %11472 = vmatprep.mubr.msk.f32.mxu1 %vm3583_vm2, %v14936_v54  ;;  %12517 = vmatpush3.bf16.msra.mxu1 %v12514_v44  ;;  %v15047_v44 = vld [vmem:[#allocation2 + $0x52] sm:$0xff] }
 0x3a0   : > { %12519 = vmatprep.subr.bf16.mxu1 %v12518_v52 }
 0x3a2   : > { %11473 = vmatmul.mubr.msk.f32.gmra.mrb[4].mxu1 %vm3583_vm2, %v14940_v55 }
 0x3a3   : > { %11475 = vmatprep.mubr.msk.f32.mxu1 %vm3583_vm2, %v14944_v13 }
 0x3a6   : > { %11476 = vmatmul.mubr.msk.f32.gmra.mrb[6].mxu1 %vm3583_vm2, %v14948_v56 }
 0x3a7   : > { %11478 = vmatprep.mubr.msk.f32.mxu1 %vm3583_vm2, %v14952_v57 }
 0x3aa   : > { %11479 = vmatmul.mubr.msk.f32.gmra.mrb[8].mxu1 %vm3583_vm2, %v14956_v2 }
 0x3ab   : > { %11481 = vmatprep.mubr.msk.f32.mxu1 %vm3583_vm2, %v14960_v3 }
 0x3ae   : > { %11482 = vmatmul.mubr.msk.f32.gmra.mrb[10].mxu1 %vm3583_vm2, %v14964_v4 }
 0x3af   : > { %11484 = vmatprep.mubr.msk.f32.mxu1 %vm3583_vm2, %v14968_v10 }
 0x3b2   : > { %11485 = vmatmul.mubr.msk.f32.gmra.mrb[12].mxu1 %vm3583_vm2, %v14972_v31 }
 0x3b3   : > { %11487 = vmatprep.mubr.msk.f32.mxu1 %vm3583_vm2, %v14976_v32 }
 0x3b6   : > { %11488 = vmatmul.mubr.msk.f32.gmra.mrb[14].mxu1 %vm3583_vm2, %v14980_v62 }
 0x3b7   : > { %11490 = vmatprep.mubr.msk.f32.mxu1 %vm3583_vm2, %v14984_v34 }
 0x3ba   : > { %11491 = vmatmul.mubr.msk.f32.gmra.mrb[16].mxu1 %vm3583_vm2, %v14988_v36 }
 0x3bb   : > { %11493 = vmatprep.mubr.msk.f32.mxu1 %vm3583_vm2, %v14992_v5 }
 0x3be   : > { %11494 = vmatmul.mubr.msk.f32.gmra.mrb[18].mxu1 %vm3583_vm2, %v14996_v6 }
 0x3bf   : > { %11496 = vmatprep.mubr.msk.f32.mxu1 %vm3583_vm2, %v15000_v0 }
 0x3c2   : > { %11497 = vmatmul.mubr.msk.f32.gmra.mrb[20].mxu1 %vm3583_vm2, %v15004_v33 }
 0x3c3   : > { %11499 = vmatprep.mubr.msk.f32.mxu1 %vm3583_vm2, %v15008_v35 }
 0x3c6   : > { %11500 = vmatmul.mubr.msk.f32.gmra.mrb[22].mxu1 %vm3583_vm2, %v3636_v37  ;;  %v15067_v37 = vld [vmem:[#allocation2 + $0x7a] sm:$0xff] }
 0x3c7   : > { %11510 = vmatprep.mubr.msk.f32.mxu1 %vm3583_vm2, %v4184_v8  ;;  %15889 = vst [vmem:[#allocation30_spill] sm:$0xff] %v15067_v37  ;;  %v15079_v8 = vld [vmem:[#allocation2 + $0x92] sm:$0xff] }
 0x3c8   : > { %15892 = vst [vmem:[#allocation35_spill] sm:$0xff] %v15079_v8 }
 0x3ca   : > { %11511 = vmatmul.mubr.msk.f32.vlgmr.msra.gmra.mrb[0].mxu1 %vm3583_vm2, %v4185_v14  ;;  %v15087_v14 = vld [vmem:[#allocation2 + $0xa2] sm:$0xff] }
 0x3cb   : > { %11513 = vmatprep.mubr.msk.f32.mxu1 %vm3583_vm2, %v15015_v19  ;;  %12521 = vmatpush3.bf16.msra.mxu1 %v12518_v52  ;;  %v15063_v52 = vld [vmem:[#allocation2 + $0x72] sm:$0xff]  ;;  %15894 = vst [vmem:[#allocation21_spill] sm:$0xff] %v15087_v14 }
 0x3cc   : > { %12523 = vmatprep.subr.bf16.mxu1 %v12522_v12 }
 0x3ce   : > { %11514 = vmatmul.mubr.msk.f32.gmra.mrb[2].mxu1 %vm3583_vm2, %v15019_v23 }
 0x3cf   : > { %11516 = vmatprep.mubr.msk.f32.mxu1 %vm3583_vm2, %v15023_v26  ;;  %12525 = vmatpush3.bf16.msra.mxu1 %v12522_v12  ;;  %v15083_v12 = vld [vmem:[#allocation2 + $0x9a] sm:$0xff] }
 0x3d0   : > { %12527 = vmatprep.subr.bf16.mxu1 %v12526_v20  ;;  %15893 = vst [vmem:[#allocation20_spill] sm:$0xff] %v15083_v12 }
 0x3d2   : > { %11517 = vmatmul.mubr.msk.f32.gmra.mrb[4].mxu1 %vm3583_vm2, %v15027_v27 }
 0x3d3   : > { %11519 = vmatprep.mubr.msk.f32.mxu1 %vm3583_vm2, %v15031_v46 }
 0x3d6   : > { %11520 = vmatmul.mubr.msk.f32.gmra.mrb[6].mxu1 %vm3583_vm2, %v15035_v30 }
 0x3d7   : > { %11522 = vmatprep.mubr.msk.f32.mxu1 %vm3583_vm2, %v15039_v40 }
 0x3da   : > { %11523 = vmatmul.mubr.msk.f32.gmra.mrb[8].mxu1 %vm3583_vm2, %v15043_v43 }
 0x3db   : > { %11525 = vmatprep.mubr.msk.f32.mxu1 %vm3583_vm2, %v15047_v44 }
 0x3de   : > { %11526 = vmatmul.mubr.msk.f32.gmra.mrb[10].mxu1 %vm3583_vm2, %v15051_v45 }
 0x3df   : > { %11528 = vmatprep.mubr.msk.f32.mxu1 %vm3583_vm2, %v15055_v47 }
 0x3e2   : > { %11529 = vmatmul.mubr.msk.f32.gmra.mrb[12].mxu1 %vm3583_vm2, %v15059_v48 }
 0x3e3   : > { %11531 = vmatprep.mubr.msk.f32.mxu1 %vm3583_vm2, %v15063_v52 }
 0x3e6   : > { %11532 = vmatmul.mubr.msk.f32.gmra.mrb[14].mxu1 %vm3583_vm2, %v15067_v37  ;;  %v5140_v37 = vld [vmem:[#allocation9 + $0xa8] sm:$0xff] }
 0x3e7   : > { %11534 = vmatprep.mubr.msk.f32.mxu1 %vm3583_vm2, %v15071_v38  ;;  %v4832_v38 = vld [vmem:[#allocation9 + $0x98] sm:$0xff] }
 0x3ea   : > { %11535 = vmatmul.mubr.msk.f32.gmra.mrb[16].mxu1 %vm3583_vm2, %v15075_v7  ;;  %v4831_v7 = vld [vmem:[#allocation9 + $0x90] sm:$0xff] }
 0x3eb   : > { %11537 = vmatprep.mubr.msk.f32.mxu1 %vm3583_vm2, %v15079_v8  ;;  %v4207_v8 = vld [vmem:[#allocation2 + $0xba] sm:$0xf] }
 0x3ee   : > { %11538 = vmatmul.mubr.msk.f32.gmra.mrb[18].mxu1 %vm3583_vm2, %v15083_v12  ;;  %v12530_v12 = vpack.c.bf16 %v4832_v38, %v4831_v7  ;;  %v5142_v38 = vld [vmem:[#allocation9 + $0xb8] sm:$0xff] }
 0x3ef   : > { %11540 = vmatprep.mubr.msk.f32.mxu1 %vm3583_vm2, %v15087_v14  ;;  %v5139_v14 = vld [vmem:[#allocation9 + $0xa0] sm:$0xff] }
 0x3f2   : > { %11541 = vmatmul.mubr.msk.f32.gmra.mrb[20].mxu1 %vm3583_vm2, %v15091_v15 }
 0x3f3   : > { %11543 = vmatprep.mubr.msk.f32.mxu1 %vm3583_vm2, %v15095_v18  ;;  %v12534_v18 = vpack.c.bf16 %v5140_v37, %v5139_v14  ;;  %v5141_v37 = vld [vmem:[#allocation9 + $0xb0] sm:$0xff] }
 0x3f4   : > { %v12538_v7 = vpack.c.bf16 %v5142_v38, %v5141_v37  ;;  %v5452_v37 = vld [vmem:[#allocation9 + $0xd8] sm:$0xff] }
 0x3f6   : > { %11544 = vmatmul.mubr.msk.f32.gmra.mrb[22].mxu1 %vm3583_vm2, %v4207_v8  ;;  %v5449_v8 = vld [vmem:[#allocation9 + $0xc0] sm:$0xff] }
 0x3f7   : > { %11554 = vmatprep.mubr.msk.f32.mxu1 %vm3583_vm2, %v14927_v49  ;;  %v15142_v49 = vld [vmem:[#allocation2 + $0xb8] sm:$0xff] }
 0x3fa   : > { %11555 = vmatmul.mubr.msk.f32.vlgmr.msra.gmra.mrb[0].mxu1 %vm3583_vm2, %v14932_v53  ;;  %v15146_v53 = vld [vmem:[#allocation2 + $0xc0] sm:$0xff] }
 0x3fb   : > { %11557 = vmatprep.mubr.msk.f32.mxu1 %vm3583_vm2, %v14936_v54  ;;  %12529 = vmatpush3.bf16.msra.mxu1 %v12526_v20  ;;  %v4517_v20 = vld [vmem:[#allocation2 + $0xc8] sm:$0xf] }
 0x3fc   : > { %12531 = vmatprep.subr.bf16.mxu1 %v12530_v12 }
 0x3fe   : > { %11558 = vmatmul.mubr.msk.f32.gmra.mrb[2].mxu1 %vm3583_vm2, %v14940_v55 }
 0x3ff   : > { %11560 = vmatprep.mubr.msk.f32.mxu1 %vm3583_vm2, %v14944_v13  ;;  %12533 = vmatpush3.bf16.msra.mxu1 %v12530_v12  ;;  %v5450_v12 = vld [vmem:[#allocation9 + $0xc8] sm:$0xff] }
 0x400   : > { %12535 = vmatprep.subr.bf16.mxu1 %v12534_v18  ;;  %v12542_v14 = vpack.c.bf16 %v5450_v12, %v5449_v8  ;;  %v5760_v8 = vld [vmem:[#allocation9 + $0xe8] sm:$0xff] }
 0x402   : > { %11561 = vmatmul.mubr.msk.f32.gmra.mrb[4].mxu1 %vm3583_vm2, %v14948_v56 }
 0x403   : > { %11563 = vmatprep.mubr.msk.f32.mxu1 %vm3583_vm2, %v14952_v57 }
 0x406   : > { %11564 = vmatmul.mubr.msk.f32.gmra.mrb[6].mxu1 %vm3583_vm2, %v14956_v2 }
 0x407   : > { %11566 = vmatprep.mubr.msk.f32.mxu1 %vm3583_vm2, %v14960_v3 }
 0x40a   : > { %11567 = vmatmul.mubr.msk.f32.gmra.mrb[8].mxu1 %vm3583_vm2, %v14964_v4 }
 0x40b   : > { %11569 = vmatprep.mubr.msk.f32.mxu1 %vm3583_vm2, %v14968_v10 }
 0x40e   : > { %11570 = vmatmul.mubr.msk.f32.gmra.mrb[10].mxu1 %vm3583_vm2, %v14972_v31 }
 0x40f   : > { %11572 = vmatprep.mubr.msk.f32.mxu1 %vm3583_vm2, %v14976_v32 }
 0x412   : > { %11573 = vmatmul.mubr.msk.f32.gmra.mrb[12].mxu1 %vm3583_vm2, %v14980_v62 }
 0x413   : > { %11575 = vmatprep.mubr.msk.f32.mxu1 %vm3583_vm2, %v14984_v34 }
 0x416   : > { %11576 = vmatmul.mubr.msk.f32.gmra.mrb[14].mxu1 %vm3583_vm2, %v14988_v36 }
 0x417   : > { %11578 = vmatprep.mubr.msk.f32.mxu1 %vm3583_vm2, %v14992_v5 }
 0x41a   : > { %11579 = vmatmul.mubr.msk.f32.gmra.mrb[16].mxu1 %vm3583_vm2, %v14996_v6 }
 0x41b   : > { %11581 = vmatprep.mubr.msk.f32.mxu1 %vm3583_vm2, %v15000_v0 }
 0x41e   : > { %11582 = vmatmul.mubr.msk.f32.gmra.mrb[18].mxu1 %vm3583_vm2, %v15004_v33 }
 0x41f   : > { %11584 = vmatprep.mubr.msk.f32.mxu1 %vm3583_vm2, %v15008_v35 }
 0x422   : > { %11585 = vmatmul.mubr.msk.f32.gmra.mrb[20].mxu1 %vm3583_vm2, %v15142_v49 }
 0x423   : > { %11587 = vmatprep.mubr.msk.f32.mxu1 %vm3583_vm2, %v15146_v53 }
 0x426   : > { %11588 = vmatmul.mubr.msk.f32.gmra.mrb[22].mxu1 %vm3583_vm2, %v4517_v20  ;;  %v5451_v20 = vld [vmem:[#allocation9 + $0xd0] sm:$0xff] }
 0x427   : > { %11598 = vmatprep.mubr.msk.f32.mxu1 %vm3583_vm2, %v14797_v39  ;;  %v15193_v39 = vld [vmem:[#allocation2 + $0xb9] sm:$0xff]  ;;  %v12546_v38 = vpack.c.bf16 %v5452_v37, %v5451_v20  ;;  %v15901_v20 = vld [vmem:[#allocation20_spill] sm:$0xff] }
 0x428   : > { %v15902_v37 = vld [vmem:[#allocation21_spill] sm:$0xff] }
 0x42a   : > { %11599 = vmatmul.mubr.msk.f32.vlgmr.msra.gmra.mrb[0].mxu1 %vm3583_vm2, %v14808_v16  ;;  %v15197_v16 = vld [vmem:[#allocation2 + $0xc1] sm:$0xff] }
 0x42b   : > { %11601 = vmatprep.mubr.msk.f32.mxu1 %vm3583_vm2, %v14810_v17  ;;  %12537 = vmatpush3.bf16.msra.mxu1 %v12534_v18  ;;  %v4827_v18 = vld [vmem:[#allocation2 + $0xc9] sm:$0xf] }
 0x42c   : > { %12539 = vmatprep.subr.bf16.mxu1 %v12538_v7 }
 0x42e   : > { %11602 = vmatmul.mubr.msk.f32.gmra.mrb[2].mxu1 %vm3583_vm2, %v14821_v24 }
 0x42f   : > { %11604 = vmatprep.mubr.msk.f32.mxu1 %vm3583_vm2, %v14823_v25  ;;  %12541 = vmatpush3.bf16.msra.mxu1 %v12538_v7  ;;  %v5759_v7 = vld [vmem:[#allocation9 + $0xe0] sm:$0xff] }
 0x430   : > { %12543 = vmatprep.subr.bf16.mxu1 %v12542_v14  ;;  %v12550_v12 = vpack.c.bf16 %v5760_v8, %v5759_v7  ;;  %v15244_v7 = vld [vmem:[#allocation2 + $0xba] sm:$0xff]  ;;  %v15248_v8 = vld [vmem:[#allocation2 + $0xc2] sm:$0xff] }
 0x431   : > { %15904 = vst [vmem:[#allocation24_spill] sm:$0xff] %v15248_v8 }
 0x432   : > { %11605 = vmatmul.mubr.msk.f32.gmra.mrb[4].mxu1 %vm3583_vm2, %v14833_v41 }
 0x433   : > { %11607 = vmatprep.mubr.msk.f32.mxu1 %vm3583_vm2, %v14835_v42 }
 0x436   : > { %11608 = vmatmul.mubr.msk.f32.gmra.mrb[6].mxu1 %vm3583_vm2, %v14845_v50 }
 0x437   : > { %11610 = vmatprep.mubr.msk.f32.mxu1 %vm3583_vm2, %v14847_v51 }
 0x43a   : > { %11611 = vmatmul.mubr.msk.f32.gmra.mrb[8].mxu1 %vm3583_vm2, %v14857_v58 }
 0x43b   : > { %11613 = vmatprep.mubr.msk.f32.mxu1 %vm3583_vm2, %v14859_v59 }
 0x43e   : > { %11614 = vmatmul.mubr.msk.f32.gmra.mrb[10].mxu1 %vm3583_vm2, %v14869_v60 }
 0x43f   : > { %11616 = vmatprep.mubr.msk.f32.mxu1 %vm3583_vm2, %v14871_v61 }
 0x442   : > { %11617 = vmatmul.mubr.msk.f32.gmra.mrb[12].mxu1 %vm3583_vm2, %v14881_v63 }
 0x443   : > { %11619 = vmatprep.mubr.msk.f32.mxu1 %vm3583_vm2, %v14883_v1 }
 0x446   : > { %11620 = vmatmul.mubr.msk.f32.gmra.mrb[14].mxu1 %vm3583_vm2, %v14893_v9 }
 0x447   : > { %11622 = vmatprep.mubr.msk.f32.mxu1 %vm3583_vm2, %v14895_v11 }
 0x44a   : > { %11623 = vmatmul.mubr.msk.f32.gmra.mrb[16].mxu1 %vm3583_vm2, %v14905_v21 }
 0x44b   : > { %11625 = vmatprep.mubr.msk.f32.mxu1 %vm3583_vm2, %v14907_v22 }
 0x44e   : > { %11626 = vmatmul.mubr.msk.f32.gmra.mrb[18].mxu1 %vm3583_vm2, %v14915_v28 }
 0x44f   : > { %11628 = vmatprep.mubr.msk.f32.mxu1 %vm3583_vm2, %v14917_v29 }
 0x452   : > { %11629 = vmatmul.mubr.msk.f32.gmra.mrb[20].mxu1 %vm3583_vm2, %v15193_v39 }
 0x453   : > { %11631 = vmatprep.mubr.msk.f32.mxu1 %vm3583_vm2, %v15197_v16 }
 0x456   : > { %11632 = vmatmul.mubr.msk.f32.gmra.mrb[22].mxu1 %vm3583_vm2, %v4827_v18  ;;  %v15900_v18 = vld [vmem:[#allocation35_spill] sm:$0xff] }
 0x457   : > { %11642 = vmatprep.mubr.msk.f32.mxu1 %vm3583_vm2, %v15015_v19  ;;  %v15897_v19 = vld [vmem:[#allocation30_spill] sm:$0xff] }
 0x45a   : > { %11643 = vmatmul.mubr.msk.f32.vlgmr.msra.gmra.mrb[0].mxu1 %vm3583_vm2, %v15019_v23  ;;  %v15898_v23 = vld [vmem:[#allocation31_spill] sm:$0xff] }
 0x45b   : > { %11645 = vmatprep.mubr.msk.f32.mxu1 %vm3583_vm2, %v15023_v26  ;;  %12545 = vmatpush3.bf16.msra.mxu1 %v12542_v14  ;;  %v15899_v14 = vld [vmem:[#allocation32_spill] sm:$0xff] }
 0x45c   : > { %12547 = vmatprep.subr.bf16.mxu1 %v12546_v38 }
 0x45e   : > { %11646 = vmatmul.mubr.msk.f32.gmra.mrb[2].mxu1 %vm3583_vm2, %v15027_v27 }
 0x45f   : > { %11648 = vmatprep.mubr.msk.f32.mxu1 %vm3583_vm2, %v15031_v46  ;;  %12549 = vmatpush3.bf16.msra.mxu1 %v12546_v38  ;;  %v15903_v38 = vld [vmem:[#allocation23_spill] sm:$0xff] }
 0x460   : > { %12551 = vmatprep.subr.bf16.mxu1 %v12550_v12 }
 0x462   : > { %11649 = vmatmul.mubr.msk.f32.gmra.mrb[4].mxu1 %vm3583_vm2, %v15035_v30 }
 0x463   : > { %11651 = vmatprep.mubr.msk.f32.mxu1 %vm3583_vm2, %v15039_v40 }
 0x466   : > { %11652 = vmatmul.mubr.msk.f32.gmra.mrb[6].mxu1 %vm3583_vm2, %v15043_v43 }
 0x467   : > { %11654 = vmatprep.mubr.msk.f32.mxu1 %vm3583_vm2, %v15047_v44 }
 0x46a   : > { %11655 = vmatmul.mubr.msk.f32.gmra.mrb[8].mxu1 %vm3583_vm2, %v15051_v45 }
 0x46b   : > { %11657 = vmatprep.mubr.msk.f32.mxu1 %vm3583_vm2, %v15055_v47 }
 0x46e   : > { %11658 = vmatmul.mubr.msk.f32.gmra.mrb[10].mxu1 %vm3583_vm2, %v15059_v48 }
 0x46f   : > { %11660 = vmatprep.mubr.msk.f32.mxu1 %vm3583_vm2, %v15063_v52 }
 0x472   : > { %11661 = vmatmul.mubr.msk.f32.gmra.mrb[12].mxu1 %vm3583_vm2, %v15897_v19 }
 0x473   : > { %11663 = vmatprep.mubr.msk.f32.mxu1 %vm3583_vm2, %v15898_v23 }
 0x476   : > { %11664 = vmatmul.mubr.msk.f32.gmra.mrb[14].mxu1 %vm3583_vm2, %v15899_v14  ;;  %v5762_v14 = vld [vmem:[#allocation9 + $0xf8] sm:$0xff] }
 0x477   : > { %11666 = vmatprep.mubr.msk.f32.mxu1 %vm3583_vm2, %v15900_v18  ;;  %v5761_v18 = vld [vmem:[#allocation9 + $0xf0] sm:$0xff] }
 0x47a   : > { %11667 = vmatmul.mubr.msk.f32.gmra.mrb[16].mxu1 %vm3583_vm2, %v15901_v20  ;;  %v5137_v20 = vld [vmem:[#allocation2 + $0xca] sm:$0xf] }
 0x47b   : > { %11669 = vmatprep.mubr.msk.f32.mxu1 %vm3583_vm2, %v15902_v37  ;;  %v6070_v37 = vld [vmem:[#allocation9 + $0x108] sm:$0xff] }
 0x47e   : > { %11670 = vmatmul.mubr.msk.f32.gmra.mrb[18].mxu1 %vm3583_vm2, %v15091_v15  ;;  %v12554_v15 = vpack.c.bf16 %v5762_v14, %v5761_v18 }
 0x47f   : > { %11672 = vmatprep.mubr.msk.f32.mxu1 %vm3583_vm2, %v15903_v38  ;;  %v6069_v38 = vld [vmem:[#allocation9 + $0x100] sm:$0xff] }
 0x482   : > { %11673 = vmatmul.mubr.msk.f32.gmra.mrb[20].mxu1 %vm3583_vm2, %v15244_v7 }
 0x483   : > { %11675 = vmatprep.mubr.msk.f32.mxu1 %vm3583_vm2, %v15248_v8  ;;  %v12558_v8 = vpack.c.bf16 %v6070_v37, %v6069_v38 }
 0x486   : > { %11676 = vmatmul.mubr.msk.f32.gmra.mrb[22].mxu1 %vm3583_vm2, %v5137_v20 }
 0x487   : > { %11686 = vmatprep.mubr.msk.f32.mxu1 %vm3583_vm2, %v14936_v54  ;;  %v13735_v54 = vmov 0.0|0.0  }
 0x488   : > { %12626 = vmatprep.subr.bf16.mxu0 %v13735_v54 }
 0x48a   : > { %11687 = vmatmul.mubr.msk.f32.vlgmr.msra.gmra.mrb[0].mxu1 %vm3583_vm2, %v14940_v55  ;;  %v5445_v55 = vld [vmem:[#allocation2 + $0xc8] sm:$0xff] }
 0x48b   : > { %11689 = vmatprep.mubr.msk.f32.mxu1 %vm3583_vm2, %v14944_v13  ;;  %12553 = vmatpush3.bf16.msra.mxu1 %v12550_v12  ;;  %v5446_v13 = vld [vmem:[#allocation2 + $0xd0] sm:$0xff] }
 0x48c   : > { %12555 = vmatprep.subr.bf16.mxu1 %v12554_v15 }
 0x48e   : > { %11690 = vmatmul.mubr.msk.f32.gmra.mrb[2].mxu1 %vm3583_vm2, %v14948_v56  ;;  %v5447_v56 = vld [vmem:[#allocation2 + $0xd8] sm:$0xf] }
 0x48f   : > { %11692 = vmatprep.mubr.msk.f32.mxu1 %vm3583_vm2, %v14952_v57  ;;  %12557 = vmatpush3.bf16.msra.mxu1 %v12554_v15  ;;  %v6071_v57 = vld [vmem:[#allocation9 + $0x110] sm:$0xff] }
 0x490   : > { %12559 = vmatprep.subr.bf16.mxu1 %v12558_v8 }
 0x492   : > { %11693 = vmatmul.mubr.msk.f32.gmra.mrb[4].mxu1 %vm3583_vm2, %v14956_v2  ;;  %v6072_v2 = vld [vmem:[#allocation9 + $0x118] sm:$0xff] }
 0x493   : > { %11695 = vmatprep.mubr.msk.f32.mxu1 %vm3583_vm2, %v14960_v3  ;;  %v12562_v3 = vpack.c.bf16 %v6072_v2, %v6071_v57 }
 0x496   : > { %11696 = vmatmul.mubr.msk.f32.gmra.mrb[6].mxu1 %vm3583_vm2, %v14964_v4  ;;  %v6458_v4 = vld [vmem:[#allocation12 + $0x60] sm:$0xff] }
 0x497   : > { %11698 = vmatprep.mubr.msk.f32.mxu1 %vm3583_vm2, %v14968_v10  ;;  %v6459_v10 = vld [vmem:[#allocation12 + $0x68] sm:$0xff] }
 0x49a   : > { %11699 = vmatmul.mubr.msk.f32.gmra.mrb[8].mxu1 %vm3583_vm2, %v14972_v31  ;;  %v12573_v31 = vpack.c.bf16 %v6459_v10, %v6458_v4 }
 0x49b   : > { %11701 = vmatprep.mubr.msk.f32.mxu1 %vm3583_vm2, %v14976_v32  ;;  %v6862_v32 = vld [vmem:[#allocation12 + $0x140] sm:$0xff] }
 0x49e   : > { %11702 = vmatmul.mubr.msk.f32.gmra.mrb[10].mxu1 %vm3583_vm2, %v14980_v62  ;;  %v6863_v62 = vld [vmem:[#allocation12 + $0x148] sm:$0xff] }
 0x49f   : > { %11704 = vmatprep.mubr.msk.f32.mxu1 %vm3583_vm2, %v14984_v34  ;;  %v12627_v34 = vpack.c.bf16 %v6863_v62, %v6862_v32 }
 0x4a1   : > { %12628 = vmatpush3.bf16.msra.mxu0 %v12627_v34 }
 0x4a2   : > { %11705 = vmatmul.mubr.msk.f32.gmra.mrb[12].mxu1 %vm3583_vm2, %v14988_v36  ;;  %12629 = vmatprep.subr.bf16.mxu0 %v13735_v54  ;;  %v6864_v36 = vld [vmem:[#allocation12 + $0x150] sm:$0xff] }
 0x4a3   : > { %11707 = vmatprep.mubr.msk.f32.mxu1 %vm3583_vm2, %v14992_v5  ;;  %v6865_v5 = vld [vmem:[#allocation12 + $0x158] sm:$0xff] }
 0x4a6   : > { %11708 = vmatmul.mubr.msk.f32.gmra.mrb[14].mxu1 %vm3583_vm2, %v14996_v6  ;;  %v12630_v6 = vpack.c.bf16 %v6865_v5, %v6864_v36 }
 0x4a7   : > { %11710 = vmatprep.mubr.msk.f32.mxu1 %vm3583_vm2, %v15000_v0  ;;  %v6866_v0 = vld [vmem:[#allocation12 + $0x160] sm:$0xff] }
 0x4a8   : > { %12631 = vmatpush3.bf16.msra.mxu0 %v12630_v6 }
 0x4a9   : > { %12632 = vmatprep.subr.bf16.mxu0 %v13735_v54 }
 0x4aa   : > { %11711 = vmatmul.mubr.msk.f32.gmra.mrb[16].mxu1 %vm3583_vm2, %v15004_v33  ;;  %v6867_v33 = vld [vmem:[#allocation12 + $0x168] sm:$0xff] }
 0x4ab   : > { %11713 = vmatprep.mubr.msk.f32.mxu1 %vm3583_vm2, %v15008_v35  ;;  %v12633_v35 = vpack.c.bf16 %v6867_v33, %v6866_v0  ;;  %v7040_v0 = vld [vmem:[#allocation12 + $0x1d0] sm:$0xff]  ;;  %v7041_v33 = vld [vmem:[#allocation12 + $0x1d8] sm:$0xff] }
 0x4ad   : > { %12634 = vmatpush3.bf16.msra.mxu0 %v12633_v35 }
 0x4ae   : > { %11714 = vmatmul.mubr.msk.f32.gmra.mrb[18].mxu1 %vm3583_vm2, %v15142_v49  ;;  %12635 = vmatprep.subr.bf16.mxu0 %v13735_v54 }
 0x4af   : > { %11716 = vmatprep.mubr.msk.f32.mxu1 %vm3583_vm2, %v15146_v53 }
 0x4b2   : > { %11717 = vmatmul.mubr.msk.f32.gmra.mrb[20].mxu1 %vm3583_vm2, %v5445_v55 }
 0x4b3   : > { %11719 = vmatprep.mubr.msk.f32.mxu1 %vm3583_vm2, %v5446_v13 }
 0x4b6   : > { %11720 = vmatmul.mubr.msk.f32.gmra.mrb[22].mxu1 %vm3583_vm2, %v5447_v56 }
 0x4b7   : > { %11730 = vmatprep.mubr.msk.f32.mxu1 %vm3583_vm2, %v14810_v17  ;;  %v5755_v17 = vld [vmem:[#allocation2 + $0xc9] sm:$0xff] }
 0x4ba   : > { %11731 = vmatmul.mubr.msk.f32.vlgmr.msra.gmra.mrb[0].mxu1 %vm3583_vm2, %v14821_v24  ;;  %v5756_v24 = vld [vmem:[#allocation2 + $0xd1] sm:$0xff] }
 0x4bb   : > { %11733 = vmatprep.mubr.msk.f32.mxu1 %vm3583_vm2, %v14823_v25  ;;  %12561 = vmatpush3.bf16.msra.mxu1 %v12558_v8  ;;  %v6454_v25 = vld [vmem:[#allocation12 + $0x40] sm:$0xff] }
 0x4bc   : > { %12563 = vmatprep.subr.bf16.mxu1 %v12562_v3 }
 0x4be   : > { %11734 = vmatmul.mubr.msk.f32.gmra.mrb[2].mxu1 %vm3583_vm2, %v14833_v41  ;;  %v6455_v41 = vld [vmem:[#allocation12 + $0x48] sm:$0xff] }
 0x4bf   : > { %11736 = vmatprep.mubr.msk.f32.mxu1 %vm3583_vm2, %v14835_v42  ;;  %12565 = vmatpush3.bf16.msra.mxu1 %v12562_v3  ;;  %v5757_v42 = vld [vmem:[#allocation2 + $0xd9] sm:$0xf] }
 0x4c0   : > { %12566 = vmatprep.subr.bf16.mxu1 %v13735_v54 }
 0x4c2   : > { %11737 = vmatmul.mubr.msk.f32.gmra.mrb[4].mxu1 %vm3583_vm2, %v14845_v50  ;;  %v12567_v50 = vpack.c.bf16 %v6455_v41, %v6454_v25 }
 0x4c3   : > { %11739 = vmatprep.mubr.msk.f32.mxu1 %vm3583_vm2, %v14847_v51  ;;  %v6456_v51 = vld [vmem:[#allocation12 + $0x50] sm:$0xff] }
 0x4c6   : > { %11740 = vmatmul.mubr.msk.f32.gmra.mrb[6].mxu1 %vm3583_vm2, %v14857_v58  ;;  %v6457_v58 = vld [vmem:[#allocation12 + $0x58] sm:$0xff] }
 0x4c7   : > { %11742 = vmatprep.mubr.msk.f32.mxu1 %vm3583_vm2, %v14859_v59  ;;  %v12570_v59 = vpack.c.bf16 %v6457_v58, %v6456_v51 }
 0x4ca   : > { %11743 = vmatmul.mubr.msk.f32.gmra.mrb[8].mxu1 %vm3583_vm2, %v14869_v60  ;;  %v15905_v60 = vld [vmem:[#allocation32_spill] sm:$0xff] }
 0x4cb   : > { %11745 = vmatprep.mubr.msk.f32.mxu1 %vm3583_vm2, %v14871_v61  ;;  %v15906_v61 = vld [vmem:[#allocation35_spill] sm:$0xff] }
 0x4ce   : > { %11746 = vmatmul.mubr.msk.f32.gmra.mrb[10].mxu1 %vm3583_vm2, %v14881_v63  ;;  %v15907_v63 = vld [vmem:[#allocation20_spill] sm:$0xff] }
 0x4cf   : > { %11748 = vmatprep.mubr.msk.f32.mxu1 %vm3583_vm2, %v14883_v1  ;;  %v15908_v1 = vld [vmem:[#allocation21_spill] sm:$0xff] }
 0x4d2   : > { %11749 = vmatmul.mubr.msk.f32.gmra.mrb[12].mxu1 %vm3583_vm2, %v14893_v9  ;;  %v15909_v9 = vld [vmem:[#allocation22_spill] sm:$0xff] }
 0x4d3   : > { %11751 = vmatprep.mubr.msk.f32.mxu1 %vm3583_vm2, %v14895_v11  ;;  %v15910_v11 = vld [vmem:[#allocation23_spill] sm:$0xff] }
 0x4d6   : > { %11752 = vmatmul.mubr.msk.f32.gmra.mrb[14].mxu1 %vm3583_vm2, %v14905_v21  ;;  %v15911_v21 = vld [vmem:[#allocation24_spill] sm:$0xff] }
 0x4d7   : > { %11754 = vmatprep.mubr.msk.f32.mxu1 %vm3583_vm2, %v14907_v22  ;;  %v6065_v22 = vld [vmem:[#allocation2 + $0xca] sm:$0xff] }
 0x4da   : > { %11755 = vmatmul.mubr.msk.f32.gmra.mrb[16].mxu1 %vm3583_vm2, %v14915_v28  ;;  %v6066_v28 = vld [vmem:[#allocation2 + $0xd2] sm:$0xff] }
 0x4db   : > { %11757 = vmatprep.mubr.msk.f32.mxu1 %vm3583_vm2, %v14917_v29  ;;  %v6067_v29 = vld [vmem:[#allocation2 + $0xda] sm:$0xf] }
 0x4de   : > { %11758 = vmatmul.mubr.msk.f32.gmra.mrb[18].mxu1 %vm3583_vm2, %v15193_v39 }
 0x4df   : > { %11760 = vmatprep.mubr.msk.f32.mxu1 %vm3583_vm2, %v15197_v16 }
 0x4e2   : > { %11761 = vmatmul.mubr.msk.f32.gmra.mrb[20].mxu1 %vm3583_vm2, %v5755_v17 }
 0x4e3   : > { %11763 = vmatprep.mubr.msk.f32.mxu1 %vm3583_vm2, %v5756_v24 }
 0x4e6   : > { %11764 = vmatmul.mubr.msk.f32.gmra.mrb[22].mxu1 %vm3583_vm2, %v5757_v42 }
 0x4e7   : > { %11774 = vmatprep.mubr.msk.f32.mxu1 %vm3583_vm2, %v15023_v26  ;;  %v6460_v26 = vld [vmem:[#allocation12 + $0x70] sm:$0xff] }
 0x4ea   : > { %11775 = vmatmul.mubr.msk.f32.vlgmr.msra.gmra.mrb[0].mxu1 %vm3583_vm2, %v15027_v27  ;;  %v6461_v27 = vld [vmem:[#allocation12 + $0x78] sm:$0xff] }
 0x4eb   : > { %11777 = vmatprep.mubr.msk.f32.mxu1 %vm3583_vm2, %v15031_v46  ;;  %12568 = vmatpush3.bf16.msra.mxu1 %v12567_v50  ;;  %v12576_v46 = vpack.c.bf16 %v6461_v27, %v6460_v26 }
 0x4ec   : > { %12569 = vmatprep.subr.bf16.mxu1 %v13735_v54 }
 0x4ee   : > { %11778 = vmatmul.mubr.msk.f32.gmra.mrb[2].mxu1 %vm3583_vm2, %v15035_v30  ;;  %v6868_v30 = vld [vmem:[#allocation12 + $0x170] sm:$0xff] }
 0x4ef   : > { %11780 = vmatprep.mubr.msk.f32.mxu1 %vm3583_vm2, %v15039_v40  ;;  %12571 = vmatpush3.bf16.msra.mxu1 %v12570_v59  ;;  %v6869_v40 = vld [vmem:[#allocation12 + $0x178] sm:$0xff] }
 0x4f0   : > { %12572 = vmatprep.subr.bf16.mxu1 %v13735_v54 }
 0x4f2   : > { %11781 = vmatmul.mubr.msk.f32.gmra.mrb[4].mxu1 %vm3583_vm2, %v15043_v43  ;;  %v12636_v43 = vpack.c.bf16 %v6869_v40, %v6868_v30  ;;  %v6448_v30 = vld [vmem:[#allocation12 + $0x18] sm:$0xff] }
 0x4f3   : > { %11783 = vmatprep.mubr.msk.f32.mxu1 %vm3583_vm2, %v15047_v44  ;;  %12574 = vmatpush3.bf16.msra.mxu1 %v12573_v31  ;;  %v13737_v44 = vmov 0.0  }
 0x4f4   : > { %12575 = vmatprep.subr.bf16.mxu1 %v13735_v54  ;;  %12637 = vmatpush3.bf16.msra.mxu0 %v12636_v43 }
 0x4f5   : > { %12650 = vmatprep.subr.bf16.mxu0 %v13735_v54  ;;  %11921 = vmatprep.mubr.msk.f32.mxu0 %vm13736_vm4, %v13737_v44 }
 0x4f6   : > { %11784 = vmatmul.mubr.msk.f32.gmra.mrb[6].mxu1 %vm3583_vm2, %v15051_v45  ;;  %v15402_v45 = vld [vmem:[#allocation10] ss:$0 sm:$0xff] }
 0x4f7   : > { %11786 = vmatprep.mubr.msk.f32.mxu1 %vm3583_vm2, %v15055_v47  ;;  %12577 = vmatpush3.bf16.msra.mxu1 %v12576_v46  ;;  %v6447_v46 = vld [vmem:[#allocation12 + $0x10] sm:$0xff] }
 0x4f8   : > { %12578 = vmatprep.subr.bf16.mxu1 %v13735_v54 }
 0x4fa   : > { %11787 = vmatmul.mubr.msk.f32.gmra.mrb[8].mxu1 %vm3583_vm2, %v15059_v48 }
 0x4fb   : > { %11789 = vmatprep.mubr.msk.f32.mxu1 %vm3583_vm2, %v15063_v52 }
 0x4fe   : > { %11790 = vmatmul.mubr.msk.f32.gmra.mrb[10].mxu1 %vm3583_vm2, %v15897_v19 }
 0x4ff   : > { %11792 = vmatprep.mubr.msk.f32.mxu1 %vm3583_vm2, %v15898_v23 }
 0x502   : > { %11793 = vmatmul.mubr.msk.f32.gmra.mrb[12].mxu1 %vm3583_vm2, %v15905_v60 }
 0x503   : > { %11795 = vmatprep.mubr.msk.f32.mxu1 %vm3583_vm2, %v15906_v61 }
 0x506   : > { %11796 = vmatmul.mubr.msk.f32.gmra.mrb[14].mxu1 %vm3583_vm2, %v15907_v63 }
 0x507   : > { %11798 = vmatprep.mubr.msk.f32.mxu1 %vm3583_vm2, %v15908_v1  ;;  %v7038_v1 = vld [vmem:[#allocation12 + $0x1c0] sm:$0xff] }
 0x50a   : > { %11799 = vmatmul.mubr.msk.f32.gmra.mrb[16].mxu1 %vm3583_vm2, %v15909_v9  ;;  %v7039_v9 = vld [vmem:[#allocation12 + $0x1c8] sm:$0xff] }
 0x50b   : > { %11801 = vmatprep.mubr.msk.f32.mxu1 %vm3583_vm2, %v15910_v11  ;;  %v12651_v62 = vpack.c.bf16 %v7039_v9, %v7038_v1  ;;  %v6609_v9 = vld [vmem:[#allocation12 + $0x80] sm:$0xff] }
 0x50e   : > { %11802 = vmatmul.mubr.msk.f32.gmra.mrb[18].mxu1 %vm3583_vm2, %v15244_v7 }
 0x50f   : > { %11804 = vmatprep.mubr.msk.f32.mxu1 %vm3583_vm2, %v15911_v21 }
 0x512   : > { %11805 = vmatmul.mubr.msk.f32.gmra.mrb[20].mxu1 %vm3583_vm2, %v6065_v22 }
 0x513   : > { %11807 = vmatprep.mubr.msk.f32.mxu1 %vm3583_vm2, %v6066_v28  ;;  %v6445_v28 = vld [vmem:[#allocation12] sm:$0xff] }
 0x516   : > { %11808 = vmatmul.mubr.msk.f32.gmra.mrb[22].mxu1 %vm3583_vm2, %v6067_v29  ;;  %v6446_v29 = vld [vmem:[#allocation12 + $0x8] sm:$0xff] }
 0x517   : > { %11826 = vmatprep.mubr.msk.f32.mxu1 %vm13736_vm4, %v13737_v44  ;;  %v12579_v6 = vpack.c.bf16 %v6446_v29, %v6445_v28 }
 0x5bd   : > { %v11776_v47 = vpop.f32.mrb[0].mxu1 }
 0x5be   : > { %v6362_v48 = vadd.f32 %v11776_v47, %v15402_v45  ;;  %v6211_v52 = vpop.f32.mrb[1].mxu1 }
 0x5bf   : > { %v6361_v15 = vadd.f32 %v15402_v45, %v6211_v52  ;;  %v12654_v52 = vpack.c.bf16 %v7041_v33, %v7040_v0  ;;  %v6611_v0 = vld [vmem:[#allocation12 + $0x90] sm:$0xff]  ;;  %v6612_v33 = vld [vmem:[#allocation12 + $0x98] sm:$0xff] }
 0x5c0   : > { %v6386_v49 = vmax.f32 %v6362_v48, 0.0 }
 0x5c1   : > { %v6385_v53 = vmax.f32 %v6361_v15, 0.0  ;;  %v11779_v39 = vpop.f32.mrb[2].mxu1 }
 0x5c2   : > { %6411 = vst.msk [vmem:[#allocation3 + $0x8] sm:$0xff] %vm6409_vm5, %v6386_v49  ;;  %v6364_v16 = vadd.f32 %v11779_v39, %v15402_v45  ;;  %v6221_v12 = vpop.f32.mrb[3].mxu1  ;;  %v7042_v39 = vld [vmem:[#allocation12 + $0x1e0] sm:$0xff] }
 0x5c3   : > { %6410 = vst.msk [vmem:[#allocation3] sm:$0xff] %vm6409_vm5, %v6385_v53  ;;  %v6363_v19 = vadd.f32 %v15402_v45, %v6221_v12  ;;  %v12582_v53 = vpack.c.bf16 %v6448_v30, %v6447_v46 }
 0x5c4   : > { %v6388_v23 = vmax.f32 %v6364_v16, 0.0  ;;  %v7043_v16 = vld [vmem:[#allocation12 + $0x1e8] sm:$0xff] }
 0x5c5   : > { %v6387_v14 = vmax.f32 %v6363_v19, 0.0  ;;  %v11782_v18 = vpop.f32.mrb[4].mxu1 }
 0x5c6   : > { %6413 = vst.msk [vmem:[#allocation3 + $0x18] sm:$0xff] %vm6409_vm5, %v6388_v23  ;;  %v6366_v20 = vadd.f32 %v11782_v18, %v15402_v45  ;;  %v6231_v37 = vpop.f32.mrb[5].mxu1  ;;  %v6450_v18 = vld [vmem:[#allocation12 + $0x28] sm:$0xff] }
 0x5c7   : > { %6412 = vst.msk [vmem:[#allocation3 + $0x10] sm:$0xff] %vm6409_vm5, %v6387_v14  ;;  %v6365_v38 = vadd.f32 %v15402_v45, %v6231_v37  ;;  %v6449_v14 = vld [vmem:[#allocation12 + $0x20] sm:$0xff] }
 0x5c8   : > { %v6390_v7 = vmax.f32 %v6366_v20, 0.0 }
 0x5c9   : > { %v6389_v8 = vmax.f32 %v6365_v38, 0.0  ;;  %v11785_v55 = vpop.f32.mrb[6].mxu1  ;;  %v6436_v24 = vld [vmem:[#allocation3 + $0x8] sm:$0xf] }
 0x5ca   : > { %6415 = vst.msk [vmem:[#allocation3 + $0x28] sm:$0xff] %vm6409_vm5, %v6390_v7  ;;  %v6368_v13 = vadd.f32 %v11785_v55, %v15402_v45  ;;  %v6241_v56 = vpop.f32.mrb[7].mxu1  ;;  %v6435_v51 = vld [vmem:[#allocation3] sm:$0xff]  ;;  %v12657_v7 = vpack.c.bf16 %v7043_v16, %v7042_v39  ;;  %v12585_v55 = vpack.c.bf16 %v6450_v18, %v6449_v14 }
 0x5cb   : > { %6414 = vst.msk [vmem:[#allocation3 + $0x20] sm:$0xff] %vm6409_vm5, %v6389_v8  ;;  %v6367_v57 = vadd.f32 %v15402_v45, %v6241_v56  ;;  %v7045_v56 = vld [vmem:[#allocation12 + $0x1f8] sm:$0xff]  ;;  %v7210_v14 = vld [vmem:[#allocation12 + $0x270] sm:$0xff] }
 0x5cc   : > { %v6392_v2 = vmax.f32 %v6368_v13, 0.0  ;;  %v7044_v13 = vld [vmem:[#allocation12 + $0x1f0] sm:$0xff]  ;;  %v7211_v18 = vld [vmem:[#allocation12 + $0x278] sm:$0xff] }
 0x5cd   : > { %v6391_v3 = vmax.f32 %v6367_v57, 0.0  ;;  %v11788_v17 = vpop.f32.mrb[8].mxu1  ;;  %v6438_v25 = vld [vmem:[#allocation3 + $0x18] sm:$0xf] }
 0x5ce   : > { %6417 = vst.msk [vmem:[#allocation3 + $0x38] sm:$0xff] %vm6409_vm5, %v6392_v2  ;;  %v6370_v41 = vadd.f32 %v11788_v17, %v15402_v45  ;;  %v6251_v42 = vpop.f32.mrb[9].mxu1  ;;  %v6440_v50 = vmax.f32 %v6436_v24, %v6438_v25  ;;  %v6437_v58 = vld [vmem:[#allocation3 + $0x10] sm:$0xff]  ;;  %v6451_v17 = vld [vmem:[#allocation12 + $0x30] sm:$0xff]  ;;  %v6452_v24 = vld [vmem:[#allocation12 + $0x38] sm:$0xff] }
 0x5cf   : > { %6416 = vst.msk [vmem:[#allocation3 + $0x30] sm:$0xff] %vm6409_vm5, %v6391_v3  ;;  %v6369_v59 = vadd.f32 %v15402_v45, %v6251_v42  ;;  %v6439_v60 = vmax.f32 %v6435_v51, %v6437_v58  ;;  %v12588_v58 = vpack.c.bf16 %v6452_v24, %v6451_v17  ;;  %v7376_v17 = vld [vmem:[#allocation12 + $0x2d0] sm:$0xff]  ;;  %v7377_v24 = vld [vmem:[#allocation12 + $0x2d8] sm:$0xff] }
 0x5d0   : > { %v6394_v61 = vmax.f32 %v6370_v41, 0.0  ;;  %v6775_v63 = vrot.slane %v6440_v50, 1 }
 0x5d1   : > { %v6393_v11 = vmax.f32 %v6369_v59, 0.0  ;;  %v11791_v21 = vpop.f32.mrb[10].mxu1  ;;  %v6442_v22 = vrot.slane %v6439_v60, 1 }
 0x5d2   : > { %6419 = vst.msk [vmem:[#allocation3 + $0x48] sm:$0xff] %vm6409_vm5, %v6394_v61  ;;  %v6372_v4 = vadd.f32 %v11791_v21, %v15402_v45  ;;  %v6261_v10 = vpop.f32.mrb[11].mxu1  ;;  %v15424_v31 = vmax.f32 %v6440_v50, %v6775_v63  ;;  %v6944_v15 = vld [vmem:[#allocation3 + $0x20] sm:$0xff]  ;;  %v12660_v50 = vpack.c.bf16 %v7045_v56, %v7044_v13  ;;  %v7205_v61 = vld [vmem:[#allocation12 + $0x248] sm:$0xff]  ;;  %v6692_v13 = vld [vmem:[#allocation12 + $0xc0] sm:$0xff] }
 0x5d3   : > { %6418 = vst.msk [vmem:[#allocation3 + $0x40] sm:$0xff] %vm6409_vm5, %v6393_v11  ;;  %v6371_v32 = vadd.f32 %v15402_v45, %v6261_v10  ;;  %v15428_v34 = vmax.f32 %v6439_v60, %v6442_v22  ;;  %v7204_v60 = vld [vmem:[#allocation12 + $0x240] sm:$0xff]  ;;  %v6610_v11 = vld [vmem:[#allocation12 + $0x88] sm:$0xff] }
 0x5d4   : > { %v6396_v36 = vmax.f32 %v6372_v4, 0.0  ;;  %v6870_v5 = vrot.slane %v15424_v31, 2  ;;  %v12675_v29 = vpack.c.bf16 %v7205_v61, %v7204_v60  ;;  %v6693_v56 = vld [vmem:[#allocation12 + $0xc8] sm:$0xff]  ;;  %v7378_v61 = vld [vmem:[#allocation12 + $0x2e0] sm:$0xff] }
 0x5d5   : > { %v6395_v35 = vmax.f32 %v6371_v32, 0.0  ;;  %v11794_v26 = vpop.f32.mrb[12].mxu1  ;;  %v6463_v27 = vrot.slane %v15428_v34, 2  ;;  %v12591_v32 = vpack.c.bf16 %v6610_v11, %v6609_v9  ;;  %v6696_v9 = vld [vmem:[#allocation12 + $0xe0] sm:$0xff]  ;;  %v6697_v11 = vld [vmem:[#allocation12 + $0xe8] sm:$0xff] }
 0x5d6   : > { %6421 = vst.msk [vmem:[#allocation3 + $0x58] sm:$0xff] %vm6409_vm5, %v6396_v36  ;;  %v6374_v40 = vadd.f32 %v11794_v26, %v15402_v45  ;;  %v6271_v43 = vpop.f32.mrb[13].mxu1  ;;  %11922 = vmatmul.mubr.msk.f32.vlgmr.msra.gmra.mrb[28].mxu0 %vm6409_vm5, %v6870_v5  ;;  %v6946_v47 = vld [vmem:[#allocation3 + $0x30] sm:$0xff]  ;;  %v7207_v36 = vld [vmem:[#allocation12 + $0x258] sm:$0xff] }
 0x5d7   : > { %6420 = vst.msk [vmem:[#allocation3 + $0x50] sm:$0xff] %vm6409_vm5, %v6395_v35  ;;  %v6373_v48 = vadd.f32 %v15402_v45, %v6271_v43  ;;  %12652 = vmatpush3.bf16.msra.mxu0 %v12651_v62  ;;  %11827 = vmatmul.mubr.msk.f32.vlgmr.msra.gmra.mrb[24].mxu1 %vm6409_vm5, %v6463_v27  ;;  %v6948_v12 = vmax.f32 %v6944_v15, %v6946_v47  ;;  %v7206_v62 = vld [vmem:[#allocation12 + $0x250] sm:$0xff]  ;;  %v7208_v43 = vld [vmem:[#allocation12 + $0x260] sm:$0xff]  ;;  %v7209_v47 = vld [vmem:[#allocation12 + $0x268] sm:$0xff] }
 0x5d8   : > { %v6398_v49 = vmax.f32 %v6374_v40, 0.0  ;;  %12580 = vmatpush3.bf16.msra.mxu1 %v12579_v6  ;;  %12653 = vmatprep.subr.bf16.mxu0 %v13735_v54  ;;  %v12678_v46 = vpack.c.bf16 %v7207_v36, %v7206_v62  ;;  %v12594_v40 = vpack.c.bf16 %v6612_v33, %v6611_v0  ;;  %v6613_v15 = vld [vmem:[#allocation12 + $0xa0] sm:$0xff]  ;;  %v7551_v0 = vld [vmem:[#allocation12 + $0x348] sm:$0xff] }
 0x5d9   : > { %v6397_v19 = vmax.f32 %v6373_v48, 0.0  ;;  %v11797_v23 = vpop.f32.mrb[14].mxu1  ;;  %12581 = vmatprep.subr.bf16.mxu1 %v13735_v54  ;;  %11959 = vmatprep.mubr.msk.f32.mxu0 %vm13736_vm4, %v13737_v44  ;;  %v6951_v57 = vrot.slane %v6948_v12, 1  ;;  %v6779_v33 = vld [vmem:[#allocation12 + $0x100] sm:$0xff] }
 0x5da   : > { %6423 = vst.msk [vmem:[#allocation3 + $0x68] sm:$0xff] %vm6409_vm5, %v6398_v49  ;;  %v6376_v20 = vadd.f32 %v11797_v23, %v15402_v45  ;;  %v6281_v37 = vpop.f32.mrb[15].mxu1  ;;  %11845 = vmatprep.mubr.msk.f32.mxu1 %vm13736_vm4, %v13737_v44  ;;  %v6614_v49 = vld [vmem:[#allocation12 + $0xa8] sm:$0xff] }
 0x5db   : > { %6422 = vst.msk [vmem:[#allocation3 + $0x60] sm:$0xff] %vm6409_vm5, %v6397_v19  ;;  %v6375_v38 = vadd.f32 %v15402_v45, %v6281_v37  ;;  %12655 = vmatpush3.bf16.msra.mxu0 %v12654_v52  ;;  %v15455_v59 = vmax.f32 %v6948_v12, %v6951_v57  ;;  %v12681_v12 = vpack.c.bf16 %v7209_v47, %v7208_v43  ;;  %v6615_v37 = vld [vmem:[#allocation12 + $0xb0] sm:$0xff]  ;;  %v6700_v43 = vrot.slane %v15428_v34, 6 }
 0x5dc   : > { %v6400_v8 = vmax.f32 %v6376_v20, 0.0  ;;  %12583 = vmatpush3.bf16.msra.mxu1 %v12582_v53  ;;  %12656 = vmatprep.subr.bf16.mxu0 %v13735_v54  ;;  %v12597_v23 = vpack.c.bf16 %v6614_v49, %v6613_v15  ;;  %v6781_v47 = vld [vmem:[#allocation12 + $0x110] sm:$0xff] }
 0x5dd   : > { %v6399_v2 = vmax.f32 %v6375_v38, 0.0  ;;  %v11800_v3 = vpop.f32.mrb[16].mxu1  ;;  %12584 = vmatprep.subr.bf16.mxu1 %v13735_v54  ;;  %v7046_v10 = vrot.slane %v15455_v59, 2  ;;  %v6616_v38 = vld [vmem:[#allocation12 + $0xb8] sm:$0xff] }
 0x5de   : > { %6425 = vst.msk [vmem:[#allocation3 + $0x78] sm:$0xff] %vm6409_vm5, %v6400_v8  ;;  %v6378_v25 = vadd.f32 %v11800_v3, %v15402_v45  ;;  %v6291_v41 = vpop.f32.mrb[17].mxu1  ;;  %v7374_v8 = vld [vmem:[#allocation12 + $0x2c0] sm:$0xff]  ;;  %v12603_v3 = vpack.c.bf16 %v6693_v56, %v6692_v13  ;;  %v7456_v49 = vld [vmem:[#allocation3 + $0x40] sm:$0xff]  ;;  %v7717_v56 = vld [vmem:[#allocation12 + $0x3c8] sm:$0xff] }
 0x5df   : > { %6424 = vst.msk [vmem:[#allocation3 + $0x70] sm:$0xff] %vm6409_vm5, %v6399_v2  ;;  %v6377_v42 = vadd.f32 %v15402_v45, %v6291_v41  ;;  %12658 = vmatpush3.bf16.msra.mxu0 %v12657_v7  ;;  %v12684_v7 = vpack.c.bf16 %v7211_v18, %v7210_v14  ;;  %v7212_v2 = vrot.slane %v15455_v59, 6  ;;  %v6694_v41 = vld [vmem:[#allocation12 + $0xd0] sm:$0xff]  ;;  %v7716_v13 = vld [vmem:[#allocation12 + $0x3c0] sm:$0xff] }
 0x5e0   : > { %v6402_v51 = vmax.f32 %v6378_v25, 0.0  ;;  %12586 = vmatpush3.bf16.msra.mxu1 %v12585_v55  ;;  %12659 = vmatprep.subr.bf16.mxu0 %v13735_v54  ;;  %v7375_v55 = vld [vmem:[#allocation12 + $0x2c8] sm:$0xff]  ;;  %v6617_v25 = vrot.slane %v15428_v34, 4  ;;  %v7556_v18 = vld [vmem:[#allocation12 + $0x370] sm:$0xff] }
 0x5e1   : > { %v6401_v63 = vmax.f32 %v6377_v42, 0.0  ;;  %v11803_v1 = vpop.f32.mrb[18].mxu1  ;;  %12587 = vmatprep.subr.bf16.mxu1 %v13735_v54  ;;  %v12699_v57 = vpack.c.bf16 %v7375_v55, %v7374_v8  ;;  %v6695_v42 = vld [vmem:[#allocation12 + $0xd8] sm:$0xff] }
 0x5e2   : > { %6427 = vst.msk [vmem:[#allocation3 + $0x88] sm:$0xff] %vm6409_vm5, %v6402_v51  ;;  %v6380_v21 = vadd.f32 %v11803_v1, %v15402_v45  ;;  %v6301_v22 = vpop.f32.mrb[19].mxu1  ;;  %v12702_v51 = vpack.c.bf16 %v7377_v24, %v7376_v17  ;;  %v12606_v60 = vpack.c.bf16 %v6695_v42, %v6694_v41  ;;  %v7719_v41 = vld [vmem:[#allocation12 + $0x3d8] sm:$0xff]  ;;  %v6957_v42 = vld [vmem:[#allocation12 + $0x190] sm:$0xff] }
 0x5e3   : > { %6426 = vst.msk [vmem:[#allocation3 + $0x80] sm:$0xff] %vm6409_vm5, %v6401_v63  ;;  %v6379_v28 = vadd.f32 %v15402_v45, %v6301_v22  ;;  %12661 = vmatpush3.bf16.msra.mxu0 %v12660_v50  ;;  %v6947_v50 = vld [vmem:[#allocation3 + $0x38] sm:$0xf]  ;;  %v12609_v22 = vpack.c.bf16 %v6697_v11, %v6696_v9 }
 0x5e4   : > { %v6404_v4 = vmax.f32 %v6380_v21, 0.0  ;;  %12589 = vmatpush3.bf16.msra.mxu1 %v12588_v58  ;;  %12674 = vmatprep.subr.bf16.mxu0 %v13735_v54  ;;  %v6945_v58 = vld [vmem:[#allocation3 + $0x28] sm:$0xf]  ;;  %v7379_v63 = vld [vmem:[#allocation12 + $0x2e8] sm:$0xff]  ;;  %v7722_v11 = vld [vmem:[#allocation12 + $0x3f0] sm:$0xff] }
 0x5e5   : > { %v6403_v5 = vmax.f32 %v6379_v28, 0.0  ;;  %v11806_v6 = vpop.f32.mrb[20].mxu1  ;;  %12590 = vmatprep.subr.bf16.mxu1 %v13735_v54  ;;  %v6949_v1 = vmax.f32 %v6945_v58, %v6947_v50  ;;  %v12705_v21 = vpack.c.bf16 %v7379_v63, %v7378_v61  ;;  %v7380_v28 = vld [vmem:[#allocation12 + $0x2f0] sm:$0xff]  ;;  %v6958_v50 = vld [vmem:[#allocation12 + $0x198] sm:$0xff]  ;;  %v7721_v61 = vld [vmem:[#allocation12 + $0x3e8] sm:$0xff] }
 0x5e6   : > { %6429 = vst.msk [vmem:[#allocation3 + $0x98] sm:$0xff] %vm6409_vm5, %v6404_v4  ;;  %v6382_v35 = vadd.f32 %v11806_v6, %v15402_v45  ;;  %11960 = vmatmul.mubr.msk.f32.vlgmr.msra.gmra.mrb[30].mxu0 %vm6409_vm5, %v7046_v10  ;;  %v6311_v26 = vpop.f32.mrb[21].mxu1  ;;  %v6698_v10 = vld [vmem:[#allocation12 + $0xf0] sm:$0xff]  ;;  %v7550_v6 = vld [vmem:[#allocation12 + $0x340] sm:$0xff]  ;;  %v12642_v58 = vpack.c.bf16 %v6958_v50, %v6957_v42 }
 0x5e7   : > { %6428 = vst.msk [vmem:[#allocation3 + $0x90] sm:$0xff] %vm6409_vm5, %v6403_v5  ;;  %v6381_v27 = vadd.f32 %v15402_v45, %v6311_v26  ;;  %11846 = vmatmul.mubr.msk.f32.vlgmr.msra.gmra.mrb[26].mxu1 %vm6409_vm5, %v15428_v34  ;;  %12676 = vmatpush3.bf16.msra.mxu0 %v12675_v29  ;;  %v7381_v29 = vld [vmem:[#allocation12 + $0x2f8] sm:$0xff]  ;;  %v7287_v4 = vrot.slane %v6949_v1, 1  ;;  %v12723_v26 = vpack.c.bf16 %v7551_v0, %v7550_v6  ;;  %v6783_v34 = vld [vmem:[#allocation12 + $0x120] sm:$0xff] }
 0x5e8   : > { %v6406_v30 = vmax.f32 %v6382_v35, 0.0  ;;  %12592 = vmatpush3.bf16.msra.mxu1 %v12591_v32  ;;  %12677 = vmatprep.subr.bf16.mxu0 %v13735_v54  ;;  %v6699_v32 = vld [vmem:[#allocation12 + $0xf8] sm:$0xff]  ;;  %v12708_v62 = vpack.c.bf16 %v7381_v29, %v7380_v28  ;;  %v6780_v35 = vld [vmem:[#allocation12 + $0x108] sm:$0xff]  ;;  %v6959_v63 = vld [vmem:[#allocation12 + $0x1a0] sm:$0xff] }
 0x5e9   : > { %v6405_v48 = vmax.f32 %v6381_v27, 0.0  ;;  %v11809_v52 = vpop.f32.mrb[22].mxu1  ;;  %12593 = vmatprep.subr.bf16.mxu1 %v13735_v54  ;;  %11997 = vmatprep.mubr.msk.f32.mxu0 %vm13736_vm4, %v13737_v44  ;;  %v12612_v36 = vpack.c.bf16 %v6699_v32, %v6698_v10  ;;  %v15502_v5 = vmax.f32 %v6949_v1, %v7287_v4  ;;  %v6960_v1 = vld [vmem:[#allocation12 + $0x1a8] sm:$0xff]  ;;  %v6962_v28 = vld [vmem:[#allocation12 + $0x1b8] sm:$0xff]  ;;  %v7886_v10 = vld [vmem:[#allocation12 + $0x440] sm:$0xff] }
 0x5ea   : > { %6431 = vst.msk [vmem:[#allocation3 + $0xa8] sm:$0xff] %vm6409_vm5, %v6406_v30  ;;  %v6384_v53 = vadd.f32 %v11809_v52, %v15402_v45  ;;  %v6321_v39 = vpop.f32.mrb[23].mxu1  ;;  %11864 = vmatprep.mubr.msk.f32.mxu1 %vm13736_vm4, %v13737_v44  ;;  %v7552_v30 = vld [vmem:[#allocation12 + $0x350] sm:$0xff]  ;;  %v7458_v52 = vld [vmem:[#allocation3 + $0x50] sm:$0xff]  ;;  %v12645_v9 = vpack.c.bf16 %v6960_v1, %v6959_v63 }
 0x5eb   : > { %6430 = vst.msk [vmem:[#allocation3 + $0xa0] sm:$0xff] %vm6409_vm5, %v6405_v48  ;;  %v6383_v16 = vadd.f32 %v15402_v45, %v6321_v39  ;;  %12679 = vmatpush3.bf16.msra.mxu0 %v12678_v46  ;;  %v12600_v45 = vpack.c.bf16 %v6616_v38, %v6615_v37  ;;  %v7382_v27 = vrot.slane %v15502_v5, 2  ;;  %v12615_v46 = vpack.c.bf16 %v6780_v35, %v6779_v33  ;;  %v6782_v48 = vld [vmem:[#allocation12 + $0x118] sm:$0xff]  ;;  %v7554_v39 = vld [vmem:[#allocation12 + $0x360] sm:$0xff]  ;;  %v6785_v38 = vld [vmem:[#allocation12 + $0x130] sm:$0xff] }
 0x5ec   : > { %v6408_v19 = vmax.f32 %v6384_v53, 0.0  ;;  %12595 = vmatpush3.bf16.msra.mxu1 %v12594_v40  ;;  %12680 = vmatprep.subr.bf16.mxu0 %v13735_v54  ;;  %v7553_v40 = vld [vmem:[#allocation12 + $0x358] sm:$0xff]  ;;  %v12618_v53 = vpack.c.bf16 %v6782_v48, %v6781_v47  ;;  %v7887_v32 = vld [vmem:[#allocation12 + $0x448] sm:$0xff]  ;;  %v7888_v35 = vld [vmem:[#allocation12 + $0x450] sm:$0xff] }
 0x5ed   : > { %v6407_v20 = vmax.f32 %v6383_v16, 0.0  ;;  %12596 = vmatprep.subr.bf16.mxu1 %v13735_v54  ;;  %v12726_v15 = vpack.c.bf16 %v7553_v40, %v7552_v30  ;;  %v7555_v16 = vld [vmem:[#allocation12 + $0x368] sm:$0xff]  ;;  %v12771_v6 = vpack.c.bf16 %v7887_v32, %v7886_v10  ;;  %v7890_v48 = vld [vmem:[#allocation12 + $0x460] sm:$0xff]  ;;  %v7968_v50 = vld [vmem:[#allocation3 + $0x60] sm:$0xff] }
 0x5ee   : > { %6434 = vst.msk [vmem:[#allocation3 + $0xb8] sm:$0xf] %vm6433_vm6, %v6408_v19  ;;  %v6784_v19 = vld [vmem:[#allocation12 + $0x128] sm:$0xff]  ;;  %v8228_v32 = vld [vmem:[#allocation12 + $0x540] sm:$0xff] }
 0x5ef   : > { %6432 = vst.msk [vmem:[#allocation3 + $0xb0] sm:$0xff] %vm6409_vm5, %v6407_v20  ;;  %12682 = vmatpush3.bf16.msra.mxu0 %v12681_v12  ;;  %v7460_v12 = vmax.f32 %v7456_v49, %v7458_v52  ;;  %v12621_v14 = vpack.c.bf16 %v6784_v19, %v6783_v34  ;;  %v7557_v20 = vld [vmem:[#allocation12 + $0x378] sm:$0xff]  ;;  %v7459_v30 = vld [vmem:[#allocation3 + $0x58] sm:$0xf]  ;;  %v7125_v49 = vld [vmem:[#allocation12 + $0x220] sm:$0xff] }
 0x5f0   : > { %12598 = vmatpush3.bf16.msra.mxu1 %v12597_v23  ;;  %12683 = vmatprep.subr.bf16.mxu0 %v13735_v54  ;;  %v12729_v23 = vpack.c.bf16 %v7555_v16, %v7554_v39  ;;  %v7891_v52 = vld [vmem:[#allocation12 + $0x468] sm:$0xff]  ;;  %v7893_v34 = vld [vmem:[#allocation12 + $0x478] sm:$0xff] }
 0x5f1   : > { %12599 = vmatprep.subr.bf16.mxu1 %v13735_v54  ;;  %v7463_v37 = vrot.slane %v7460_v12, 1  ;;  %v12777_v39 = vpack.c.bf16 %v7891_v52, %v7890_v48  ;;  %v7296_v63 = vld [vmem:[#allocation12 + $0x2a8] sm:$0xff]  ;;  %v7471_v52 = vld [vmem:[#allocation12 + $0x320] sm:$0xff] }
 0x5f2   : > { %v8233_v48 = vld [vmem:[#allocation12 + $0x568] sm:$0xff] }
 0x5f3   : > { %12685 = vmatpush3.bf16.msra.mxu0 %v12684_v7  ;;  %v6786_v7 = vld [vmem:[#allocation12 + $0x138] sm:$0xff]  ;;  %v15520_v55 = vmax.f32 %v7460_v12, %v7463_v37  ;;  %v7892_v12 = vld [vmem:[#allocation12 + $0x470] sm:$0xff] }
 0x5f4   : > { %12601 = vmatpush3.bf16.msra.mxu1 %v12600_v45  ;;  %12698 = vmatprep.subr.bf16.mxu0 %v13735_v54  ;;  %v12732_v45 = vpack.c.bf16 %v7557_v20, %v7556_v18  ;;  %v12624_v8 = vpack.c.bf16 %v6786_v7, %v6785_v38  ;;  %v12780_v18 = vpack.c.bf16 %v7893_v34, %v7892_v12  ;;  %v8062_v38 = vld [vmem:[#allocation12 + $0x4c0] sm:$0xff]  ;;  %v8063_v7 = vld [vmem:[#allocation12 + $0x4c8] sm:$0xff]  ;;  %v7474_v12 = vld [vmem:[#allocation12 + $0x338] sm:$0xff] }
 0x5f5   : > { %12602 = vmatprep.subr.bf16.mxu1 %v13735_v54  ;;  %v7558_v17 = vrot.slane %v15520_v55, 2  ;;  %v7724_v0 = vrot.slane %v15520_v55, 6 }
 0x5f6   : > { %11998 = vmatmul.mubr.msk.f32.vlgmr.msra.gmra.mrb[32].mxu0 %vm6409_vm5, %v7212_v2  ;;  %v6956_v2 = vld [vmem:[#allocation12 + $0x188] sm:$0xff] }
 0x5f7   : > { %11865 = vmatmul.mubr.msk.f32.vlgmr.msra.gmra.mrb[28].mxu1 %vm6409_vm5, %v6617_v25  ;;  %12700 = vmatpush3.bf16.msra.mxu0 %v12699_v57  ;;  %v6955_v57 = vld [vmem:[#allocation12 + $0x180] sm:$0xff]  ;;  %v7718_v25 = vld [vmem:[#allocation12 + $0x3d0] sm:$0xff] }
 0x5f8   : > { %12604 = vmatpush3.bf16.msra.mxu1 %v12603_v3  ;;  %12701 = vmatprep.subr.bf16.mxu0 %v13735_v54  ;;  %v12747_v3 = vpack.c.bf16 %v7717_v56, %v7716_v13  ;;  %v12639_v24 = vpack.c.bf16 %v6956_v2, %v6955_v57  ;;  %v12795_v13 = vpack.c.bf16 %v8063_v7, %v8062_v38  ;;  %v8064_v2 = vld [vmem:[#allocation12 + $0x4d0] sm:$0xff] }
 0x5f9   : > { %12605 = vmatprep.subr.bf16.mxu1 %v13735_v54  ;;  %12035 = vmatprep.mubr.msk.f32.mxu0 %vm13736_vm4, %v13737_v44 }
 0x5fa   : > { %11883 = vmatprep.mubr.msk.f32.mxu1 %vm13736_vm4, %v13737_v44 }
 0x5fb   : > { %12703 = vmatpush3.bf16.msra.mxu0 %v12702_v51  ;;  %v12750_v51 = vpack.c.bf16 %v7719_v41, %v7718_v25  ;;  %v7294_v25 = vld [vmem:[#allocation12 + $0x298] sm:$0xff]  ;;  %v7970_v41 = vld [vmem:[#allocation3 + $0x70] sm:$0xff] }
 0x5fc   : > { %12607 = vmatpush3.bf16.msra.mxu1 %v12606_v60  ;;  %12704 = vmatprep.subr.bf16.mxu0 %v13735_v54  ;;  %v7720_v60 = vld [vmem:[#allocation12 + $0x3e0] sm:$0xff] }
 0x5fd   : > { %12608 = vmatprep.subr.bf16.mxu1 %v13735_v54 }
 0x5ff   : > { %12706 = vmatpush3.bf16.msra.mxu0 %v12705_v21  ;;  %v7723_v21 = vld [vmem:[#allocation12 + $0x3f8] sm:$0xff] }
 0x600   : > { %12610 = vmatpush3.bf16.msra.mxu1 %v12609_v22  ;;  %12707 = vmatprep.subr.bf16.mxu0 %v13735_v54  ;;  %v6961_v22 = vld [vmem:[#allocation12 + $0x1b0] sm:$0xff]  ;;  %v12756_v29 = vpack.c.bf16 %v7723_v21, %v7722_v11  ;;  %v8069_v11 = vld [vmem:[#allocation12 + $0x4f8] sm:$0xff] }
 0x601   : > { %12611 = vmatprep.subr.bf16.mxu1 %v13735_v54  ;;  %v12648_v4 = vpack.c.bf16 %v6962_v28, %v6961_v22  ;;  %v7297_v22 = vld [vmem:[#allocation12 + $0x2b0] sm:$0xff]  ;;  %v7298_v28 = vld [vmem:[#allocation12 + $0x2b8] sm:$0xff] }
 0x603   : > { %12709 = vmatpush3.bf16.msra.mxu0 %v12708_v62  ;;  %v7121_v62 = vld [vmem:[#allocation12 + $0x200] sm:$0xff] }
 0x604   : > { %12613 = vmatpush3.bf16.msra.mxu1 %v12612_v36  ;;  %12722 = vmatprep.subr.bf16.mxu0 %v13735_v54  ;;  %v7122_v36 = vld [vmem:[#allocation12 + $0x208] sm:$0xff] }
 0x605   : > { %12614 = vmatprep.subr.bf16.mxu1 %v13735_v54  ;;  %v12663_v33 = vpack.c.bf16 %v7122_v36, %v7121_v62  ;;  %v8229_v62 = vld [vmem:[#allocation12 + $0x548] sm:$0xff]  ;;  %v7467_v36 = vld [vmem:[#allocation12 + $0x300] sm:$0xff] }
 0x606   : > { %12036 = vmatmul.mubr.msk.f32.vlgmr.msra.gmra.mrb[34].mxu0 %vm6409_vm5, %v7382_v27  ;;  %v7123_v27 = vld [vmem:[#allocation12 + $0x210] sm:$0xff] }
 0x607   : > { %11884 = vmatmul.mubr.msk.f32.vlgmr.msra.gmra.mrb[30].mxu1 %vm6409_vm5, %v6700_v43  ;;  %12724 = vmatpush3.bf16.msra.mxu0 %v12723_v26  ;;  %v7889_v26 = vld [vmem:[#allocation12 + $0x458] sm:$0xff] }
 0x608   : > { %12616 = vmatpush3.bf16.msra.mxu1 %v12615_v46  ;;  %12725 = vmatprep.subr.bf16.mxu0 %v13735_v54  ;;  %v7124_v46 = vld [vmem:[#allocation12 + $0x218] sm:$0xff]  ;;  %v12774_v40 = vpack.c.bf16 %v7889_v26, %v7888_v35  ;;  %v8230_v26 = vld [vmem:[#allocation12 + $0x550] sm:$0xff] }
 0x609   : > { %12617 = vmatprep.subr.bf16.mxu1 %v13735_v54  ;;  %12073 = vmatprep.mubr.msk.f32.mxu0 %vm13736_vm4, %v13737_v44  ;;  %v7457_v43 = vld [vmem:[#allocation3 + $0x48] sm:$0xf]  ;;  %v12666_v47 = vpack.c.bf16 %v7124_v46, %v7123_v27  ;;  %v7469_v46 = vld [vmem:[#allocation12 + $0x310] sm:$0xff] }
 0x60a   : > { %11902 = vmatprep.mubr.msk.f32.mxu1 %vm13736_vm4, %v13737_v44  ;;  %v8231_v27 = vld [vmem:[#allocation12 + $0x558] sm:$0xff] }
 0x60b   : > { %12727 = vmatpush3.bf16.msra.mxu0 %v12726_v15  ;;  %v7461_v15 = vmax.f32 %v7457_v43, %v7459_v30  ;;  %v7470_v30 = vld [vmem:[#allocation12 + $0x318] sm:$0xff] }
 0x60c   : > { %12619 = vmatpush3.bf16.msra.mxu1 %v12618_v53  ;;  %12728 = vmatprep.subr.bf16.mxu0 %v13735_v54  ;;  %v7126_v53 = vld [vmem:[#allocation12 + $0x228] sm:$0xff]  ;;  %v12714_v43 = vpack.c.bf16 %v7470_v30, %v7469_v46  ;;  %v8480_v30 = vld [vmem:[#allocation3 + $0x80] sm:$0xff] }
 0x60d   : > { %12620 = vmatprep.subr.bf16.mxu1 %v13735_v54  ;;  %v12669_v16 = vpack.c.bf16 %v7126_v53, %v7125_v49  ;;  %v7799_v19 = vrot.slane %v7461_v15, 1  ;;  %v8234_v53 = vld [vmem:[#allocation12 + $0x570] sm:$0xff] }
 0x60f   : > { %12730 = vmatpush3.bf16.msra.mxu0 %v12729_v23  ;;  %v7127_v23 = vld [vmem:[#allocation12 + $0x230] sm:$0xff]  ;;  %v15554_v37 = vmax.f32 %v7461_v15, %v7799_v19  ;;  %v7472_v15 = vld [vmem:[#allocation12 + $0x328] sm:$0xff] }
 0x610   : > { %12622 = vmatpush3.bf16.msra.mxu1 %v12621_v14  ;;  %12731 = vmatprep.subr.bf16.mxu0 %v13735_v54  ;;  %v7128_v14 = vld [vmem:[#allocation12 + $0x238] sm:$0xff]  ;;  %v12717_v49 = vpack.c.bf16 %v7472_v15, %v7471_v52  ;;  %v7808_v52 = vld [vmem:[#allocation12 + $0x428] sm:$0xff] }
 0x611   : > { %12623 = vmatprep.subr.bf16.mxu1 %v13735_v54  ;;  %v12672_v20 = vpack.c.bf16 %v7128_v14, %v7127_v23  ;;  %v7894_v56 = vrot.slane %v15554_v37, 2  ;;  %v8398_v23 = vld [vmem:[#allocation12 + $0x5c0] sm:$0xff]  ;;  %v8399_v14 = vld [vmem:[#allocation12 + $0x5c8] sm:$0xff] }
 0x612   : > { %v12843_v38 = vpack.c.bf16 %v8399_v14, %v8398_v23  ;;  %v8740_v14 = vld [vmem:[#allocation12 + $0x6c0] sm:$0xff] }
 0x613   : > { %12733 = vmatpush3.bf16.msra.mxu0 %v12732_v45  ;;  %v7291_v45 = vld [vmem:[#allocation12 + $0x280] sm:$0xff] }
 0x614   : > { %12625 = vmatpush3.bf16.msra.mxu1 %v12624_v8  ;;  %12746 = vmatprep.subr.bf16.mxu0 %v13735_v54  ;;  %v7292_v8 = vld [vmem:[#allocation12 + $0x288] sm:$0xff] }
 0x615   : > { %12638 = vmatprep.subr.bf16.mxu1 %v13735_v54  ;;  %v12687_v57 = vpack.c.bf16 %v7292_v8, %v7291_v45  ;;  %v8400_v8 = vld [vmem:[#allocation12 + $0x5d0] sm:$0xff] }
 0x616   : > { %12074 = vmatmul.mubr.msk.f32.vlgmr.msra.gmra.mrb[36].mxu0 %vm6409_vm5, %v7558_v17  ;;  %v7129_v17 = vrot.slane %v15455_v59, 4 }
 0x617   : > { %11903 = vmatmul.mubr.msk.f32.vlgmr.msra.gmra.mrb[32].mxu1 %vm6409_vm5, %v15424_v31  ;;  %12748 = vmatpush3.bf16.msra.mxu0 %v12747_v3  ;;  %v12753_v31 = vpack.c.bf16 %v7721_v61, %v7720_v60  ;;  %v8065_v3 = vld [vmem:[#allocation12 + $0x4d8] sm:$0xff]  ;;  %v8067_v60 = vld [vmem:[#allocation12 + $0x4e8] sm:$0xff]  ;;  %v7972_v61 = vmax.f32 %v7968_v50, %v7970_v41  ;;  %v7637_v50 = vld [vmem:[#allocation12 + $0x3a0] sm:$0xff] }
 0x618   : > { %12640 = vmatpush3.bf16.msra.mxu1 %v12639_v24  ;;  %12749 = vmatprep.subr.bf16.mxu0 %v13735_v54  ;;  %v7293_v24 = vld [vmem:[#allocation12 + $0x290] sm:$0xff]  ;;  %v12798_v42 = vpack.c.bf16 %v8065_v3, %v8064_v2  ;;  %v8403_v41 = vld [vmem:[#allocation12 + $0x5e8] sm:$0xff] }
 0x619   : > { %12641 = vmatprep.subr.bf16.mxu1 %v13735_v54  ;;  %12111 = vmatprep.mubr.msk.f32.mxu0 %vm13736_vm4, %v13737_v44  ;;  %v7975_v21 = vrot.slane %v7972_v61, 1  ;;  %v7971_v2 = vld [vmem:[#allocation3 + $0x78] sm:$0xf] }
 0x61a   : > { %11940 = vmatprep.mubr.msk.f32.mxu1 %vm13736_vm4, %v13737_v44 }
 0x61b   : > { %12751 = vmatpush3.bf16.msra.mxu0 %v12750_v51  ;;  %v12690_v51 = vpack.c.bf16 %v7294_v25, %v7293_v24  ;;  %v15572_v10 = vmax.f32 %v7972_v61, %v7975_v21  ;;  %v8402_v25 = vld [vmem:[#allocation12 + $0x5e0] sm:$0xff]  ;;  %v8404_v61 = vld [vmem:[#allocation12 + $0x5f0] sm:$0xff] }
 0x61c   : > { %12643 = vmatpush3.bf16.msra.mxu1 %v12642_v58  ;;  %12752 = vmatprep.subr.bf16.mxu0 %v13735_v54  ;;  %v8066_v58 = vld [vmem:[#allocation12 + $0x4e0] sm:$0xff] }
 0x61d   : > { %12644 = vmatprep.subr.bf16.mxu1 %v13735_v54  ;;  %v12801_v1 = vpack.c.bf16 %v8067_v60, %v8066_v58  ;;  %v8236_v7 = vrot.slane %v15572_v10, 6  ;;  %v12849_v58 = vpack.c.bf16 %v8403_v41, %v8402_v25  ;;  %v8745_v25 = vld [vmem:[#allocation12 + $0x6e8] sm:$0xff]  ;;  %v7983_v41 = vld [vmem:[#allocation12 + $0x4a0] sm:$0xff] }
 0x61f   : > { %12754 = vmatpush3.bf16.msra.mxu0 %v12753_v31 }
 0x620   : > { %12646 = vmatpush3.bf16.msra.mxu1 %v12645_v9  ;;  %12755 = vmatprep.subr.bf16.mxu0 %v13735_v54  ;;  %v8068_v9 = vld [vmem:[#allocation12 + $0x4f0] sm:$0xff] }
 0x621   : > { %12647 = vmatprep.subr.bf16.mxu1 %v13735_v54 }
 0x623   : > { %12757 = vmatpush3.bf16.msra.mxu0 %v12756_v29  ;;  %v12804_v29 = vpack.c.bf16 %v8069_v11, %v8068_v9 }
 0x624   : > { %12649 = vmatpush3.bf16.msra.mxu1 %v12648_v4  ;;  %12770 = vmatprep.subr.bf16.mxu0 %v13735_v54  ;;  %v12696_v4 = vpack.c.bf16 %v7298_v28, %v7297_v22  ;;  %v8574_v22 = vld [vmem:[#allocation12 + $0x640] sm:$0xff]  ;;  %v8575_v28 = vld [vmem:[#allocation12 + $0x648] sm:$0xff] }
 0x625   : > { %12662 = vmatprep.subr.bf16.mxu1 %v13735_v54 }
 0x626   : > { %12112 = vmatmul.mubr.msk.f32.vlgmr.msra.gmra.mrb[38].mxu0 %vm6409_vm5, %v7724_v0  ;;  %v12819_v0 = vpack.c.bf16 %v8229_v62, %v8228_v32  ;;  %v12867_v32 = vpack.c.bf16 %v8575_v28, %v8574_v22 }
 0x627   : > { %11941 = vmatmul.mubr.msk.f32.vlgmr.msra.gmra.mrb[34].mxu1 %vm6409_vm5, %v15455_v59  ;;  %12772 = vmatpush3.bf16.msra.mxu0 %v12771_v6  ;;  %v7295_v59 = vld [vmem:[#allocation12 + $0x2a0] sm:$0xff]  ;;  %v7468_v6 = vld [vmem:[#allocation12 + $0x308] sm:$0xff] }
 0x628   : > { %12664 = vmatpush3.bf16.msra.mxu1 %v12663_v33  ;;  %12773 = vmatprep.subr.bf16.mxu0 %v13735_v54  ;;  %v12693_v31 = vpack.c.bf16 %v7296_v63, %v7295_v59  ;;  %v8070_v33 = vrot.slane %v15572_v10, 2  ;;  %v12711_v35 = vpack.c.bf16 %v7468_v6, %v7467_v36  ;;  %v8405_v59 = vld [vmem:[#allocation12 + $0x5f8] sm:$0xff]  ;;  %v8576_v6 = vld [vmem:[#allocation12 + $0x650] sm:$0xff] }
 0x629   : > { %12665 = vmatprep.subr.bf16.mxu1 %v13735_v54  ;;  %12149 = vmatprep.mubr.msk.f32.mxu0 %vm13736_vm4, %v13737_v44  ;;  %v12852_v9 = vpack.c.bf16 %v8405_v59, %v8404_v61  ;;  %v7986_v61 = vld [vmem:[#allocation12 + $0x4b8] sm:$0xff] }
 0x62a   : > { %11978 = vmatprep.mubr.msk.f32.mxu1 %vm13736_vm4, %v13737_v44 }
 0x62b   : > { %12775 = vmatpush3.bf16.msra.mxu0 %v12774_v40  ;;  %v12822_v40 = vpack.c.bf16 %v8231_v27, %v8230_v26  ;;  %v7806_v26 = vld [vmem:[#allocation12 + $0x418] sm:$0xff]  ;;  %v8482_v27 = vld [vmem:[#allocation3 + $0x90] sm:$0xff] }
 0x62c   : > { %12667 = vmatpush3.bf16.msra.mxu1 %v12666_v47  ;;  %12776 = vmatprep.subr.bf16.mxu0 %v13735_v54  ;;  %v8232_v47 = vld [vmem:[#allocation12 + $0x560] sm:$0xff] }
 0x62d   : > { %12668 = vmatprep.subr.bf16.mxu1 %v13735_v54 }
 0x62f   : > { %12778 = vmatpush3.bf16.msra.mxu0 %v12777_v39  ;;  %v8235_v39 = vld [vmem:[#allocation12 + $0x578] sm:$0xff] }
 0x630   : > { %12670 = vmatpush3.bf16.msra.mxu1 %v12669_v16  ;;  %12779 = vmatprep.subr.bf16.mxu0 %v13735_v54  ;;  %v7473_v16 = vld [vmem:[#allocation12 + $0x330] sm:$0xff]  ;;  %v12828_v34 = vpack.c.bf16 %v8235_v39, %v8234_v53  ;;  %v8581_v53 = vld [vmem:[#allocation12 + $0x678] sm:$0xff] }
 0x631   : > { %12671 = vmatprep.subr.bf16.mxu1 %v13735_v54  ;;  %v12720_v19 = vpack.c.bf16 %v7474_v12, %v7473_v16  ;;  %v7809_v16 = vld [vmem:[#allocation12 + $0x430] sm:$0xff]  ;;  %v7810_v12 = vld [vmem:[#allocation12 + $0x438] sm:$0xff] }
 0x633   : > { %12781 = vmatpush3.bf16.msra.mxu0 %v12780_v18  ;;  %v7633_v18 = vld [vmem:[#allocation12 + $0x380] sm:$0xff] }
 0x634   : > { %12673 = vmatpush3.bf16.msra.mxu1 %v12672_v20  ;;  %12794 = vmatprep.subr.bf16.mxu0 %v13735_v54  ;;  %v7634_v20 = vld [vmem:[#allocation12 + $0x388] sm:$0xff] }
 0x635   : > { %12686 = vmatprep.subr.bf16.mxu1 %v13735_v54  ;;  %v12735_v45 = vpack.c.bf16 %v7634_v20, %v7633_v18  ;;  %v8741_v18 = vld [vmem:[#allocation12 + $0x6c8] sm:$0xff]  ;;  %v7979_v20 = vld [vmem:[#allocation12 + $0x480] sm:$0xff] }
 0x636   : > { %12150 = vmatmul.mubr.msk.f32.vlgmr.msra.gmra.mrb[40].mxu0 %vm6409_vm5, %v7894_v56  ;;  %v7635_v56 = vld [vmem:[#allocation12 + $0x390] sm:$0xff] }
 0x637   : > { %11979 = vmatmul.mubr.msk.f32.vlgmr.msra.gmra.mrb[36].mxu1 %vm6409_vm5, %v7129_v17  ;;  %12796 = vmatpush3.bf16.msra.mxu0 %v12795_v13  ;;  %v8401_v13 = vld [vmem:[#allocation12 + $0x5d8] sm:$0xff] }
 0x638   : > { %12688 = vmatpush3.bf16.msra.mxu1 %v12687_v57  ;;  %12797 = vmatprep.subr.bf16.mxu0 %v13735_v54  ;;  %v7636_v57 = vld [vmem:[#allocation12 + $0x398] sm:$0xff]  ;;  %v12846_v3 = vpack.c.bf16 %v8401_v13, %v8400_v8  ;;  %v8742_v13 = vld [vmem:[#allocation12 + $0x6d0] sm:$0xff] }
 0x639   : > { %12689 = vmatprep.subr.bf16.mxu1 %v13735_v54  ;;  %12187 = vmatprep.mubr.msk.f32.mxu0 %vm13736_vm4, %v13737_v44  ;;  %v7969_v17 = vld [vmem:[#allocation3 + $0x68] sm:$0xf]  ;;  %v12738_v24 = vpack.c.bf16 %v7636_v57, %v7635_v56  ;;  %v7981_v57 = vld [vmem:[#allocation12 + $0x490] sm:$0xff] }
 0x63a   : > { %12016 = vmatprep.mubr.msk.f32.mxu1 %vm13736_vm4, %v13737_v44  ;;  %v8743_v56 = vld [vmem:[#allocation12 + $0x6d8] sm:$0xff] }
 0x63b   : > { %12799 = vmatpush3.bf16.msra.mxu0 %v12798_v42  ;;  %v7973_v42 = vmax.f32 %v7969_v17, %v7971_v2  ;;  %v7982_v2 = vld [vmem:[#allocation12 + $0x498] sm:$0xff] }
 0x63c   : > { %12691 = vmatpush3.bf16.msra.mxu1 %v12690_v51  ;;  %12800 = vmatprep.subr.bf16.mxu0 %v13735_v54  ;;  %v7638_v51 = vld [vmem:[#allocation12 + $0x3a8] sm:$0xff]  ;;  %v12786_v17 = vpack.c.bf16 %v7982_v2, %v7981_v57  ;;  %v8992_v2 = vld [vmem:[#allocation3 + $0xa0] sm:$0xff] }
 0x63d   : > { %12692 = vmatprep.subr.bf16.mxu1 %v13735_v54  ;;  %v12741_v60 = vpack.c.bf16 %v7638_v51, %v7637_v50  ;;  %v8311_v63 = vrot.slane %v7973_v42, 1  ;;  %v8746_v51 = vld [vmem:[#allocation12 + $0x6f0] sm:$0xff] }
 0x63f   : > { %12802 = vmatpush3.bf16.msra.mxu0 %v12801_v1  ;;  %v7639_v1 = vld [vmem:[#allocation12 + $0x3b0] sm:$0xff]  ;;  %v15606_v21 = vmax.f32 %v7973_v42, %v8311_v63  ;;  %v7984_v42 = vld [vmem:[#allocation12 + $0x4a8] sm:$0xff] }
 0x640   : > { %12694 = vmatpush3.bf16.msra.mxu1 %v12693_v31  ;;  %12803 = vmatprep.subr.bf16.mxu0 %v13735_v54  ;;  %v7640_v31 = vld [vmem:[#allocation12 + $0x3b8] sm:$0xff]  ;;  %v12789_v50 = vpack.c.bf16 %v7984_v42, %v7983_v41  ;;  %v8320_v41 = vld [vmem:[#allocation12 + $0x5a8] sm:$0xff] }
 0x641   : > { %12695 = vmatprep.subr.bf16.mxu1 %v13735_v54  ;;  %v12744_v11 = vpack.c.bf16 %v7640_v31, %v7639_v1  ;;  %v8406_v62 = vrot.slane %v15606_v21, 2  ;;  %v8910_v1 = vld [vmem:[#allocation12 + $0x740] sm:$0xff]  ;;  %v8911_v31 = vld [vmem:[#allocation12 + $0x748] sm:$0xff] }
 0x642   : > { %v12915_v22 = vpack.c.bf16 %v8911_v31, %v8910_v1  ;;  %v9252_v31 = vld [vmem:[#allocation12 + $0x840] sm:$0xff] }
 0x643   : > { %12805 = vmatpush3.bf16.msra.mxu0 %v12804_v29  ;;  %v7803_v29 = vld [vmem:[#allocation12 + $0x400] sm:$0xff] }
 0x644   : > { %12697 = vmatpush3.bf16.msra.mxu1 %v12696_v4  ;;  %12818 = vmatprep.subr.bf16.mxu0 %v13735_v54  ;;  %v7804_v4 = vld [vmem:[#allocation12 + $0x408] sm:$0xff] }
 0x645   : > { %12710 = vmatprep.subr.bf16.mxu1 %v13735_v54  ;;  %v12759_v36 = vpack.c.bf16 %v7804_v4, %v7803_v29  ;;  %v8912_v4 = vld [vmem:[#allocation12 + $0x750] sm:$0xff] }
 0x646   : > { %12188 = vmatmul.mubr.msk.f32.vlgmr.msra.gmra.mrb[42].mxu0 %vm6409_vm5, %v8070_v33  ;;  %v7641_v33 = vrot.slane %v15520_v55, 4 }
 0x647   : > { %12017 = vmatmul.mubr.msk.f32.vlgmr.msra.gmra.mrb[38].mxu1 %vm6409_vm5, %v15502_v5  ;;  %12820 = vmatpush3.bf16.msra.mxu0 %v12819_v0  ;;  %v12825_v5 = vpack.c.bf16 %v8233_v48, %v8232_v47  ;;  %v8577_v0 = vld [vmem:[#allocation12 + $0x658] sm:$0xff]  ;;  %v8579_v47 = vld [vmem:[#allocation12 + $0x668] sm:$0xff]  ;;  %v8484_v48 = vmax.f32 %v8480_v30, %v8482_v27  ;;  %v8149_v30 = vld [vmem:[#allocation12 + $0x520] sm:$0xff] }
 0x648   : > { %12712 = vmatpush3.bf16.msra.mxu1 %v12711_v35  ;;  %12821 = vmatprep.subr.bf16.mxu0 %v13735_v54  ;;  %v7805_v35 = vld [vmem:[#allocation12 + $0x410] sm:$0xff]  ;;  %v12870_v46 = vpack.c.bf16 %v8577_v0, %v8576_v6  ;;  %v8915_v27 = vld [vmem:[#allocation12 + $0x768] sm:$0xff] }
 0x649   : > { %12713 = vmatprep.subr.bf16.mxu1 %v13735_v54  ;;  %12225 = vmatprep.mubr.msk.f32.mxu0 %vm13736_vm4, %v13737_v44  ;;  %v8487_v39 = vrot.slane %v8484_v48, 1  ;;  %v8483_v6 = vld [vmem:[#allocation3 + $0x98] sm:$0xf] }
 0x64a   : > { %12054 = vmatprep.mubr.msk.f32.mxu1 %vm13736_vm4, %v13737_v44 }
 0x64b   : > { %12823 = vmatpush3.bf16.msra.mxu0 %v12822_v40  ;;  %v12762_v40 = vpack.c.bf16 %v7806_v26, %v7805_v35  ;;  %v15624_v23 = vmax.f32 %v8484_v48, %v8487_v39  ;;  %v8914_v26 = vld [vmem:[#allocation12 + $0x760] sm:$0xff]  ;;  %v8916_v48 = vld [vmem:[#allocation12 + $0x770] sm:$0xff] }
 0x64c   : > { %12715 = vmatpush3.bf16.msra.mxu1 %v12714_v43  ;;  %12824 = vmatprep.subr.bf16.mxu0 %v13735_v54  ;;  %v8578_v43 = vld [vmem:[#allocation12 + $0x660] sm:$0xff] }
 0x64d   : > { %12716 = vmatprep.subr.bf16.mxu1 %v13735_v54  ;;  %v12873_v15 = vpack.c.bf16 %v8579_v47, %v8578_v43  ;;  %v8748_v28 = vrot.slane %v15624_v23, 6  ;;  %v12921_v43 = vpack.c.bf16 %v8915_v27, %v8914_v26  ;;  %v9257_v26 = vld [vmem:[#allocation12 + $0x868] sm:$0xff] }
 0x64f   : > { %12826 = vmatpush3.bf16.msra.mxu0 %v12825_v5 }
 0x650   : > { %12718 = vmatpush3.bf16.msra.mxu1 %v12717_v49  ;;  %12827 = vmatprep.subr.bf16.mxu0 %v13735_v54  ;;  %v8580_v49 = vld [vmem:[#allocation12 + $0x670] sm:$0xff] }
 0x651   : > { %12719 = vmatprep.subr.bf16.mxu1 %v13735_v54 }
 0x653   : > { %12829 = vmatpush3.bf16.msra.mxu0 %v12828_v34  ;;  %v12876_v34 = vpack.c.bf16 %v8581_v53, %v8580_v49 }
 0x654   : > { %12721 = vmatpush3.bf16.msra.mxu1 %v12720_v19  ;;  %12842 = vmatprep.subr.bf16.mxu0 %v13735_v54  ;;  %v12768_v19 = vpack.c.bf16 %v7810_v12, %v7809_v16  ;;  %v9086_v16 = vld [vmem:[#allocation12 + $0x7c0] sm:$0xff]  ;;  %v9087_v12 = vld [vmem:[#allocation12 + $0x7c8] sm:$0xff] }
 0x655   : > { %12734 = vmatprep.subr.bf16.mxu1 %v13735_v54 }
 0x656   : > { %12226 = vmatmul.mubr.msk.f32.vlgmr.msra.gmra.mrb[44].mxu0 %vm6409_vm5, %v8236_v7  ;;  %v12891_v7 = vpack.c.bf16 %v8741_v18, %v8740_v14  ;;  %v12939_v14 = vpack.c.bf16 %v9087_v12, %v9086_v16  ;;  %v9422_v16 = vld [vmem:[#allocation12 + $0x8c0] sm:$0xff]  ;;  %v9423_v12 = vld [vmem:[#allocation12 + $0x8c8] sm:$0xff] }
 0x657   : > { %12055 = vmatmul.mubr.msk.f32.vlgmr.msra.gmra.mrb[40].mxu1 %vm6409_vm5, %v15520_v55  ;;  %12844 = vmatpush3.bf16.msra.mxu0 %v12843_v38  ;;  %v7807_v55 = vld [vmem:[#allocation12 + $0x420] sm:$0xff]  ;;  %v7980_v38 = vld [vmem:[#allocation12 + $0x488] sm:$0xff] }
 0x658   : > { %12736 = vmatpush3.bf16.msra.mxu1 %v12735_v45  ;;  %12845 = vmatprep.subr.bf16.mxu0 %v13735_v54  ;;  %v12765_v5 = vpack.c.bf16 %v7808_v52, %v7807_v55  ;;  %v8582_v45 = vrot.slane %v15624_v23, 2  ;;  %v12783_v8 = vpack.c.bf16 %v7980_v38, %v7979_v20  ;;  %v8917_v55 = vld [vmem:[#allocation12 + $0x778] sm:$0xff]  ;;  %v9088_v38 = vld [vmem:[#allocation12 + $0x7d0] sm:$0xff] }
 0x659   : > { %12737 = vmatprep.subr.bf16.mxu1 %v13735_v54  ;;  %12263 = vmatprep.mubr.msk.f32.mxu0 %vm13736_vm4, %v13737_v44  ;;  %v12924_v49 = vpack.c.bf16 %v8917_v55, %v8916_v48  ;;  %v9258_v55 = vld [vmem:[#allocation12 + $0x870] sm:$0xff] }
 0x65a   : > { %12092 = vmatprep.mubr.msk.f32.mxu1 %vm13736_vm4, %v13737_v44 }
 0x65b   : > { %12847 = vmatpush3.bf16.msra.mxu0 %v12846_v3  ;;  %v12894_v3 = vpack.c.bf16 %v8743_v56, %v8742_v13  ;;  %v8318_v13 = vld [vmem:[#allocation12 + $0x598] sm:$0xff]  ;;  %v8994_v56 = vld [vmem:[#allocation3 + $0xb0] sm:$0xff] }
 0x65c   : > { %12739 = vmatpush3.bf16.msra.mxu1 %v12738_v24  ;;  %12848 = vmatprep.subr.bf16.mxu0 %v13735_v54  ;;  %v8744_v24 = vld [vmem:[#allocation12 + $0x6e0] sm:$0xff] }
 0x65d   : > { %12740 = vmatprep.subr.bf16.mxu1 %v13735_v54 }
 0x65f   : > { %12850 = vmatpush3.bf16.msra.mxu0 %v12849_v58  ;;  %v8747_v58 = vld [vmem:[#allocation12 + $0x6f8] sm:$0xff] }
 0x660   : > { %12742 = vmatpush3.bf16.msra.mxu1 %v12741_v60  ;;  %12851 = vmatprep.subr.bf16.mxu0 %v13735_v54  ;;  %v7985_v60 = vld [vmem:[#allocation12 + $0x4b0] sm:$0xff]  ;;  %v12900_v59 = vpack.c.bf16 %v8747_v58, %v8746_v51  ;;  %v9093_v51 = vld [vmem:[#allocation12 + $0x7f8] sm:$0xff] }
 0x661   : > { %12743 = vmatprep.subr.bf16.mxu1 %v13735_v54  ;;  %v12792_v63 = vpack.c.bf16 %v7986_v61, %v7985_v60  ;;  %v8321_v60 = vld [vmem:[#allocation12 + $0x5b0] sm:$0xff]  ;;  %v8322_v61 = vld [vmem:[#allocation12 + $0x5b8] sm:$0xff] }
 0x663   : > { %12853 = vmatpush3.bf16.msra.mxu0 %v12852_v9  ;;  %v8145_v9 = vld [vmem:[#allocation12 + $0x500] sm:$0xff] }
 0x664   : > { %12745 = vmatpush3.bf16.msra.mxu1 %v12744_v11  ;;  %12866 = vmatprep.subr.bf16.mxu0 %v13735_v54  ;;  %v8146_v11 = vld [vmem:[#allocation12 + $0x508] sm:$0xff] }
 0x665   : > { %12758 = vmatprep.subr.bf16.mxu1 %v13735_v54  ;;  %v12807_v29 = vpack.c.bf16 %v8146_v11, %v8145_v9  ;;  %v9253_v9 = vld [vmem:[#allocation12 + $0x848] sm:$0xff]  ;;  %v8491_v11 = vld [vmem:[#allocation12 + $0x600] sm:$0xff] }
 0x666   : > { %12264 = vmatmul.mubr.msk.f32.vlgmr.msra.gmra.mrb[46].mxu0 %vm6409_vm5, %v8406_v62  ;;  %v8147_v62 = vld [vmem:[#allocation12 + $0x510] sm:$0xff] }
 0x667   : > { %12093 = vmatmul.mubr.msk.f32.vlgmr.msra.gmra.mrb[42].mxu1 %vm6409_vm5, %v7641_v33  ;;  %12868 = vmatpush3.bf16.msra.mxu0 %v12867_v32  ;;  %v8913_v32 = vld [vmem:[#allocation12 + $0x758] sm:$0xff] }
 0x668   : > { %12760 = vmatpush3.bf16.msra.mxu1 %v12759_v36  ;;  %12869 = vmatprep.subr.bf16.mxu0 %v13735_v54  ;;  %v8148_v36 = vld [vmem:[#allocation12 + $0x518] sm:$0xff]  ;;  %v12918_v0 = vpack.c.bf16 %v8913_v32, %v8912_v4  ;;  %v9254_v32 = vld [vmem:[#allocation12 + $0x850] sm:$0xff] }
 0x669   : > { %12761 = vmatprep.subr.bf16.mxu1 %v13735_v54  ;;  %12301 = vmatprep.mubr.msk.f32.mxu0 %vm13736_vm4, %v13737_v44  ;;  %v8481_v33 = vld [vmem:[#allocation3 + $0x88] sm:$0xf]  ;;  %v12810_v35 = vpack.c.bf16 %v8148_v36, %v8147_v62  ;;  %v8493_v36 = vld [vmem:[#allocation12 + $0x610] sm:$0xff] }
 0x66a   : > { %12130 = vmatprep.mubr.msk.f32.mxu1 %vm13736_vm4, %v13737_v44  ;;  %v9255_v62 = vld [vmem:[#allocation12 + $0x858] sm:$0xff] }
 0x66b   : > { %12871 = vmatpush3.bf16.msra.mxu0 %v12870_v46  ;;  %v8485_v46 = vmax.f32 %v8481_v33, %v8483_v6  ;;  %v8494_v6 = vld [vmem:[#allocation12 + $0x618] sm:$0xff] }
 0x66c   : > { %12763 = vmatpush3.bf16.msra.mxu1 %v12762_v40  ;;  %12872 = vmatprep.subr.bf16.mxu0 %v13735_v54  ;;  %v8150_v40 = vld [vmem:[#allocation12 + $0x528] sm:$0xff]  ;;  %v12858_v33 = vpack.c.bf16 %v8494_v6, %v8493_v36  ;;  %v8665_v36 = vrot.slane %v15624_v23, 4  ;;  %v8829_v6 = vld [vmem:[#allocation12 + $0x710] sm:$0xff] }
 0x66d   : > { %12764 = vmatprep.subr.bf16.mxu1 %v13735_v54  ;;  %v12813_v47 = vpack.c.bf16 %v8150_v40, %v8149_v30  ;;  %v8823_v52 = vrot.slane %v8485_v46, 1  ;;  %v8496_v30 = vld [vmem:[#allocation12 + $0x628] sm:$0xff] }
 0x66f   : > { %12874 = vmatpush3.bf16.msra.mxu0 %v12873_v15  ;;  %v8151_v15 = vld [vmem:[#allocation12 + $0x530] sm:$0xff]  ;;  %v15658_v39 = vmax.f32 %v8485_v46, %v8823_v52  ;;  %v8495_v46 = vld [vmem:[#allocation12 + $0x620] sm:$0xff]  ;;  %v9259_v52 = vld [vmem:[#allocation12 + $0x878] sm:$0xff] }
 0x670   : > { %12766 = vmatpush3.bf16.msra.mxu1 %v12765_v5  ;;  %12875 = vmatprep.subr.bf16.mxu0 %v13735_v54  ;;  %v8152_v5 = vld [vmem:[#allocation12 + $0x538] sm:$0xff]  ;;  %v12861_v48 = vpack.c.bf16 %v8496_v30, %v8495_v46  ;;  %v8832_v46 = vld [vmem:[#allocation12 + $0x728] sm:$0xff] }
 0x671   : > { %12767 = vmatprep.subr.bf16.mxu1 %v13735_v54  ;;  %v12816_v53 = vpack.c.bf16 %v8152_v5, %v8151_v15  ;;  %v8918_v18 = vrot.slane %v15658_v39, 2  ;;  %v8497_v15 = vld [vmem:[#allocation12 + $0x630] sm:$0xff]  ;;  %v8498_v5 = vld [vmem:[#allocation12 + $0x638] sm:$0xff] }
 0x673   : > { %12877 = vmatpush3.bf16.msra.mxu0 %v12876_v34  ;;  %v8315_v34 = vld [vmem:[#allocation12 + $0x580] sm:$0xff] }
 0x674   : > { %12769 = vmatpush3.bf16.msra.mxu1 %v12768_v19  ;;  %12890 = vmatprep.subr.bf16.mxu0 %v13735_v54  ;;  %v8316_v19 = vld [vmem:[#allocation12 + $0x588] sm:$0xff] }
 0x675   : > { %12782 = vmatprep.subr.bf16.mxu1 %v13735_v54  ;;  %v12831_v20 = vpack.c.bf16 %v8316_v19, %v8315_v34  ;;  %v8657_v34 = vld [vmem:[#allocation12 + $0x680] sm:$0xff]  ;;  %v8658_v19 = vld [vmem:[#allocation12 + $0x688] sm:$0xff] }
 0x676   : > { %12302 = vmatmul.mubr.msk.f32.vlgmr.msra.gmra.mrb[48].mxu0 %vm6409_vm5, %v8582_v45  ;;  %v8153_v45 = vrot.slane %v15572_v10, 4 }
 0x677   : > { %12131 = vmatmul.mubr.msk.f32.vlgmr.msra.gmra.mrb[44].mxu1 %vm6409_vm5, %v15554_v37  ;;  %12892 = vmatpush3.bf16.msra.mxu0 %v12891_v7  ;;  %v12897_v37 = vpack.c.bf16 %v8745_v25, %v8744_v24  ;;  %v9089_v7 = vld [vmem:[#allocation12 + $0x7d8] sm:$0xff]  ;;  %v9091_v24 = vld [vmem:[#allocation12 + $0x7e8] sm:$0xff]  ;;  %v8996_v25 = vmax.f32 %v8992_v2, %v8994_v56 }
 0x678   : > { %12784 = vmatpush3.bf16.msra.mxu1 %v12783_v8  ;;  %12893 = vmatprep.subr.bf16.mxu0 %v13735_v54  ;;  %v8317_v8 = vld [vmem:[#allocation12 + $0x590] sm:$0xff]  ;;  %v12942_v57 = vpack.c.bf16 %v9089_v7, %v9088_v38  ;;  %v9425_v7 = vld [vmem:[#allocation12 + $0x8d8] sm:$0xff] }
 0x679   : > { %12785 = vmatprep.subr.bf16.mxu1 %v13735_v54  ;;  %12339 = vmatprep.mubr.msk.f32.mxu0 %vm13736_vm4, %v13737_v44  ;;  %v8999_v58 = vrot.slane %v8996_v25, 1  ;;  %v9424_v38 = vld [vmem:[#allocation12 + $0x8d0] sm:$0xff] }
 0x67a   : > { %12168 = vmatprep.mubr.msk.f32.mxu1 %vm13736_vm4, %v13737_v44  ;;  %v12990_v56 = vpack.c.bf16 %v9425_v7, %v9424_v38 }
 0x67b   : > { %12895 = vmatpush3.bf16.msra.mxu0 %v12894_v3  ;;  %v12834_v3 = vpack.c.bf16 %v8318_v13, %v8317_v8  ;;  %v15676_v1 = vmax.f32 %v8996_v25, %v8999_v58  ;;  %v8660_v8 = vld [vmem:[#allocation12 + $0x698] sm:$0xff]  ;;  %v8995_v13 = vld [vmem:[#allocation3 + $0xb8] sm:$0xf] }
 0x67c   : > { %12787 = vmatpush3.bf16.msra.mxu1 %v12786_v17  ;;  %12896 = vmatprep.subr.bf16.mxu0 %v13735_v54  ;;  %v9090_v17 = vld [vmem:[#allocation12 + $0x7e0] sm:$0xff] }
 0x67d   : > { %12788 = vmatprep.subr.bf16.mxu1 %v13735_v54  ;;  %v12945_v42 = vpack.c.bf16 %v9091_v24, %v9090_v17  ;;  %v9427_v17 = vld [vmem:[#allocation12 + $0x8e8] sm:$0xff] }
 0x67f   : > { %12898 = vmatpush3.bf16.msra.mxu0 %v12897_v37 }
 0x680   : > { %12790 = vmatpush3.bf16.msra.mxu1 %v12789_v50  ;;  %12899 = vmatprep.subr.bf16.mxu0 %v13735_v54  ;;  %v9092_v50 = vld [vmem:[#allocation12 + $0x7f0] sm:$0xff] }
 0x681   : > { %12791 = vmatprep.subr.bf16.mxu1 %v13735_v54 }
 0x683   : > { %12901 = vmatpush3.bf16.msra.mxu0 %v12900_v59  ;;  %v12948_v59 = vpack.c.bf16 %v9093_v51, %v9092_v50 }
 0x684   : > { %12793 = vmatpush3.bf16.msra.mxu1 %v12792_v63  ;;  %12914 = vmatprep.subr.bf16.mxu0 %v13735_v54  ;;  %v12840_v63 = vpack.c.bf16 %v8322_v61, %v8321_v60  ;;  %v9428_v61 = vld [vmem:[#allocation12 + $0x8f0] sm:$0xff] }
 0x685   : > { %12806 = vmatprep.subr.bf16.mxu1 %v13735_v54 }
 0x686   : > { %12340 = vmatmul.mubr.msk.f32.vlgmr.msra.gmra.mrb[50].mxu0 %vm6409_vm5, %v8748_v28  ;;  %v12963_v28 = vpack.c.bf16 %v9253_v9, %v9252_v31  ;;  %v8663_v31 = vld [vmem:[#allocation12 + $0x6b0] sm:$0xff]  ;;  %v8664_v9 = vld [vmem:[#allocation12 + $0x6b8] sm:$0xff] }
 0x687   : > { %12169 = vmatmul.mubr.msk.f32.vlgmr.msra.gmra.mrb[46].mxu1 %vm6409_vm5, %v15572_v10  ;;  %12916 = vmatpush3.bf16.msra.mxu0 %v12915_v22  ;;  %v8319_v10 = vld [vmem:[#allocation12 + $0x5a0] sm:$0xff]  ;;  %v8492_v22 = vld [vmem:[#allocation12 + $0x608] sm:$0xff] }
 0x688   : > { %12808 = vmatpush3.bf16.msra.mxu1 %v12807_v29  ;;  %12917 = vmatprep.subr.bf16.mxu0 %v13735_v54  ;;  %v12837_v37 = vpack.c.bf16 %v8320_v41, %v8319_v10  ;;  %v9094_v29 = vrot.slane %v15676_v1, 2  ;;  %v12855_v4 = vpack.c.bf16 %v8492_v22, %v8491_v11  ;;  %v8661_v10 = vld [vmem:[#allocation12 + $0x6a0] sm:$0xff]  ;;  %v8662_v41 = vld [vmem:[#allocation12 + $0x6a8] sm:$0xff]  ;;  %v12888_v22 = vpack.c.bf16 %v8664_v9, %v8663_v31 }
 0x689   : > { %12809 = vmatprep.subr.bf16.mxu1 %v13735_v54  ;;  %12377 = vmatprep.mubr.msk.f32.mxu0 %vm13736_vm4, %v13737_v44  ;;  %v12885_v60 = vpack.c.bf16 %v8662_v41, %v8661_v10  ;;  %v9173_v10 = vld [vmem:[#allocation12 + $0x820] sm:$0xff]  ;;  %v9174_v41 = vld [vmem:[#allocation12 + $0x828] sm:$0xff] }
 0x68a   : > { %12206 = vmatprep.mubr.msk.f32.mxu1 %vm13736_vm4, %v13737_v44  ;;  %v9339_v31 = vld [vmem:[#allocation12 + $0x880] sm:$0xff]  ;;  %v9340_v9 = vld [vmem:[#allocation12 + $0x888] sm:$0xff] }
 0x68b   : > { %12919 = vmatpush3.bf16.msra.mxu0 %v12918_v0  ;;  %v12966_v0 = vpack.c.bf16 %v9255_v62, %v9254_v32 }
 0x68c   : > { %12811 = vmatpush3.bf16.msra.mxu1 %v12810_v35  ;;  %12920 = vmatprep.subr.bf16.mxu0 %v13735_v54  ;;  %v9256_v35 = vld [vmem:[#allocation12 + $0x860] sm:$0xff] }
 0x68d   : > { %12812 = vmatprep.subr.bf16.mxu1 %v13735_v54 }
 0x68f   : > { %12922 = vmatpush3.bf16.msra.mxu0 %v12921_v43 }
 0x690   : > { %12814 = vmatpush3.bf16.msra.mxu1 %v12813_v47  ;;  %12923 = vmatprep.subr.bf16.mxu0 %v13735_v54  ;;  %v12969_v47 = vpack.c.bf16 %v9257_v26, %v9256_v35  ;;  %v8831_v26 = vld [vmem:[#allocation12 + $0x720] sm:$0xff] }
 0x691   : > { %12815 = vmatprep.subr.bf16.mxu1 %v13735_v54 }
 0x693   : > { %12925 = vmatpush3.bf16.msra.mxu0 %v12924_v49  ;;  %v12972_v49 = vpack.c.bf16 %v9259_v52, %v9258_v55  ;;  %v9003_v52 = vld [vmem:[#allocation12 + $0x780] sm:$0xff] }
 0x694   : > { %12817 = vmatpush3.bf16.msra.mxu1 %v12816_v53  ;;  %12938 = vmatprep.subr.bf16.mxu0 %v13735_v54  ;;  %v12864_v53 = vpack.c.bf16 %v8498_v5, %v8497_v15  ;;  %v9004_v15 = vld [vmem:[#allocation12 + $0x788] sm:$0xff] }
 0x695   : > { %12830 = vmatprep.subr.bf16.mxu1 %v13735_v54  ;;  %v12927_v5 = vpack.c.bf16 %v9004_v15, %v9003_v52 }
 0x696   : > { %12378 = vmatmul.mubr.msk.f32.vlgmr.msra.gmra.mrb[52].mxu0 %vm6409_vm5, %v8918_v18  ;;  %v9260_v18 = vrot.slane %v15676_v1, 6 }
 0x697   : > { %12207 = vmatmul.mubr.msk.f32.vlgmr.msra.gmra.mrb[48].mxu1 %vm6409_vm5, %v8153_v45  ;;  %12940 = vmatpush3.bf16.msra.mxu0 %v12939_v14  ;;  %v12987_v14 = vpack.c.bf16 %v9423_v12, %v9422_v16  ;;  %v8659_v45 = vld [vmem:[#allocation12 + $0x690] sm:$0xff] }
 0x698   : > { %12832 = vmatpush3.bf16.msra.mxu1 %v12831_v20  ;;  %12941 = vmatprep.subr.bf16.mxu0 %v13735_v54  ;;  %v12879_v20 = vpack.c.bf16 %v8658_v19, %v8657_v34  ;;  %v12882_v2 = vpack.c.bf16 %v8660_v8, %v8659_v45  ;;  %v9007_v34 = vld [vmem:[#allocation12 + $0x7a0] sm:$0xff]  ;;  %v9008_v19 = vld [vmem:[#allocation12 + $0x7a8] sm:$0xff]  ;;  %v9010_v45 = vld [vmem:[#allocation12 + $0x7b8] sm:$0xff] }
 0x699   : > { %12833 = vmatprep.subr.bf16.mxu1 %v13735_v54  ;;  %12415 = vmatprep.mubr.msk.f32.mxu0 %vm13736_vm4, %v13737_v44  ;;  %v12933_v7 = vpack.c.bf16 %v9008_v19, %v9007_v34 }
 0x69a   : > { %12244 = vmatprep.mubr.msk.f32.mxu1 %vm13736_vm4, %v13737_v44 }
 0x69b   : > { %12943 = vmatpush3.bf16.msra.mxu0 %v12942_v57  ;;  %v8993_v57 = vld [vmem:[#allocation3 + $0xa8] sm:$0xf] }
 0x69c   : > { %12835 = vmatpush3.bf16.msra.mxu1 %v12834_v3  ;;  %12944 = vmatprep.subr.bf16.mxu0 %v13735_v54  ;;  %v9426_v3 = vld [vmem:[#allocation12 + $0x8e0] sm:$0xff]  ;;  %v8997_v24 = vmax.f32 %v8993_v57, %v8995_v13 }
 0x69d   : > { %12836 = vmatprep.subr.bf16.mxu1 %v13735_v54  ;;  %v12993_v58 = vpack.c.bf16 %v9427_v17, %v9426_v3  ;;  %v9169_v13 = vld [vmem:[#allocation12 + $0x800] sm:$0xff]  ;;  %v9172_v3 = vld [vmem:[#allocation12 + $0x818] sm:$0xff] }
 0x69f   : > { %12946 = vmatpush3.bf16.msra.mxu0 %v12945_v42 }
 0x6a0   : > { %12838 = vmatpush3.bf16.msra.mxu1 %v12837_v37  ;;  %12947 = vmatprep.subr.bf16.mxu0 %v13735_v54 }
 0x6a1   : > { %12839 = vmatprep.subr.bf16.mxu1 %v13735_v54 }
 0x6a3   : > { %12949 = vmatpush3.bf16.msra.mxu0 %v12948_v59  ;;  %v9429_v59 = vld [vmem:[#allocation12 + $0x8f8] sm:$0xff] }
 0x6a4   : > { %12841 = vmatpush3.bf16.msra.mxu1 %v12840_v63  ;;  %12962 = vmatprep.subr.bf16.mxu0 %v13735_v54  ;;  %v9335_v63 = vrot.slane %v8997_v24, 1  ;;  %v12996_v11 = vpack.c.bf16 %v9429_v59, %v9428_v61  ;;  %v9176_v61 = vld [vmem:[#allocation12 + $0x838] sm:$0xff] }
 0x6a5   : > { %12854 = vmatprep.subr.bf16.mxu1 %v13735_v54 }
 0x6a6   : > { %12416 = vmatmul.mubr.msk.f32.vlgmr.msra.gmra.mrb[54].mxu0 %vm6409_vm5, %v9094_v29  ;;  %v8827_v29 = vld [vmem:[#allocation12 + $0x700] sm:$0xff] }
 0x6a7   : > { %12245 = vmatmul.mubr.msk.f32.vlgmr.msra.gmra.mrb[50].mxu1 %vm6409_vm5, %v15606_v21  ;;  %12964 = vmatpush3.bf16.msra.mxu0 %v12963_v28  ;;  %v15714_v28 = vmax.f32 %v8997_v24, %v9335_v63 }
 0x6a8   : > { %12856 = vmatpush3.bf16.msra.mxu1 %v12855_v4  ;;  %12965 = vmatprep.subr.bf16.mxu0 %v13735_v54  ;;  %v8828_v4 = vld [vmem:[#allocation12 + $0x708] sm:$0xff] }
 0x6a9   : > { %v15686_v27 = vpop.f32.mrb[28].mxu0  ;;  %12857 = vmatprep.subr.bf16.mxu1 %v13735_v54  ;;  %12453 = vmatprep.mubr.msk.f32.mxu0 %vm13736_vm4, %v13737_v44  ;;  %v9430_v32 = vrot.slane %v15714_v28, 2  ;;  %v12903_v62 = vpack.c.bf16 %v8828_v4, %v8827_v29  ;;  %v9341_v29 = vld [vmem:[#allocation12 + $0x890] sm:$0xff]  ;;  %v9342_v4 = vld [vmem:[#allocation12 + $0x898] sm:$0xff] }
 0x6aa   : > { %v6532_v40 = vpop.f32.mrb[24].mxu1  ;;  %v11923_v43 = vpop.f32.mrb[29].mxu0  ;;  %12282 = vmatprep.mubr.msk.f32.mxu1 %vm13736_vm4, %v13737_v44 }
 0x6ab   : > { %12967 = vmatpush3.bf16.msra.mxu0 %v12966_v0  ;;  %v11828_v21 = vpop.f32.mrb[25].mxu1  ;;  %v8830_v0 = vld [vmem:[#allocation12 + $0x718] sm:$0xff] }
 0x6ac   : > { %12859 = vmatpush3.bf16.msra.mxu1 %v12858_v33  ;;  %12968 = vmatprep.subr.bf16.mxu0 %v13735_v54  ;;  %v12906_v33 = vpack.c.bf16 %v8830_v0, %v8829_v6  ;;  %v12909_v21 = vpack.c.bf16 %v8832_v46, %v8831_v26  ;;  %v9345_v46 = vld [vmem:[#allocation12 + $0x8b0] sm:$0xff] }
 0x6ad   : > { %12860 = vmatprep.subr.bf16.mxu1 %v13735_v54 }
 0x6af   : > { %12970 = vmatpush3.bf16.msra.mxu0 %v12969_v47  ;;  %v8833_v47 = vld [vmem:[#allocation12 + $0x730] sm:$0xff] }
 0x6b0   : > { %12862 = vmatpush3.bf16.msra.mxu1 %v12861_v48  ;;  %12971 = vmatprep.subr.bf16.mxu0 %v13735_v54  ;;  %v8834_v48 = vld [vmem:[#allocation12 + $0x738] sm:$0xff] }
 0x6b1   : > { %12863 = vmatprep.subr.bf16.mxu1 %v13735_v54  ;;  %v12912_v55 = vpack.c.bf16 %v8834_v48, %v8833_v47 }
 0x6b3   : > { %12973 = vmatpush3.bf16.msra.mxu0 %v12972_v49  ;;  %v9005_v49 = vld [vmem:[#allocation12 + $0x790] sm:$0xff] }
 0x6b4   : > { %12865 = vmatpush3.bf16.msra.mxu1 %v12864_v53  ;;  %12986 = vmatprep.subr.bf16.mxu0 %v13735_v54  ;;  %v9006_v53 = vld [vmem:[#allocation12 + $0x798] sm:$0xff] }
 0x6b5   : > { %12878 = vmatprep.subr.bf16.mxu1 %v13735_v54  ;;  %v12930_v16 = vpack.c.bf16 %v9006_v53, %v9005_v49 }
 0x6b6   : > { %12454 = vmatmul.mubr.msk.f32.vlgmr.msra.gmra.mrb[56].mxu0 %vm6409_vm5, %v9260_v18 }
 0x6b7   : > { %12283 = vmatmul.mubr.msk.f32.vlgmr.msra.gmra.mrb[52].mxu1 %vm6409_vm5, %v15624_v23  ;;  %12988 = vmatpush3.bf16.msra.mxu0 %v12987_v14 }
 0x6b8   : > { %12880 = vmatpush3.bf16.msra.mxu1 %v12879_v20  ;;  %12989 = vmatprep.subr.bf16.mxu0 %v13735_v54 }
 0x6b9   : > { %v15704_v25 = vpop.f32.mrb[30].mxu0  ;;  %12881 = vmatprep.subr.bf16.mxu1 %v13735_v54  ;;  %12491 = vmatprep.mubr.msk.f32.mxu0 %vm13736_vm4, %v13737_v44 }
 0x6ba   : > { %v6604_v42 = vpop.f32.mrb[26].mxu1  ;;  %v11961_v37 = vpop.f32.mrb[31].mxu0  ;;  %12320 = vmatprep.mubr.msk.f32.mxu1 %vm13736_vm4, %v13737_v44 }
 0x6bb   : > { %v6605_v50 = vadd.f32 %v6604_v42, %v6532_v40  ;;  %v11847_v51 = vpop.f32.mrb[27].mxu1  ;;  %12991 = vmatpush3.bf16.msra.mxu0 %v12990_v56  ;;  %v9170_v56 = vld [vmem:[#allocation12 + $0x808] sm:$0xff] }
 0x6bc   : > { %12883 = vmatpush3.bf16.msra.mxu1 %v12882_v2  ;;  %12992 = vmatprep.subr.bf16.mxu0 %v13735_v54  ;;  %v12951_v57 = vpack.c.bf16 %v9170_v56, %v9169_v13  ;;  %v9171_v2 = vld [vmem:[#allocation12 + $0x810] sm:$0xff] }
 0x6bd   : > { %12884 = vmatprep.subr.bf16.mxu1 %v13735_v54  ;;  %v12954_v17 = vpack.c.bf16 %v9172_v3, %v9171_v2 }
 0x6bf   : > { %12994 = vmatpush3.bf16.msra.mxu0 %v12993_v58  ;;  %v12957_v58 = vpack.c.bf16 %v9174_v41, %v9173_v10 }
 0x6c0   : > { %12886 = vmatpush3.bf16.msra.mxu1 %v12885_v60  ;;  %12995 = vmatprep.subr.bf16.mxu0 %v13735_v54  ;;  %v9175_v60 = vld [vmem:[#allocation12 + $0x830] sm:$0xff] }
 0x6c1   : > { %12887 = vmatprep.subr.bf16.mxu1 %v13735_v54  ;;  %v12960_v63 = vpack.c.bf16 %v9176_v61, %v9175_v60 }
 0x6c3   : > { %12997 = vmatpush3.bf16.msra.mxu0 %v12996_v11  ;;  %v12975_v11 = vpack.c.bf16 %v9340_v9, %v9339_v31 }
 0x6c4   : > { %12889 = vmatpush3.bf16.msra.mxu1 %v12888_v22  ;;  %v9177_v22 = vrot.slane %v15676_v1, 4 }
 0x6c5   : > { %12902 = vmatprep.subr.bf16.mxu1 %v13735_v54 }
 0x6c6   : > { %12492 = vmatmul.mubr.msk.f32.vlgmr.msra.gmra.mrb[58].mxu0 %vm6409_vm5, %v9430_v32  ;;  %v12978_v32 = vpack.c.bf16 %v9342_v4, %v9341_v29 }
 0x6c7   : > { %12321 = vmatmul.mubr.msk.f32.vlgmr.msra.gmra.mrb[54].mxu1 %vm6409_vm5, %v8665_v36  ;;  %v9344_v36 = vld [vmem:[#allocation12 + $0x8a8] sm:$0xff] }
 0x6c8   : > { %12904 = vmatpush3.bf16.msra.mxu1 %v12903_v62  ;;  %12358 = vmatprep.mubr.msk.f32.mxu1 %vm13736_vm4, %v13737_v44  ;;  %v9343_v62 = vld [vmem:[#allocation12 + $0x8a0] sm:$0xff] }
 0x6c9   : > { %v15724_v35 = vpop.f32.mrb[32].mxu0  ;;  %12905 = vmatprep.subr.bf16.mxu1 %v13735_v54  ;;  %v12981_v26 = vpack.c.bf16 %v9344_v36, %v9343_v62 }
 0x6ca   : > { %v6686_v23 = vpop.f32.mrb[28].mxu1  ;;  %v11999_v30 = vpop.f32.mrb[33].mxu0 }
 0x6cb   : > { %v6690_v40 = vadd.f32 %v6686_v23, %v6605_v50  ;;  %v11866_v43 = vpop.f32.mrb[29].mxu1  ;;  %v9346_v23 = vld [vmem:[#allocation12 + $0x8b8] sm:$0xff] }
 0x6cc   : > { %12907 = vmatpush3.bf16.msra.mxu1 %v12906_v33 }
 0x6cd   : > { %12908 = vmatprep.subr.bf16.mxu1 %v13735_v54 }
 0x6d0   : > { %12910 = vmatpush3.bf16.msra.mxu1 %v12909_v21 }
 0x6d1   : > { %12911 = vmatprep.subr.bf16.mxu1 %v13735_v54 }
 0x6d4   : > { %12913 = vmatpush3.bf16.msra.mxu1 %v12912_v55 }
 0x6d5   : > { %12926 = vmatprep.subr.bf16.mxu1 %v13735_v54 }
 0x6d7   : > { %12359 = vmatmul.mubr.msk.f32.vlgmr.msra.gmra.mrb[56].mxu1 %vm6409_vm5, %v15658_v39  ;;  %v9009_v39 = vld [vmem:[#allocation12 + $0x7b0] sm:$0xff] }
 0x6d8   : > { %12928 = vmatpush3.bf16.msra.mxu1 %v12927_v5  ;;  %12396 = vmatprep.mubr.msk.f32.mxu1 %vm13736_vm4, %v13737_v44  ;;  %v12936_v8 = vpack.c.bf16 %v9010_v45, %v9009_v39 }
 0x6d9   : > { %v15734_v12 = vpop.f32.mrb[34].mxu0  ;;  %12929 = vmatprep.subr.bf16.mxu1 %v13735_v54 }
 0x6da   : > { %v6769_v14 = vpop.f32.mrb[30].mxu1  ;;  %v12037_v18 = vpop.f32.mrb[35].mxu0 }
 0x6db   : > { %v6773_v20 = vadd.f32 %v6769_v14, %v6690_v40  ;;  %v11885_v38 = vpop.f32.mrb[31].mxu1  ;;  %v12984_v40 = vpack.c.bf16 %v9346_v23, %v9345_v46 }
 0x6dc   : > { %12931 = vmatpush3.bf16.msra.mxu1 %v12930_v16 }
 0x6dd   : > { %12932 = vmatprep.subr.bf16.mxu1 %v13735_v54 }
 0x6e0   : > { %12934 = vmatpush3.bf16.msra.mxu1 %v12933_v7 }
 0x6e1   : > { %12935 = vmatprep.subr.bf16.mxu1 %v13735_v54 }
 0x6e4   : > { %12937 = vmatpush3.bf16.msra.mxu1 %v12936_v8 }
 0x6e5   : > { %12950 = vmatprep.subr.bf16.mxu1 %v13735_v54 }
 0x6e7   : > { %12397 = vmatmul.mubr.msk.f32.vlgmr.msra.gmra.mrb[58].mxu1 %vm6409_vm5, %v15676_v1 }
 0x6e8   : > { %12952 = vmatpush3.bf16.msra.mxu1 %v12951_v57  ;;  %12434 = vmatprep.mubr.msk.f32.mxu1 %vm13736_vm4, %v13737_v44 }
 0x6e9   : > { %v15744_v24 = vpop.f32.mrb[36].mxu0  ;;  %12953 = vmatprep.subr.bf16.mxu1 %v13735_v54 }
 0x6ea   : > { %v6856_v42 = vpop.f32.mrb[32].mxu1  ;;  %v12075_v37 = vpop.f32.mrb[37].mxu0 }
 0x6eb   : > { %v6860_v50 = vadd.f32 %v6856_v42, %v6773_v20  ;;  %v11904_v51 = vpop.f32.mrb[33].mxu1 }
 0x6ec   : > { %12955 = vmatpush3.bf16.msra.mxu1 %v12954_v17 }
 0x6ed   : > { %12956 = vmatprep.subr.bf16.mxu1 %v13735_v54  ;;  %v6943_v59 = vadd.f32 %v15686_v27, %v6860_v50 }
 0x6f0   : > { %12958 = vmatpush3.bf16.msra.mxu1 %v12957_v58 }
 0x6f1   : > { %12959 = vmatprep.subr.bf16.mxu1 %v13735_v54 }
 0x6f4   : > { %12961 = vmatpush3.bf16.msra.mxu1 %v12960_v63 }
 0x6f5   : > { %12974 = vmatprep.subr.bf16.mxu1 %v13735_v54 }
 0x6f7   : > { %12435 = vmatmul.mubr.msk.f32.vlgmr.msra.gmra.mrb[60].mxu1 %vm6409_vm5, %v9177_v22 }
 0x6f8   : > { %12976 = vmatpush3.bf16.msra.mxu1 %v12975_v11  ;;  %12472 = vmatprep.mubr.msk.f32.mxu1 %vm13736_vm4, %v13737_v44 }
 0x6f9   : > { %v7793_v27 = vpop.f32.mrb[38].mxu0  ;;  %12977 = vmatprep.subr.bf16.mxu1 %v13735_v54 }
 0x6fa   : > { %v7032_v6 = vpop.f32.mrb[34].mxu1  ;;  %v12113_v0 = vpop.f32.mrb[39].mxu0 }
 0x6fb   : > { %v7036_v33 = vadd.f32 %v7032_v6, %v6943_v59  ;;  %v11942_v1 = vpop.f32.mrb[35].mxu1 }
 0x6fc   : > { %12979 = vmatpush3.bf16.msra.mxu1 %v12978_v32 }
 0x6fd   : > { %12980 = vmatprep.subr.bf16.mxu1 %v13735_v54  ;;  %v7119_v30 = vadd.f32 %v15704_v25, %v7036_v33 }
 0x700   : > { %12982 = vmatpush3.bf16.msra.mxu1 %v12981_v26 }
 0x701   : > { %12983 = vmatprep.subr.bf16.mxu1 %v13735_v54 }
 0x704   : > { %12985 = vmatpush3.bf16.msra.mxu1 %v12984_v40 }
 0x707   : > { %12473 = vmatmul.mubr.msk.f32.vlgmr.msra.gmra.mrb[62].mxu1 %vm6409_vm5, %v15714_v28 }
 0x709   : > { %v7963_v44 = vpop.f32.mrb[40].mxu0 }
 0x70a   : > { %v7198_v43 = vpop.f32.mrb[36].mxu1  ;;  %v12151_v21 = vpop.f32.mrb[41].mxu0 }
 0x70b   : > { %v7202_v47 = vadd.f32 %v7198_v43, %v7119_v30  ;;  %v11980_v48 = vpop.f32.mrb[37].mxu1 }
 0x70d   : > { %v7285_v55 = vadd.f32 %v15724_v35, %v7202_v47 }
 0x719   : > { %v8139_v52 = vpop.f32.mrb[42].mxu0 }
 0x71a   : > { %v7368_v15 = vpop.f32.mrb[38].mxu1  ;;  %v12189_v5 = vpop.f32.mrb[43].mxu0 }
 0x71b   : > { %v7372_v49 = vadd.f32 %v7368_v15, %v7285_v55  ;;  %v12018_v25 = vpop.f32.mrb[39].mxu1 }
 0x71d   : > { %v7455_v53 = vadd.f32 %v15734_v12, %v7372_v49 }
 0x729   : > { %v8305_v16 = vpop.f32.mrb[44].mxu0 }
 0x72a   : > { %v7544_v54 = vpop.f32.mrb[40].mxu1  ;;  %v12227_v34 = vpop.f32.mrb[45].mxu0 }
 0x72b   : > { %v7548_v19 = vadd.f32 %v7544_v54, %v7455_v53  ;;  %v12056_v14 = vpop.f32.mrb[41].mxu1  ;;  %v9504_v53 = vld [vmem:[#allocation13] sm:$0x1]  ;;  %v9507_v34 = vld [vmem:[#allocation15] sm:$0x1] }
 0x72d   : > { %v7631_v28 = vadd.f32 %v15744_v24, %v7548_v19 }
 0x739   : > { %v8475_v18 = vpop.f32.mrb[46].mxu0 }
 0x73a   : > { %v7710_v20 = vpop.f32.mrb[42].mxu1  ;;  %v12265_v38 = vpop.f32.mrb[47].mxu0 }
 0x73b   : > { %v7714_v7 = vadd.f32 %v7710_v20, %v7631_v28  ;;  %v12094_v39 = vpop.f32.mrb[43].mxu1 }
 0x73d   : > { %v7797_v35 = vadd.f32 %v7793_v27, %v7714_v7 }
 0x749   : > { %v8651_v45 = vpop.f32.mrb[48].mxu0 }
 0x74a   : > { %v7880_v8 = vpop.f32.mrb[44].mxu1  ;;  %v12303_v13 = vpop.f32.mrb[49].mxu0 }
 0x74b   : > { %v7884_v56 = vadd.f32 %v7880_v8, %v7797_v35  ;;  %v12132_v57 = vpop.f32.mrb[45].mxu1 }
 0x74d   : > { %v7967_v2 = vadd.f32 %v7963_v44, %v7884_v56 }
 0x759   : > { %v8817_v12 = vpop.f32.mrb[50].mxu0 }
 0x75a   : > { %v8056_v3 = vpop.f32.mrb[46].mxu1  ;;  %v12341_v17 = vpop.f32.mrb[51].mxu0 }
 0x75b   : > { %v8060_v10 = vadd.f32 %v8056_v3, %v7967_v2  ;;  %v12170_v41 = vpop.f32.mrb[47].mxu1 }
 0x75d   : > { %v8143_v42 = vadd.f32 %v8139_v52, %v8060_v10 }
 0x769   : > { %v8987_v37 = vpop.f32.mrb[52].mxu0 }
 0x76a   : > { %v8222_v24 = vpop.f32.mrb[48].mxu1  ;;  %v12379_v50 = vpop.f32.mrb[53].mxu0 }
 0x76b   : > { %v8226_v51 = vadd.f32 %v8222_v24, %v8143_v42  ;;  %v12208_v58 = vpop.f32.mrb[49].mxu1 }
 0x76d   : > { %v8309_v60 = vadd.f32 %v8305_v16, %v8226_v51 }
 0x779   : > { %v9163_v61 = vpop.f32.mrb[54].mxu0 }
 0x77a   : > { %v8392_v59 = vpop.f32.mrb[50].mxu1  ;;  %v12417_v63 = vpop.f32.mrb[55].mxu0 }
 0x77b   : > { %v8396_v31 = vadd.f32 %v8392_v59, %v8309_v60  ;;  %v12246_v9 = vpop.f32.mrb[51].mxu1 }
 0x77d   : > { %v8479_v11 = vadd.f32 %v8475_v18, %v8396_v31  ;;  %v9513_v18 = vld [vmem:[#allocation4] sm:$0x1] }
 0x789   : > { %v9329_v22 = vpop.f32.mrb[56].mxu0 }
 0x78a   : > { %v8568_v29 = vpop.f32.mrb[52].mxu1  ;;  %v12455_v4 = vpop.f32.mrb[57].mxu0 }
 0x78b   : > { %v8572_v32 = vadd.f32 %v8568_v29, %v8479_v11  ;;  %v12284_v27 = vpop.f32.mrb[53].mxu1 }
 0x78d   : > { %v8655_v62 = vadd.f32 %v8651_v45, %v8572_v32 }
 0x799   : > { %v9499_v36 = vpop.f32.mrb[58].mxu0 }
 0x79a   : > { %v8734_v6 = vpop.f32.mrb[54].mxu1  ;;  %v12493_v0 = vpop.f32.mrb[59].mxu0 }
 0x79b   : > { %v8738_v33 = vadd.f32 %v8734_v6, %v8655_v62  ;;  %v12322_v1 = vpop.f32.mrb[55].mxu1 }
 0x79d   : > { %v8821_v26 = vadd.f32 %v8817_v12, %v8738_v33 }
 0x7aa   : > { %v8904_v46 = vpop.f32.mrb[56].mxu1 }
 0x7ab   : > { %v8908_v23 = vadd.f32 %v8904_v46, %v8821_v26  ;;  %v12360_v30 = vpop.f32.mrb[57].mxu1 }
 0x7ad   : > { %v8991_v40 = vadd.f32 %v8987_v37, %v8908_v23 }
 0x7ba   : > { %v9080_v44 = vpop.f32.mrb[58].mxu1 }
 0x7bb   : > { %v9084_v43 = vadd.f32 %v9080_v44, %v8991_v40  ;;  %v12398_v21 = vpop.f32.mrb[59].mxu1 }
 0x7bd   : > { %v9167_v47 = vadd.f32 %v9163_v61, %v9084_v43 }
 0x7ca   : > { %v9246_v48 = vpop.f32.mrb[60].mxu1 }
 0x7cb   : > { %v9250_v55 = vadd.f32 %v9246_v48, %v9167_v47  ;;  %v12436_v52 = vpop.f32.mrb[61].mxu1 }
 0x7cd   : > { %v9333_v15 = vadd.f32 %v9329_v22, %v9250_v55 }
 0x7da   : > { %v9416_v5 = vpop.f32.mrb[62].mxu1 }
 0x7db   : > { %v9420_v49 = vadd.f32 %v9416_v5, %v9333_v15  ;;  %v12474_v25 = vpop.f32.mrb[63].mxu1 }
 0x7dd   : > { %v9503_v16 = vadd.f32 %v9499_v36, %v9420_v49 }
 0x7df   : > { %v9505_v54 = vadd.f32 %v9504_v53, %v9503_v16 }
 0x7e1   : > { %v9506_v19 = vmax.f32 %v9505_v54, 0.0 }
 0x7e3   : > { %v9508_v14 = vmul.f32 %v9507_v34, %v9506_v19 }
 0x7e5   : > { %v9510_v28 = vsel %vm9509_vm7, %v9508_v14, 0.0 }
 0x7e6   : > { %9511 = vadd.xlane.f32.xlu0 %v9510_v28 }
 0x873   : > { %v9512_v20 = vpop.xlane.xlu0 %9511 }
 0x874   : > { %v9514_v38 = vadd.f32 %v9513_v18, %v9512_v20 }
 0x876   : > { %v9515_v7 = vand.u32 2147483647, %v9514_v38  ;;  %vm9521_vm9 = vcmp.ge.f32.partialorder %v9514_v38, 0.0 }
 0x878   : > { %v9516_v39 = vsub.f32 0.0, %v9515_v7 }
 0x87a   : > { %v9517_v35 = vmul.f32 1.442695, %v9516_v39 }
 0x87c   : > { %13500 = vpow2.f32 %v9517_v35 }
 0x886   : > { %v13501_v45 = vpop.eup %13500 }
 0x887   : > { %v9519_v8 = vadd.f32 1.0, %v13501_v45 }
 0x889   : > { %13502 = vrcp.f32 %v9519_v8 }
 0x893   : > { %v13503_v13 = vpop.eup %13502 }
 0x894   : > { %v9522_v56 = vmul.f32 %v13503_v13, %v13501_v45 }
 0x896   : > { %v9523_v57 = vsel %vm9521_vm9, %v13503_v13, %v9522_v56 }
 0x897   : > { %9525 = vst.msk [vmem:[%s424_s10] sm:$0x1] %vm9524_vm8, %v9523_v57 }
 0x898 PF: > { %s25_s11 = sadd.s32 1, %s13722_s11  }
 0x899   : > { %p22_p11 = scmp.ge.s32.totalorder %s25_s11, 4  }
 0x89b   :  { %24 = sbr.rel (!%p22_p11) target bundleno = 7 (0x7), region = 166 }
 0x8a2   :  { %9543 = vsyncpa [#allocation6], 1 }
 0x8a3   :  { %9545 = vsyncpa [#allocation6 + $0x1], 1 }
 0x8a4   :  { %9546 = vsyncpa [#allocation8], 1 }
 0x8a5   :  { %9547 = vsyncpa [#allocation11], 1 }
 0x8a6   :  { %9548 = vsyncpa [#allocation14], 1 }

</bundles_post_ra>
